<compile_context>
chip_gen: v5e
topology: v5e:2x2
jax: 0.10.0
libtpu: 0.0.40
codegen_flags: <defaults>
</compile_context>

<pallas_src>
import math

import jax
import jax.numpy as jnp
from jax.experimental import pallas as pl
from jax.experimental.pallas import tpu as pltpu

SQRT_HALF = math.sqrt(0.5)
NEG_BIG = -1e30


def _round_up(x, m):
    return ((x + m - 1) // m) * m


# ----------------------------- fused full-decoder kernel ----------------------

def make_decoder_kernel(B, Tp, Hp, K, L, PAD, scale):
    BT = B * Tp

    def kernel(oemb_ref, enc_ref, iemb_ref, mask_ref,
               win_ref, bin_ref, wout_ref, bout_ref,
               wres_ref, bres_ref, wconv_ref, bconv_ref,
               wattn_ref, battn_ref,
               out_ref, hs_ref):
        # grid axis 0 = decoder layer index ("arbitrary" -> sequential)
        l = pl.program_id(0)
        oemb = oemb_ref[...]                                   # [BT, Hp] f32

        # ---- layer 0: in_proj seeds the causally-padded hs scratch ----------
        @pl.when(l == 0)
        def _init():
            if PAD > 0:   # zero only the (aligned) causal pad rows
                hs_ref[:, :PAD, :] = jnp.zeros((B, PAD, Hp), jnp.float32)
            hs0 = jnp.dot(oemb.astype(jnp.bfloat16), win_ref[...],
                          preferred_element_type=jnp.float32) + bin_ref[...]
            hs_ref[:, pl.ds(PAD, Tp), :] = hs0.reshape(B, Tp, Hp)

        x3 = hs_ref[:, pl.ds(PAD, Tp), :]                      # aligned read
        x = x3.reshape(BT, Hp)
        xb = x.astype(jnp.bfloat16)

        # residual projection; layer 0 takes the exact skip path (no bf16
        # rounding through an identity matmul).
        res_proj = jnp.dot(xb, wres_ref[0],
                           preferred_element_type=jnp.float32) + bres_ref[0]
        res = jnp.where(l == 0, x, res_proj)

        # causal Conv1d as K accumulated matmuls (no im2col concat):
        # tap k = hidden state shifted back by (K-1-k) steps, zeros before t=0.
        def tap(k):
            if k == K - 1:
                return xb
            off = PAD - (K - 1) + k
            return hs_ref[:, pl.ds(off, Tp), :].reshape(BT, Hp).astype(jnp.bfloat16)

        conv = jnp.dot(tap(0), wconv_ref[0, 0], preferred_element_type=jnp.float32)
        for k in range(1, K):
            conv = conv + jnp.dot(tap(k), wconv_ref[0, k],
                                  preferred_element_type=jnp.float32)
        conv = conv + bconv_ref[0]

        # GLU(dim=-1): lane-dense split at Hp (multiple of 128)
        act = conv[:, :Hp] * jax.nn.sigmoid(conv[:, Hp:])

        # Attention (encoder pre-transposed to [B, Hp, Sp])
        d = (jnp.dot(act.astype(jnp.bfloat16), wattn_ref[0],
                     preferred_element_type=jnp.float32)
             + battn_ref[0] + oemb) * SQRT_HALF
        d3 = d.reshape(B, Tp, Hp).astype(jnp.bfloat16)
        aw = jnp.einsum('bth,bhs->bts', d3, enc_ref[...],
                        preferred_element_type=jnp.float32)
        aw = aw + mask_ref[...]                                # additive -1e30 mask
        m = jnp.max(aw, axis=-1, keepdims=True)
        e = jnp.exp(aw - m)
        ssum = jnp.sum(e, axis=-1, keepdims=True)
        # output `scale` folded into the softmax normalizer
        p = (e * (pl.reciprocal(ssum, approx=True) * scale)).astype(jnp.bfloat16)
        attn = jnp.einsum('bts,bsh->bth', p, iemb_ref[...],
                          preferred_element_type=jnp.float32).reshape(BT, Hp)

        # ((attn + act)*c + res)*c  ==  (attn + act)*0.5 + res*c
        hs_new = (attn + act) * 0.5 + res * SQRT_HALF
        hs_ref[:, pl.ds(PAD, Tp), :] = hs_new.reshape(B, Tp, Hp)

        # ---- last layer: out_proj into the resident output block -----------
        @pl.when(l == L - 1)
        def _final():
            out_ref[...] = (jnp.dot(hs_new.astype(jnp.bfloat16), wout_ref[...],
                                    preferred_element_type=jnp.float32)
                            + bout_ref[...])

    return kernel


# ----------------------------- parameter init (deterministic) -----------------

def make_positional_encoding(hidden_size, max_len=1024):
    position = jnp.arange(max_len, dtype=jnp.float32)[:, None]
    div_term = jnp.exp(jnp.arange(0, hidden_size, 2, dtype=jnp.float32)
                       * (-math.log(10000.0) / hidden_size))
    pe = jnp.zeros((max_len, hidden_size), jnp.float32)
    pe = pe.at[:, 0::2].set(jnp.sin(position * div_term))
    pe = pe.at[:, 1::2].set(jnp.cos(position * div_term))
    return pe[None]  # [1, max_len, H]


def init_params(key, hidden_size, kernel_size, dropout_p, vocab_size, num_layers):
    H, K = hidden_size, kernel_size
    keys = jax.random.split(key, 3 + 3 * num_layers)
    std_io = math.sqrt((1.0 - dropout_p) / H)
    std_conv = math.sqrt(4.0 * (1.0 - dropout_p) / (K * H))
    std_proj = math.sqrt(1.0 / H)

    params = {
        'kernel_size': K,
        'embedding': 0.1 * jax.random.normal(keys[0], (vocab_size, H), jnp.float32),
        'pe': make_positional_encoding(H),
        # linear weights stored in [H_in, H_out] (math) layout
        'in_proj_w': std_io * jax.random.normal(keys[1], (H, H), jnp.float32),
        'in_proj_b': jnp.zeros((H,), jnp.float32),
        'out_proj_w': std_io * jax.random.normal(keys[2], (H, H), jnp.float32),
        'out_proj_b': jnp.zeros((H,), jnp.float32),
        'layers': [],
    }
    for i in range(num_layers):
        k_res, k_conv, k_attn = keys[3 + 3 * i], keys[4 + 3 * i], keys[5 + 3 * i]
        if i == 0:
            wres = jnp.eye(H, dtype=jnp.float32)   # filler: layer 0 has no projection
        else:
            wres = std_proj * jax.random.normal(k_res, (H, H), jnp.float32)
        # torch Conv1d weight [2H, H, K] -> per-tap weights [K, H, 2H]
        wconv_t = std_conv * jax.random.normal(k_conv, (2 * H, H, K), jnp.float32)
        wconv = jnp.transpose(wconv_t, (2, 1, 0))
        wattn = std_proj * jax.random.normal(k_attn, (H, H), jnp.float32)
        params['layers'].append({
            'wres': wres, 'bres': jnp.zeros((H,), jnp.float32),
            'wconv': wconv, 'bconv': jnp.zeros((2 * H,), jnp.float32),
            'wattn': wattn, 'battn': jnp.zeros((H,), jnp.float32),
        })
    return params


# ----------------------------- helpers for the pallas_call ---------------------

def _zero_map(rank):
    if rank == 2:
        return lambda l: (0, 0)
    if rank == 3:
        return lambda l: (0, 0, 0)
    raise ValueError(f"unsupported rank {rank}")


def _invariant_spec(shape, single_buffer):
    """BlockSpec for a grid-invariant operand (full array, constant index map)."""
    if single_buffer:
        return pl.BlockSpec(tuple(shape), _zero_map(len(shape)),
                            pipeline_mode=pl.Buffered(1))
    return pl.BlockSpec(tuple(shape), _zero_map(len(shape)))


def _vmem_limit_bytes():
    cap = 128 * 1024 * 1024
    try:
        cap = int(pltpu.get_tpu_info().vmem_capacity_bytes)
    except Exception:
        pass
    # ~75% of physical VMEM, capped: ~96-100 MiB on v5e/v6e, ~48 MiB on v7x.
    return max(32 * 1024 * 1024, min((cap * 3) // 4, 100 * 1024 * 1024))


# ----------------------------- full Decoder forward ---------------------------

def decoder_forward(params, output_ids, encoder_outputs, input_embeddings,
                    encoder_padding_mask):
    B, T = output_ids.shape
    H = params['embedding'].shape[1]
    S = encoder_outputs.shape[1]
    K = params['kernel_size']
    L = len(params['layers'])

    # lane-dense / sublane-aligned padded sizes
    Hp = _round_up(H, 128)
    Sp = _round_up(S, 128)
    Tp = _round_up(T, 8)
    PAD = _round_up(max(K - 1, 0), 8)
    BT = B * Tp
    scale = float(S) * math.sqrt(1.0 / S)   # uses the true S

    # plain-JAX glue: embedding gather + positional encoding (dropout=identity)
    oemb = params['embedding'][output_ids] + params['pe'][:, :T, :]       # [B,T,H]
    oemb_p = jnp.pad(oemb, ((0, 0), (0, Tp - T), (0, Hp - H)))
    oemb2 = oemb_p.reshape(BT, Hp)

    # pre-transposed / pre-cast / lane-padded MXU operands (done once)
    enc_p = jnp.pad(encoder_outputs, ((0, 0), (0, Sp - S), (0, Hp - H)))
    enc_t = jnp.transpose(enc_p, (0, 2, 1)).astype(jnp.bfloat16)          # [B,Hp,Sp]
    iemb_p = jnp.pad(input_embeddings,
                     ((0, 0), (0, Sp - S), (0, Hp - H))).astype(jnp.bfloat16)

    mask_p = jnp.pad(encoder_padding_mask, ((0, 0), (0, 0), (0, Sp - S)),
                     constant_values=True)                                 # [B,1,Sp]
    neg_mask = jnp.where(mask_p, NEG_BIG, 0.0).astype(jnp.float32)

    def pad_w(w):
        return jnp.pad(w, ((0, Hp - w.shape[0]), (0, Hp - w.shape[1])))

    def pad_b(b):
        return jnp.pad(b, (0, Hp - b.shape[0])).reshape(1, Hp)

    win = pad_w(params['in_proj_w']).astype(jnp.bfloat16)
    wout = pad_w(params['out_proj_w']).astype(jnp.bfloat16)
    bin_ = pad_b(params['in_proj_b'])
    bout = pad_b(params['out_proj_b'])

    wres_l, bres_l, wconv_l, bconv_l, wattn_l, battn_l = [], [], [], [], [], []
    for ly in params['layers']:
        wres_l.append(pad_w(ly['wres']))
        bres_l.append(pad_b(ly['bres']))
        # pad each GLU half separately so the split stays at lane offset Hp
        wc = jnp.zeros((K, Hp, 2 * Hp), jnp.float32)
        wc = wc.at[:, :H, :H].set(ly['wconv'][:, :, :H])
        wc = wc.at[:, :H, Hp:Hp + H].set(ly['wconv'][:, :, H:])
        wconv_l.append(wc)
        bc = jnp.zeros((2 * Hp,), jnp.float32)
        bc = bc.at[:H].set(ly['bconv'][:H]).at[Hp:Hp + H].set(ly['bconv'][H:])
        bconv_l.append(bc.reshape(1, 2 * Hp))
        wattn_l.append(pad_w(ly['wattn']))
        battn_l.append(pad_b(ly['battn']))

    wres_all = jnp.stack(wres_l).astype(jnp.bfloat16)       # [L, Hp, Hp]
    bres_all = jnp.stack(bres_l)                             # [L, 1, Hp]
    wconv_all = jnp.stack(wconv_l).astype(jnp.bfloat16)      # [L, K, Hp, 2Hp]
    bconv_all = jnp.stack(bconv_l)                           # [L, 1, 2Hp]
    wattn_all = jnp.stack(wattn_l).astype(jnp.bfloat16)      # [L, Hp, Hp]
    battn_all = jnp.stack(battn_l)                           # [L, 1, Hp]

    kernel = make_decoder_kernel(B, Tp, Hp, K, L, PAD, scale)
    invariants = (oemb2, enc_t, iemb_p, neg_mask, win, bin_, wout, bout)

    def run(single_buffer):
        in_specs = [_invariant_spec(a.shape, single_buffer) for a in invariants]
        in_specs += [
            pl.BlockSpec((1, Hp, Hp), lambda l: (l, 0, 0)),           # residual W
            pl.BlockSpec((1, 1, Hp), lambda l: (l, 0, 0)),            # residual b
            pl.BlockSpec((1, K, Hp, 2 * Hp), lambda l: (l, 0, 0, 0)),  # conv W
            pl.BlockSpec((1, 1, 2 * Hp), lambda l: (l, 0, 0)),        # conv b
            pl.BlockSpec((1, Hp, Hp), lambda l: (l, 0, 0)),           # attn W
            pl.BlockSpec((1, 1, Hp), lambda l: (l, 0, 0)),            # attn b
        ]
        return pl.pallas_call(
            kernel,
            out_shape=jax.ShapeDtypeStruct((BT, Hp), jnp.float32),
            grid_spec=pltpu.PrefetchScalarGridSpec(
                num_scalar_prefetch=0,
                grid=(L,),
                in_specs=in_specs,
                out_specs=pl.BlockSpec((BT, Hp), lambda l: (0, 0)),
                scratch_shapes=[pltpu.VMEM((B, PAD + Tp, Hp), jnp.float32)],
            ),
            compiler_params=pltpu.CompilerParams(
                dimension_semantics=("arbitrary",),
                vmem_limit_bytes=_vmem_limit_bytes(),
            ),
        )(*invariants, wres_all, bres_all, wconv_all, bconv_all,
          wattn_all, battn_all)

    try:
        out2 = jax.block_until_ready(run(single_buffer=True))
    except Exception:
        # Fallback if this jax build rejects pipeline_mode=pl.Buffered(1):
        # identical kernel, default double-buffered invariant operands.
        out2 = run(single_buffer=False)

    out3 = out2.reshape(B, Tp, Hp)
    return out3[:, :T, :H]


# ----------------------------- pure-JAX f32 reference -------------------------

def decoder_ref(params, output_ids, encoder_outputs, input_embeddings, mask_bool):
    B, T = output_ids.shape
    H = params['embedding'].shape[1]
    S = input_embeddings.shape[1]
    K = params['kernel_size']
    oemb = params['embedding'][output_ids] + params['pe'][:, :T, :]
    hs = oemb @ params['in_proj_w'] + params['in_proj_b']
    scale = float(S) * math.sqrt(1.0 / S)
    for li, ly in enumerate(params['layers']):
        x = hs
        res = x if li == 0 else x @ ly['wres'] + ly['bres']
        xpad = jnp.pad(x, ((0, 0), (K - 1, 0), (0, 0)))
        conv = sum(xpad[:, k:k + T, :] @ ly['wconv'][k] for k in range(K)) + ly['bconv']
        act = conv[..., :H] * jax.nn.sigmoid(conv[..., H:])
        d = (act @ ly['wattn'] + ly['battn'] + oemb) * SQRT_HALF
        aw = jnp.einsum('bth,bsh->bts', d, encoder_outputs)
        aw = jnp.where(mask_bool, NEG_BIG, aw)
        p = jax.nn.softmax(aw, axis=-1)
        attn = jnp.einsum('bts,bsh->bth', p, input_embeddings) * scale
        hs = ((attn + act) * SQRT_HALF + res) * SQRT_HALF
    return hs @ params['out_proj_w'] + params['out_proj_b']


if __name__ == "__main__":
    hidden_size = 32
    kernel_size = 3
    dropout_p = 0.0
    vocab_size = 16
    num_layers = 2
    B, T, S = 2, 8, 8

    key = jax.random.PRNGKey(0)
    k_params, k_ids, k_enc, k_iemb = jax.random.split(key, 4)
    params = init_params(k_params, hidden_size, kernel_size, dropout_p,
                         vocab_size, num_layers)

    output_ids = jax.random.randint(k_ids, (B, T), 0, vocab_size)
    encoder_outputs = jax.random.normal(k_enc, (B, S, hidden_size), jnp.float32)
    input_embeddings = jax.random.normal(k_iemb, (B, S, hidden_size), jnp.float32)
    encoder_padding_mask = jnp.zeros((B, 1, S), jnp.bool_)
    encoder_padding_mask = encoder_padding_mask.at[1, 0, S - 2:].set(True)

    out = decoder_forward(params, output_ids, encoder_outputs,
                          input_embeddings, encoder_padding_mask)
    out = jax.block_until_ready(out)

    ref = decoder_ref(params, output_ids, encoder_outputs,
                      input_embeddings, encoder_padding_mask)
    assert out.shape == (B, T, hidden_size)
    # bf16 MXU inputs (f32 accumulation) + approx reciprocal -> bf16-level tolerance.
    err = float(jnp.max(jnp.abs(out - ref)))
    denom = float(jnp.max(jnp.abs(ref))) + 1e-6
    assert err / denom < 8e-2, f"mismatch vs reference: rel_err={err / denom}"
    print("KERNEL_OK")
</pallas_src>

<mosaic_0001>
module attributes {stable_mosaic.version = 11 : i64} {
  func.func @kernel(%arg0: i32, %arg1: memref<16x128xf32, #tpu.memory_space<vmem>>, %arg2: memref<2x128x128xbf16, #tpu.memory_space<vmem>>, %arg3: memref<2x128x128xbf16, #tpu.memory_space<vmem>>, %arg4: memref<2x1x128xf32, #tpu.memory_space<vmem>>, %arg5: memref<128x128xbf16, #tpu.memory_space<vmem>>, %arg6: memref<1x128xf32, #tpu.memory_space<vmem>>, %arg7: memref<128x128xbf16, #tpu.memory_space<vmem>>, %arg8: memref<1x128xf32, #tpu.memory_space<vmem>>, %arg9: memref<1x128x128xbf16, #tpu.memory_space<vmem>>, %arg10: memref<1x1x128xf32, #tpu.memory_space<vmem>>, %arg11: memref<1x3x128x256xbf16, #tpu.memory_space<vmem>>, %arg12: memref<1x1x256xf32, #tpu.memory_space<vmem>>, %arg13: memref<1x128x128xbf16, #tpu.memory_space<vmem>>, %arg14: memref<1x1x128xf32, #tpu.memory_space<vmem>>, %arg15: memref<16x128xf32, #tpu.memory_space<vmem>>, %arg16: memref<2x16x128xf32, #tpu.memory_space<vmem>>) attributes {dimension_semantics = [#tpu.dimension_semantics<arbitrary>], iteration_bounds = array<i64: 2>, scalar_prefetch = 0 : i64, scratch_operands = 1 : i64, tpu.core_type = #tpu.core_type<tc>, window_params = [{pipeline_mode = #tpu.pipeline_mode<synchronous>, transform_indices = @transform_0, window_bounds = array<i64: 16, 128>}, {pipeline_mode = #tpu.pipeline_mode<synchronous>, transform_indices = @transform_1, window_bounds = array<i64: 2, 128, 128>}, {pipeline_mode = #tpu.pipeline_mode<synchronous>, transform_indices = @transform_2, window_bounds = array<i64: 2, 128, 128>}, {pipeline_mode = #tpu.pipeline_mode<synchronous>, transform_indices = @transform_3, window_bounds = array<i64: 2, 1, 128>}, {pipeline_mode = #tpu.pipeline_mode<synchronous>, transform_indices = @transform_4, window_bounds = array<i64: 128, 128>}, {pipeline_mode = #tpu.pipeline_mode<synchronous>, transform_indices = @transform_5, window_bounds = array<i64: 1, 128>}, {pipeline_mode = #tpu.pipeline_mode<synchronous>, transform_indices = @transform_6, window_bounds = array<i64: 128, 128>}, {pipeline_mode = #tpu.pipeline_mode<synchronous>, transform_indices = @transform_7, window_bounds = array<i64: 1, 128>}, {transform_indices = @transform_8, window_bounds = array<i64: 1, 128, 128>}, {transform_indices = @transform_9, window_bounds = array<i64: 1, 1, 128>}, {transform_indices = @transform_10, window_bounds = array<i64: 1, 3, 128, 256>}, {transform_indices = @transform_11, window_bounds = array<i64: 1, 1, 256>}, {transform_indices = @transform_12, window_bounds = array<i64: 1, 128, 128>}, {transform_indices = @transform_13, window_bounds = array<i64: 1, 1, 128>}, {pipeline_mode = #tpu.pipeline_mode<synchronous>, transform_indices = @transform_14, window_bounds = array<i64: 16, 128>}]} {
    %c0 = arith.constant 0 : index
    %c0_0 = arith.constant 0 : index
    %0 = vector.load %arg1[%c0, %c0_0] : memref<16x128xf32, #tpu.memory_space<vmem>>, vector<16x128xf32>
    %c0_i32 = arith.constant 0 : i32
    %1 = arith.cmpi eq, %arg0, %c0_i32 : i32
    %2 = arith.extui %1 : i1 to i32
    %c0_i32_1 = arith.constant 0 : i32
    %3 = arith.cmpi ne, %2, %c0_i32_1 : i32
    scf.if %3 {
      %cst_60 = arith.constant 0.000000e+00 : f32
      %90 = vector.broadcast %cst_60 : f32 to vector<2x8x128xf32>
      %c0_61 = arith.constant 0 : index
      %c0_62 = arith.constant 0 : index
      %c0_63 = arith.constant 0 : index
      %91 = vector.load %arg16[%c0_61, %c0_62, %c0_63] : memref<2x16x128xf32, #tpu.memory_space<vmem>>, vector<2x8x128xf32>
      tpu.vector_store %arg16[%c0_61, %c0_62, %c0_63], %90 {strides = array<i32>} : memref<2x16x128xf32, #tpu.memory_space<vmem>>, vector<2x8x128xf32>,
      %92 = arith.truncf %0 : vector<16x128xf32> to vector<16x128xbf16>
      %c0_64 = arith.constant 0 : index
      %c0_65 = arith.constant 0 : index
      %93 = vector.load %arg5[%c0_64, %c0_65] : memref<128x128xbf16, #tpu.memory_space<vmem>>, vector<128x128xbf16>
      %cst_66 = arith.constant dense<0.000000e+00> : vector<16x128xf32>
      %94 = tpu.matmul %92, %93, %cst_66 {dimension_numbers = #tpu.dot_dimension_numbers<[1], [0], [0], [1], [0, 0, 1, 1], [], []>} : vector<16x128xbf16>, vector<128x128xbf16>, vector<16x128xf32> -> vector<16x128xf32>
      %c0_67 = arith.constant 0 : index
      %c0_68 = arith.constant 0 : index
      %95 = vector.load %arg6[%c0_67, %c0_68] : memref<1x128xf32, #tpu.memory_space<vmem>>, vector<1x128xf32>
      %96 = vector.broadcast %95 : vector<1x128xf32> to vector<16x128xf32>
      %97 = arith.addf %94, %96 : vector<16x128xf32>
      %98 = vector.shape_cast %97 : vector<16x128xf32> to vector<2x8x128xf32>
      %c0_69 = arith.constant 0 : index
      %c8_70 = arith.constant 8 : index
      %c0_71 = arith.constant 0 : index
      %99 = vector.load %arg16[%c0_69, %c8_70, %c0_71] : memref<2x16x128xf32, #tpu.memory_space<vmem>>, vector<2x8x128xf32>
      tpu.vector_store %arg16[%c0_69, %c8_70, %c0_71], %98 {strides = array<i32>} : memref<2x16x128xf32, #tpu.memory_space<vmem>>, vector<2x8x128xf32>,
    } else {
    }
    %c0_2 = arith.constant 0 : index
    %c8 = arith.constant 8 : index
    %c0_3 = arith.constant 0 : index
    %4 = vector.load %arg16[%c0_2, %c8, %c0_3] : memref<2x16x128xf32, #tpu.memory_space<vmem>>, vector<2x8x128xf32>
    %5 = vector.shape_cast %4 : vector<2x8x128xf32> to vector<16x128xf32>
    %6 = arith.truncf %5 : vector<16x128xf32> to vector<16x128xbf16>
    %c0_4 = arith.constant 0 : index
    %c0_5 = arith.constant 0 : index
    %c0_6 = arith.constant 0 : index
    %7 = vector.load %arg9[%c0_4, %c0_5, %c0_6] : memref<1x128x128xbf16, #tpu.memory_space<vmem>>, vector<1x128x128xbf16>
    %8 = vector.shape_cast %7 : vector<1x128x128xbf16> to vector<128x128xbf16>
    %cst = arith.constant dense<0.000000e+00> : vector<16x128xf32>
    %9 = tpu.matmul %6, %8, %cst {dimension_numbers = #tpu.dot_dimension_numbers<[1], [0], [0], [1], [0, 0, 1, 1], [], []>} : vector<16x128xbf16>, vector<128x128xbf16>, vector<16x128xf32> -> vector<16x128xf32>
    %c0_7 = arith.constant 0 : index
    %c0_8 = arith.constant 0 : index
    %c0_9 = arith.constant 0 : index
    %10 = vector.load %arg10[%c0_7, %c0_8, %c0_9] : memref<1x1x128xf32, #tpu.memory_space<vmem>>, vector<1x1x128xf32>
    %11 = vector.shape_cast %10 : vector<1x1x128xf32> to vector<1x128xf32>
    %12 = vector.broadcast %11 : vector<1x128xf32> to vector<16x128xf32>
    %13 = arith.addf %9, %12 : vector<16x128xf32>
    %c0_i32_10 = arith.constant 0 : i32
    %14 = arith.cmpi eq, %arg0, %c0_i32_10 : i32
    %15 = arith.select %14, %5, %13 : vector<16x128xf32>
    %c0_11 = arith.constant 0 : index
    %c6 = arith.constant 6 : index
    %c0_12 = arith.constant 0 : index
    %16 = vector.load %arg16[%c0_11, %c6, %c0_12] : memref<2x16x128xf32, #tpu.memory_space<vmem>>, vector<2x8x128xf32>
    %17 = vector.shape_cast %16 : vector<2x8x128xf32> to vector<16x128xf32>
    %18 = arith.truncf %17 : vector<16x128xf32> to vector<16x128xbf16>
    %c0_13 = arith.constant 0 : index
    %c0_14 = arith.constant 0 : index
    %c0_15 = arith.constant 0 : index
    %c0_16 = arith.constant 0 : index
    %19 = vector.load %arg11[%c0_13, %c0_14, %c0_15, %c0_16] : memref<1x3x128x256xbf16, #tpu.memory_space<vmem>>, vector<1x1x128x256xbf16>
    %20 = vector.shape_cast %19 : vector<1x1x128x256xbf16> to vector<128x256xbf16>
    %cst_17 = arith.constant dense<0.000000e+00> : vector<16x256xf32>
    %21 = tpu.matmul %18, %20, %cst_17 {dimension_numbers = #tpu.dot_dimension_numbers<[1], [0], [0], [1], [0, 0, 1, 1], [], []>} : vector<16x128xbf16>, vector<128x256xbf16>, vector<16x256xf32> -> vector<16x256xf32>
    %c0_18 = arith.constant 0 : index
    %c7 = arith.constant 7 : index
    %c0_19 = arith.constant 0 : index
    %22 = vector.load %arg16[%c0_18, %c7, %c0_19] : memref<2x16x128xf32, #tpu.memory_space<vmem>>, vector<2x8x128xf32>
    %23 = vector.shape_cast %22 : vector<2x8x128xf32> to vector<16x128xf32>
    %24 = arith.truncf %23 : vector<16x128xf32> to vector<16x128xbf16>
    %c0_20 = arith.constant 0 : index
    %c1 = arith.constant 1 : index
    %c0_21 = arith.constant 0 : index
    %c0_22 = arith.constant 0 : index
    %25 = vector.load %arg11[%c0_20, %c1, %c0_21, %c0_22] : memref<1x3x128x256xbf16, #tpu.memory_space<vmem>>, vector<1x1x128x256xbf16>
    %26 = vector.shape_cast %25 : vector<1x1x128x256xbf16> to vector<128x256xbf16>
    %cst_23 = arith.constant dense<0.000000e+00> : vector<16x256xf32>
    %27 = tpu.matmul %24, %26, %cst_23 {dimension_numbers = #tpu.dot_dimension_numbers<[1], [0], [0], [1], [0, 0, 1, 1], [], []>} : vector<16x128xbf16>, vector<128x256xbf16>, vector<16x256xf32> -> vector<16x256xf32>
    %28 = arith.addf %21, %27 : vector<16x256xf32>
    %c0_24 = arith.constant 0 : index
    %c2 = arith.constant 2 : index
    %c0_25 = arith.constant 0 : index
    %c0_26 = arith.constant 0 : index
    %29 = vector.load %arg11[%c0_24, %c2, %c0_25, %c0_26] : memref<1x3x128x256xbf16, #tpu.memory_space<vmem>>, vector<1x1x128x256xbf16>
    %30 = vector.shape_cast %29 : vector<1x1x128x256xbf16> to vector<128x256xbf16>
    %cst_27 = arith.constant dense<0.000000e+00> : vector<16x256xf32>
    %31 = tpu.matmul %6, %30, %cst_27 {dimension_numbers = #tpu.dot_dimension_numbers<[1], [0], [0], [1], [0, 0, 1, 1], [], []>} : vector<16x128xbf16>, vector<128x256xbf16>, vector<16x256xf32> -> vector<16x256xf32>
    %32 = arith.addf %28, %31 : vector<16x256xf32>
    %c0_28 = arith.constant 0 : index
    %c0_29 = arith.constant 0 : index
    %c0_30 = arith.constant 0 : index
    %33 = vector.load %arg12[%c0_28, %c0_29, %c0_30] : memref<1x1x256xf32, #tpu.memory_space<vmem>>, vector<1x1x256xf32>
    %34 = vector.shape_cast %33 : vector<1x1x256xf32> to vector<1x256xf32>
    %35 = vector.broadcast %34 : vector<1x256xf32> to vector<16x256xf32>
    %36 = arith.addf %32, %35 : vector<16x256xf32>
    %37 = vector.extract_strided_slice %36 {offsets = [0, 0], sizes = [16, 128], strides = [1, 1]} : vector<16x256xf32> to vector<16x128xf32>
    %38 = vector.extract_strided_slice %36 {offsets = [0, 128], sizes = [16, 128], strides = [1, 1]} : vector<16x256xf32> to vector<16x128xf32>
    %39 = arith.negf %38 : vector<16x128xf32>
    %40 = math.exp %39 : vector<16x128xf32>
    %cst_31 = arith.constant 1.000000e+00 : f32
    %41 = vector.broadcast %cst_31 : f32 to vector<16x128xf32>
    %42 = arith.addf %41, %40 : vector<16x128xf32>
    %43 = arith.divf %41, %42 : vector<16x128xf32>
    %44 = arith.mulf %37, %43 : vector<16x128xf32>
    %45 = arith.truncf %44 : vector<16x128xf32> to vector<16x128xbf16>
    %c0_32 = arith.constant 0 : index
    %c0_33 = arith.constant 0 : index
    %c0_34 = arith.constant 0 : index
    %46 = vector.load %arg13[%c0_32, %c0_33, %c0_34] : memref<1x128x128xbf16, #tpu.memory_space<vmem>>, vector<1x128x128xbf16>
    %47 = vector.shape_cast %46 : vector<1x128x128xbf16> to vector<128x128xbf16>
    %cst_35 = arith.constant dense<0.000000e+00> : vector<16x128xf32>
    %48 = tpu.matmul %45, %47, %cst_35 {dimension_numbers = #tpu.dot_dimension_numbers<[1], [0], [0], [1], [0, 0, 1, 1], [], []>} : vector<16x128xbf16>, vector<128x128xbf16>, vector<16x128xf32> -> vector<16x128xf32>
    %c0_36 = arith.constant 0 : index
    %c0_37 = arith.constant 0 : index
    %c0_38 = arith.constant 0 : index
    %49 = vector.load %arg14[%c0_36, %c0_37, %c0_38] : memref<1x1x128xf32, #tpu.memory_space<vmem>>, vector<1x1x128xf32>
    %50 = vector.shape_cast %49 : vector<1x1x128xf32> to vector<1x128xf32>
    %51 = vector.broadcast %50 : vector<1x128xf32> to vector<16x128xf32>
    %52 = arith.addf %48, %51 : vector<16x128xf32>
    %53 = arith.addf %52, %0 : vector<16x128xf32>
    %cst_39 = arith.constant 0.707106769 : f32
    %54 = vector.broadcast %cst_39 : f32 to vector<16x128xf32>
    %55 = arith.mulf %53, %54 : vector<16x128xf32>
    %56 = vector.shape_cast %55 : vector<16x128xf32> to vector<2x8x128xf32>
    %57 = arith.truncf %56 : vector<2x8x128xf32> to vector<2x8x128xbf16>
    %c0_40 = arith.constant 0 : index
    %c0_41 = arith.constant 0 : index
    %c0_42 = arith.constant 0 : index
    %58 = vector.load %arg2[%c0_40, %c0_41, %c0_42] : memref<2x128x128xbf16, #tpu.memory_space<vmem>>, vector<2x128x128xbf16>
    "tpu.trace_start"() <{level = 10 : i32, message = "bth,bhs->bts"}> : () -> ()
    %cst_43 = arith.constant dense<0.000000e+00> : vector<2x8x128xf32>
    %59 = tpu.matmul %57, %58, %cst_43 {dimension_numbers = #tpu.dot_dimension_numbers<[2], [1], [1], [2], [0, 0, 0, 1, 1, 2], [0], [0]>} : vector<2x8x128xbf16>, vector<2x128x128xbf16>, vector<2x8x128xf32> -> vector<2x8x128xf32>
    "tpu.trace_stop"() : () -> ()
    %c0_44 = arith.constant 0 : index
    %c0_45 = arith.constant 0 : index
    %c0_46 = arith.constant 0 : index
    %60 = vector.load %arg4[%c0_44, %c0_45, %c0_46] : memref<2x1x128xf32, #tpu.memory_space<vmem>>, vector<2x1x128xf32>
    %61 = vector.broadcast %60 : vector<2x1x128xf32> to vector<2x8x128xf32>
    %62 = arith.addf %59, %61 : vector<2x8x128xf32>
    %cst_47 = arith.constant dense<0xFF800000> : vector<2x8xf32>
    %63 = vector.multi_reduction <maximumf>, %62, %cst_47 [2] : vector<2x8x128xf32> to vector<2x8xf32>
    %64 = vector.shape_cast %63 : vector<2x8xf32> to vector<2x8x1xf32>
    %65 = vector.broadcast %64 : vector<2x8x1xf32> to vector<2x8x128xf32>
    %66 = arith.subf %62, %65 : vector<2x8x128xf32>
    %67 = math.exp %66 : vector<2x8x128xf32>
    %cst_48 = arith.constant dense<0.000000e+00> : vector<2x8xf32>
    %68 = vector.multi_reduction <add>, %67, %cst_48 [2] : vector<2x8x128xf32> to vector<2x8xf32>
    %69 = vector.shape_cast %68 : vector<2x8xf32> to vector<2x8x1xf32>
    %70 = tpu.reciprocal %69 {approx = true} : vector<2x8x1xf32> -> vector<2x8x1xf32>
    %cst_49 = arith.constant 2.82842708 : f32
    %71 = vector.broadcast %cst_49 : f32 to vector<2x8x1xf32>
    %72 = arith.mulf %70, %71 : vector<2x8x1xf32>
    %73 = vector.broadcast %72 : vector<2x8x1xf32> to vector<2x8x128xf32>
    %74 = arith.mulf %67, %73 : vector<2x8x128xf32>
    %75 = arith.truncf %74 : vector<2x8x128xf32> to vector<2x8x128xbf16>
    %c0_50 = arith.constant 0 : index
    %c0_51 = arith.constant 0 : index
    %c0_52 = arith.constant 0 : index
    %76 = vector.load %arg3[%c0_50, %c0_51, %c0_52] : memref<2x128x128xbf16, #tpu.memory_space<vmem>>, vector<2x128x128xbf16>
    "tpu.trace_start"() <{level = 10 : i32, message = "bts,bsh->bth"}> : () -> ()
    %cst_53 = arith.constant dense<0.000000e+00> : vector<2x8x128xf32>
    %77 = tpu.matmul %75, %76, %cst_53 {dimension_numbers = #tpu.dot_dimension_numbers<[2], [1], [1], [2], [0, 0, 0, 1, 1, 2], [0], [0]>} : vector<2x8x128xbf16>, vector<2x128x128xbf16>, vector<2x8x128xf32> -> vector<2x8x128xf32>
    "tpu.trace_stop"() : () -> ()
    %78 = vector.shape_cast %77 : vector<2x8x128xf32> to vector<16x128xf32>
    %79 = arith.addf %78, %44 : vector<16x128xf32>
    %cst_54 = arith.constant 5.000000e-01 : f32
    %80 = vector.broadcast %cst_54 : f32 to vector<16x128xf32>
    %81 = arith.mulf %79, %80 : vector<16x128xf32>
    %cst_55 = arith.constant 0.707106769 : f32
    %82 = vector.broadcast %cst_55 : f32 to vector<16x128xf32>
    %83 = arith.mulf %15, %82 : vector<16x128xf32>
    %84 = arith.addf %81, %83 : vector<16x128xf32>
    %85 = vector.shape_cast %84 : vector<16x128xf32> to vector<2x8x128xf32>
    %c0_56 = arith.constant 0 : index
    %c8_57 = arith.constant 8 : index
    %c0_58 = arith.constant 0 : index
    %86 = vector.load %arg16[%c0_56, %c8_57, %c0_58] : memref<2x16x128xf32, #tpu.memory_space<vmem>>, vector<2x8x128xf32>
    tpu.vector_store %arg16[%c0_56, %c8_57, %c0_58], %85 {strides = array<i32>} : memref<2x16x128xf32, #tpu.memory_space<vmem>>, vector<2x8x128xf32>,
    %c1_i32 = arith.constant 1 : i32
    %87 = arith.cmpi eq, %arg0, %c1_i32 : i32
    %88 = arith.extui %87 : i1 to i32
    %c0_i32_59 = arith.constant 0 : i32
    %89 = arith.cmpi ne, %88, %c0_i32_59 : i32
    scf.if %89 {
      %90 = arith.truncf %84 : vector<16x128xf32> to vector<16x128xbf16>
      %c0_60 = arith.constant 0 : index
      %c0_61 = arith.constant 0 : index
      %91 = vector.load %arg7[%c0_60, %c0_61] : memref<128x128xbf16, #tpu.memory_space<vmem>>, vector<128x128xbf16>
      %cst_62 = arith.constant dense<0.000000e+00> : vector<16x128xf32>
      %92 = tpu.matmul %90, %91, %cst_62 {dimension_numbers = #tpu.dot_dimension_numbers<[1], [0], [0], [1], [0, 0, 1, 1], [], []>} : vector<16x128xbf16>, vector<128x128xbf16>, vector<16x128xf32> -> vector<16x128xf32>
      %c0_63 = arith.constant 0 : index
      %c0_64 = arith.constant 0 : index
      %93 = vector.load %arg8[%c0_63, %c0_64] : memref<1x128xf32, #tpu.memory_space<vmem>>, vector<1x128xf32>
      %94 = vector.broadcast %93 : vector<1x128xf32> to vector<16x128xf32>
      %95 = arith.addf %92, %94 : vector<16x128xf32>
      %c0_65 = arith.constant 0 : index
      %c0_66 = arith.constant 0 : index
      %96 = vector.load %arg15[%c0_65, %c0_66] : memref<16x128xf32, #tpu.memory_space<vmem>>, vector<16x128xf32>
      tpu.vector_store %arg15[%c0_65, %c0_66], %95 {strides = array<i32>} : memref<16x128xf32, #tpu.memory_space<vmem>>, vector<16x128xf32>,
    } else {
    }
    return
  }
  func.func @transform_0(%arg0: i32) -> (i32, i32) {
    %c0_i32 = arith.constant 0 : i32
    %c0_i32_0 = arith.constant 0 : i32
    %c0_i32_1 = arith.constant 0 : i32
    return %c0_i32, %c0_i32_0 : i32, i32
  }
  func.func @transform_1(%arg0: i32) -> (i32, i32, i32) {
    %c0_i32 = arith.constant 0 : i32
    %c0_i32_0 = arith.constant 0 : i32
    %c0_i32_1 = arith.constant 0 : i32
    %c0_i32_2 = arith.constant 0 : i32
    return %c0_i32, %c0_i32_0, %c0_i32_1 : i32, i32, i32
  }
  func.func @transform_2(%arg0: i32) -> (i32, i32, i32) {
    %c0_i32 = arith.constant 0 : i32
    %c0_i32_0 = arith.constant 0 : i32
    %c0_i32_1 = arith.constant 0 : i32
    %c0_i32_2 = arith.constant 0 : i32
    return %c0_i32, %c0_i32_0, %c0_i32_1 : i32, i32, i32
  }
  func.func @transform_3(%arg0: i32) -> (i32, i32, i32) {
    %c0_i32 = arith.constant 0 : i32
    %c0_i32_0 = arith.constant 0 : i32
    %c0_i32_1 = arith.constant 0 : i32
    %c0_i32_2 = arith.constant 0 : i32
    return %c0_i32, %c0_i32_0, %c0_i32_1 : i32, i32, i32
  }
  func.func @transform_4(%arg0: i32) -> (i32, i32) {
    %c0_i32 = arith.constant 0 : i32
    %c0_i32_0 = arith.constant 0 : i32
    %c0_i32_1 = arith.constant 0 : i32
    return %c0_i32, %c0_i32_0 : i32, i32
  }
  func.func @transform_5(%arg0: i32) -> (i32, i32) {
    %c0_i32 = arith.constant 0 : i32
    %c0_i32_0 = arith.constant 0 : i32
    %c0_i32_1 = arith.constant 0 : i32
    return %c0_i32, %c0_i32_0 : i32, i32
  }
  func.func @transform_6(%arg0: i32) -> (i32, i32) {
    %c0_i32 = arith.constant 0 : i32
    %c0_i32_0 = arith.constant 0 : i32
    %c0_i32_1 = arith.constant 0 : i32
    return %c0_i32, %c0_i32_0 : i32, i32
  }
  func.func @transform_7(%arg0: i32) -> (i32, i32) {
    %c0_i32 = arith.constant 0 : i32
    %c0_i32_0 = arith.constant 0 : i32
    %c0_i32_1 = arith.constant 0 : i32
    return %c0_i32, %c0_i32_0 : i32, i32
  }
  func.func @transform_8(%arg0: i32) -> (i32, i32, i32) {
    %c0_i32 = arith.constant 0 : i32
    %c0_i32_0 = arith.constant 0 : i32
    %c0_i32_1 = arith.constant 0 : i32
    return %arg0, %c0_i32, %c0_i32_0 : i32, i32, i32
  }
  func.func @transform_9(%arg0: i32) -> (i32, i32, i32) {
    %c0_i32 = arith.constant 0 : i32
    %c0_i32_0 = arith.constant 0 : i32
    %c0_i32_1 = arith.constant 0 : i32
    return %arg0, %c0_i32, %c0_i32_0 : i32, i32, i32
  }
  func.func @transform_10(%arg0: i32) -> (i32, i32, i32, i32) {
    %c0_i32 = arith.constant 0 : i32
    %c0_i32_0 = arith.constant 0 : i32
    %c0_i32_1 = arith.constant 0 : i32
    %c0_i32_2 = arith.constant 0 : i32
    return %arg0, %c0_i32, %c0_i32_0, %c0_i32_1 : i32, i32, i32, i32
  }
  func.func @transform_11(%arg0: i32) -> (i32, i32, i32) {
    %c0_i32 = arith.constant 0 : i32
    %c0_i32_0 = arith.constant 0 : i32
    %c0_i32_1 = arith.constant 0 : i32
    return %arg0, %c0_i32, %c0_i32_0 : i32, i32, i32
  }
  func.func @transform_12(%arg0: i32) -> (i32, i32, i32) {
    %c0_i32 = arith.constant 0 : i32
    %c0_i32_0 = arith.constant 0 : i32
    %c0_i32_1 = arith.constant 0 : i32
    return %arg0, %c0_i32, %c0_i32_0 : i32, i32, i32
  }
  func.func @transform_13(%arg0: i32) -> (i32, i32, i32) {
    %c0_i32 = arith.constant 0 : i32
    %c0_i32_0 = arith.constant 0 : i32
    %c0_i32_1 = arith.constant 0 : i32
    return %arg0, %c0_i32, %c0_i32_0 : i32, i32, i32
  }
  func.func @transform_14(%arg0: i32) -> (i32, i32) {
    %c0_i32 = arith.constant 0 : i32
    %c0_i32_0 = arith.constant 0 : i32
    %c0_i32_1 = arith.constant 0 : i32
    return %c0_i32, %c0_i32_0 : i32, i32
  }
}

module attributes {stable_mosaic.version = 11 : i64} {
  func.func @kernel(%arg0: i32, %arg1: memref<16x128xf32, #tpu.memory_space<vmem>>, %arg2: memref<2x128x128xbf16, #tpu.memory_space<vmem>>, %arg3: memref<2x128x128xbf16, #tpu.memory_space<vmem>>, %arg4: memref<2x1x128xf32, #tpu.memory_space<vmem>>, %arg5: memref<128x128xbf16, #tpu.memory_space<vmem>>, %arg6: memref<1x128xf32, #tpu.memory_space<vmem>>, %arg7: memref<128x128xbf16, #tpu.memory_space<vmem>>, %arg8: memref<1x128xf32, #tpu.memory_space<vmem>>, %arg9: memref<1x128x128xbf16, #tpu.memory_space<vmem>>, %arg10: memref<1x1x128xf32, #tpu.memory_space<vmem>>, %arg11: memref<1x3x128x256xbf16, #tpu.memory_space<vmem>>, %arg12: memref<1x1x256xf32, #tpu.memory_space<vmem>>, %arg13: memref<1x128x128xbf16, #tpu.memory_space<vmem>>, %arg14: memref<1x1x128xf32, #tpu.memory_space<vmem>>, %arg15: memref<16x128xf32, #tpu.memory_space<vmem>>, %arg16: memref<2x16x128xf32, #tpu.memory_space<vmem>>) attributes {dimension_semantics = [#tpu.dimension_semantics<arbitrary>], iteration_bounds = array<i64: 2>, scalar_prefetch = 0 : i64, scratch_operands = 1 : i64, tpu.core_type = #tpu.core_type<tc>, window_params = [{pipeline_mode = #tpu.pipeline_mode<synchronous>, transform_indices = @transform_0, window_bounds = array<i64: 16, 128>}, {pipeline_mode = #tpu.pipeline_mode<synchronous>, transform_indices = @transform_1, window_bounds = array<i64: 2, 128, 128>}, {pipeline_mode = #tpu.pipeline_mode<synchronous>, transform_indices = @transform_2, window_bounds = array<i64: 2, 128, 128>}, {pipeline_mode = #tpu.pipeline_mode<synchronous>, transform_indices = @transform_3, window_bounds = array<i64: 2, 1, 128>}, {pipeline_mode = #tpu.pipeline_mode<synchronous>, transform_indices = @transform_4, window_bounds = array<i64: 128, 128>}, {pipeline_mode = #tpu.pipeline_mode<synchronous>, transform_indices = @transform_5, window_bounds = array<i64: 1, 128>}, {pipeline_mode = #tpu.pipeline_mode<synchronous>, transform_indices = @transform_6, window_bounds = array<i64: 128, 128>}, {pipeline_mode = #tpu.pipeline_mode<synchronous>, transform_indices = @transform_7, window_bounds = array<i64: 1, 128>}, {transform_indices = @transform_8, window_bounds = array<i64: 1, 128, 128>}, {transform_indices = @transform_9, window_bounds = array<i64: 1, 1, 128>}, {transform_indices = @transform_10, window_bounds = array<i64: 1, 3, 128, 256>}, {transform_indices = @transform_11, window_bounds = array<i64: 1, 1, 256>}, {transform_indices = @transform_12, window_bounds = array<i64: 1, 128, 128>}, {transform_indices = @transform_13, window_bounds = array<i64: 1, 1, 128>}, {pipeline_mode = #tpu.pipeline_mode<synchronous>, transform_indices = @transform_14, window_bounds = array<i64: 16, 128>}]} {
    %c0 = arith.constant 0 : index
    %c0_0 = arith.constant 0 : index
    %0 = vector.load %arg1[%c0, %c0_0] : memref<16x128xf32, #tpu.memory_space<vmem>>, vector<16x128xf32>
    %c0_i32 = arith.constant 0 : i32
    %1 = arith.cmpi eq, %arg0, %c0_i32 : i32
    %2 = arith.extui %1 : i1 to i32
    %c0_i32_1 = arith.constant 0 : i32
    %3 = arith.cmpi ne, %2, %c0_i32_1 : i32
    scf.if %3 {
      %cst_60 = arith.constant 0.000000e+00 : f32
      %90 = vector.broadcast %cst_60 : f32 to vector<2x8x128xf32>
      %c0_61 = arith.constant 0 : index
      %c0_62 = arith.constant 0 : index
      %c0_63 = arith.constant 0 : index
      %91 = vector.load %arg16[%c0_61, %c0_62, %c0_63] : memref<2x16x128xf32, #tpu.memory_space<vmem>>, vector<2x8x128xf32>
      tpu.vector_store %arg16[%c0_61, %c0_62, %c0_63], %90 {strides = array<i32>} : memref<2x16x128xf32, #tpu.memory_space<vmem>>, vector<2x8x128xf32>,
      %92 = arith.truncf %0 : vector<16x128xf32> to vector<16x128xbf16>
      %c0_64 = arith.constant 0 : index
      %c0_65 = arith.constant 0 : index
      %93 = vector.load %arg5[%c0_64, %c0_65] : memref<128x128xbf16, #tpu.memory_space<vmem>>, vector<128x128xbf16>
      %cst_66 = arith.constant dense<0.000000e+00> : vector<16x128xf32>
      %94 = tpu.matmul %92, %93, %cst_66 {dimension_numbers = #tpu.dot_dimension_numbers<[1], [0], [0], [1], [0, 0, 1, 1], [], []>} : vector<16x128xbf16>, vector<128x128xbf16>, vector<16x128xf32> -> vector<16x128xf32>
      %c0_67 = arith.constant 0 : index
      %c0_68 = arith.constant 0 : index
      %95 = vector.load %arg6[%c0_67, %c0_68] : memref<1x128xf32, #tpu.memory_space<vmem>>, vector<1x128xf32>
      %96 = vector.broadcast %95 : vector<1x128xf32> to vector<16x128xf32>
      %97 = arith.addf %94, %96 : vector<16x128xf32>
      %98 = vector.shape_cast %97 : vector<16x128xf32> to vector<2x8x128xf32>
      %c0_69 = arith.constant 0 : index
      %c8_70 = arith.constant 8 : index
      %c0_71 = arith.constant 0 : index
      %99 = vector.load %arg16[%c0_69, %c8_70, %c0_71] : memref<2x16x128xf32, #tpu.memory_space<vmem>>, vector<2x8x128xf32>
      tpu.vector_store %arg16[%c0_69, %c8_70, %c0_71], %98 {strides = array<i32>} : memref<2x16x128xf32, #tpu.memory_space<vmem>>, vector<2x8x128xf32>,
    } else {
    }
    %c0_2 = arith.constant 0 : index
    %c8 = arith.constant 8 : index
    %c0_3 = arith.constant 0 : index
    %4 = vector.load %arg16[%c0_2, %c8, %c0_3] : memref<2x16x128xf32, #tpu.memory_space<vmem>>, vector<2x8x128xf32>
    %5 = vector.shape_cast %4 : vector<2x8x128xf32> to vector<16x128xf32>
    %6 = arith.truncf %5 : vector<16x128xf32> to vector<16x128xbf16>
    %c0_4 = arith.constant 0 : index
    %c0_5 = arith.constant 0 : index
    %c0_6 = arith.constant 0 : index
    %7 = vector.load %arg9[%c0_4, %c0_5, %c0_6] : memref<1x128x128xbf16, #tpu.memory_space<vmem>>, vector<1x128x128xbf16>
    %8 = vector.shape_cast %7 : vector<1x128x128xbf16> to vector<128x128xbf16>
    %cst = arith.constant dense<0.000000e+00> : vector<16x128xf32>
    %9 = tpu.matmul %6, %8, %cst {dimension_numbers = #tpu.dot_dimension_numbers<[1], [0], [0], [1], [0, 0, 1, 1], [], []>} : vector<16x128xbf16>, vector<128x128xbf16>, vector<16x128xf32> -> vector<16x128xf32>
    %c0_7 = arith.constant 0 : index
    %c0_8 = arith.constant 0 : index
    %c0_9 = arith.constant 0 : index
    %10 = vector.load %arg10[%c0_7, %c0_8, %c0_9] : memref<1x1x128xf32, #tpu.memory_space<vmem>>, vector<1x1x128xf32>
    %11 = vector.shape_cast %10 : vector<1x1x128xf32> to vector<1x128xf32>
    %12 = vector.broadcast %11 : vector<1x128xf32> to vector<16x128xf32>
    %13 = arith.addf %9, %12 : vector<16x128xf32>
    %c0_i32_10 = arith.constant 0 : i32
    %14 = arith.cmpi eq, %arg0, %c0_i32_10 : i32
    %15 = arith.select %14, %5, %13 : vector<16x128xf32>
    %c0_11 = arith.constant 0 : index
    %c6 = arith.constant 6 : index
    %c0_12 = arith.constant 0 : index
    %16 = vector.load %arg16[%c0_11, %c6, %c0_12] : memref<2x16x128xf32, #tpu.memory_space<vmem>>, vector<2x8x128xf32>
    %17 = vector.shape_cast %16 : vector<2x8x128xf32> to vector<16x128xf32>
    %18 = arith.truncf %17 : vector<16x128xf32> to vector<16x128xbf16>
    %c0_13 = arith.constant 0 : index
    %c0_14 = arith.constant 0 : index
    %c0_15 = arith.constant 0 : index
    %c0_16 = arith.constant 0 : index
    %19 = vector.load %arg11[%c0_13, %c0_14, %c0_15, %c0_16] : memref<1x3x128x256xbf16, #tpu.memory_space<vmem>>, vector<1x1x128x256xbf16>
    %20 = vector.shape_cast %19 : vector<1x1x128x256xbf16> to vector<128x256xbf16>
    %cst_17 = arith.constant dense<0.000000e+00> : vector<16x256xf32>
    %21 = tpu.matmul %18, %20, %cst_17 {dimension_numbers = #tpu.dot_dimension_numbers<[1], [0], [0], [1], [0, 0, 1, 1], [], []>} : vector<16x128xbf16>, vector<128x256xbf16>, vector<16x256xf32> -> vector<16x256xf32>
    %c0_18 = arith.constant 0 : index
    %c7 = arith.constant 7 : index
    %c0_19 = arith.constant 0 : index
    %22 = vector.load %arg16[%c0_18, %c7, %c0_19] : memref<2x16x128xf32, #tpu.memory_space<vmem>>, vector<2x8x128xf32>
    %23 = vector.shape_cast %22 : vector<2x8x128xf32> to vector<16x128xf32>
    %24 = arith.truncf %23 : vector<16x128xf32> to vector<16x128xbf16>
    %c0_20 = arith.constant 0 : index
    %c1 = arith.constant 1 : index
    %c0_21 = arith.constant 0 : index
    %c0_22 = arith.constant 0 : index
    %25 = vector.load %arg11[%c0_20, %c1, %c0_21, %c0_22] : memref<1x3x128x256xbf16, #tpu.memory_space<vmem>>, vector<1x1x128x256xbf16>
    %26 = vector.shape_cast %25 : vector<1x1x128x256xbf16> to vector<128x256xbf16>
    %cst_23 = arith.constant dense<0.000000e+00> : vector<16x256xf32>
    %27 = tpu.matmul %24, %26, %cst_23 {dimension_numbers = #tpu.dot_dimension_numbers<[1], [0], [0], [1], [0, 0, 1, 1], [], []>} : vector<16x128xbf16>, vector<128x256xbf16>, vector<16x256xf32> -> vector<16x256xf32>
    %28 = arith.addf %21, %27 : vector<16x256xf32>
    %c0_24 = arith.constant 0 : index
    %c2 = arith.constant 2 : index
    %c0_25 = arith.constant 0 : index
    %c0_26 = arith.constant 0 : index
    %29 = vector.load %arg11[%c0_24, %c2, %c0_25, %c0_26] : memref<1x3x128x256xbf16, #tpu.memory_space<vmem>>, vector<1x1x128x256xbf16>
    %30 = vector.shape_cast %29 : vector<1x1x128x256xbf16> to vector<128x256xbf16>
    %cst_27 = arith.constant dense<0.000000e+00> : vector<16x256xf32>
    %31 = tpu.matmul %6, %30, %cst_27 {dimension_numbers = #tpu.dot_dimension_numbers<[1], [0], [0], [1], [0, 0, 1, 1], [], []>} : vector<16x128xbf16>, vector<128x256xbf16>, vector<16x256xf32> -> vector<16x256xf32>
    %32 = arith.addf %28, %31 : vector<16x256xf32>
    %c0_28 = arith.constant 0 : index
    %c0_29 = arith.constant 0 : index
    %c0_30 = arith.constant 0 : index
    %33 = vector.load %arg12[%c0_28, %c0_29, %c0_30] : memref<1x1x256xf32, #tpu.memory_space<vmem>>, vector<1x1x256xf32>
    %34 = vector.shape_cast %33 : vector<1x1x256xf32> to vector<1x256xf32>
    %35 = vector.broadcast %34 : vector<1x256xf32> to vector<16x256xf32>
    %36 = arith.addf %32, %35 : vector<16x256xf32>
    %37 = vector.extract_strided_slice %36 {offsets = [0, 0], sizes = [16, 128], strides = [1, 1]} : vector<16x256xf32> to vector<16x128xf32>
    %38 = vector.extract_strided_slice %36 {offsets = [0, 128], sizes = [16, 128], strides = [1, 1]} : vector<16x256xf32> to vector<16x128xf32>
    %39 = arith.negf %38 : vector<16x128xf32>
    %40 = math.exp %39 : vector<16x128xf32>
    %cst_31 = arith.constant 1.000000e+00 : f32
    %41 = vector.broadcast %cst_31 : f32 to vector<16x128xf32>
    %42 = arith.addf %41, %40 : vector<16x128xf32>
    %43 = arith.divf %41, %42 : vector<16x128xf32>
    %44 = arith.mulf %37, %43 : vector<16x128xf32>
    %45 = arith.truncf %44 : vector<16x128xf32> to vector<16x128xbf16>
    %c0_32 = arith.constant 0 : index
    %c0_33 = arith.constant 0 : index
    %c0_34 = arith.constant 0 : index
    %46 = vector.load %arg13[%c0_32, %c0_33, %c0_34] : memref<1x128x128xbf16, #tpu.memory_space<vmem>>, vector<1x128x128xbf16>
    %47 = vector.shape_cast %46 : vector<1x128x128xbf16> to vector<128x128xbf16>
    %cst_35 = arith.constant dense<0.000000e+00> : vector<16x128xf32>
    %48 = tpu.matmul %45, %47, %cst_35 {dimension_numbers = #tpu.dot_dimension_numbers<[1], [0], [0], [1], [0, 0, 1, 1], [], []>} : vector<16x128xbf16>, vector<128x128xbf16>, vector<16x128xf32> -> vector<16x128xf32>
    %c0_36 = arith.constant 0 : index
    %c0_37 = arith.constant 0 : index
    %c0_38 = arith.constant 0 : index
    %49 = vector.load %arg14[%c0_36, %c0_37, %c0_38] : memref<1x1x128xf32, #tpu.memory_space<vmem>>, vector<1x1x128xf32>
    %50 = vector.shape_cast %49 : vector<1x1x128xf32> to vector<1x128xf32>
    %51 = vector.broadcast %50 : vector<1x128xf32> to vector<16x128xf32>
    %52 = arith.addf %48, %51 : vector<16x128xf32>
    %53 = arith.addf %52, %0 : vector<16x128xf32>
    %cst_39 = arith.constant 0.707106769 : f32
    %54 = vector.broadcast %cst_39 : f32 to vector<16x128xf32>
    %55 = arith.mulf %53, %54 : vector<16x128xf32>
    %56 = vector.shape_cast %55 : vector<16x128xf32> to vector<2x8x128xf32>
    %57 = arith.truncf %56 : vector<2x8x128xf32> to vector<2x8x128xbf16>
    %c0_40 = arith.constant 0 : index
    %c0_41 = arith.constant 0 : index
    %c0_42 = arith.constant 0 : index
    %58 = vector.load %arg2[%c0_40, %c0_41, %c0_42] : memref<2x128x128xbf16, #tpu.memory_space<vmem>>, vector<2x128x128xbf16>
    "tpu.trace_start"() <{level = 10 : i32, message = "bth,bhs->bts"}> : () -> ()
    %cst_43 = arith.constant dense<0.000000e+00> : vector<2x8x128xf32>
    %59 = tpu.matmul %57, %58, %cst_43 {dimension_numbers = #tpu.dot_dimension_numbers<[2], [1], [1], [2], [0, 0, 0, 1, 1, 2], [0], [0]>} : vector<2x8x128xbf16>, vector<2x128x128xbf16>, vector<2x8x128xf32> -> vector<2x8x128xf32>
    "tpu.trace_stop"() : () -> ()
    %c0_44 = arith.constant 0 : index
    %c0_45 = arith.constant 0 : index
    %c0_46 = arith.constant 0 : index
    %60 = vector.load %arg4[%c0_44, %c0_45, %c0_46] : memref<2x1x128xf32, #tpu.memory_space<vmem>>, vector<2x1x128xf32>
    %61 = vector.broadcast %60 : vector<2x1x128xf32> to vector<2x8x128xf32>
    %62 = arith.addf %59, %61 : vector<2x8x128xf32>
    %cst_47 = arith.constant dense<0xFF800000> : vector<2x8xf32>
    %63 = vector.multi_reduction <maximumf>, %62, %cst_47 [2] : vector<2x8x128xf32> to vector<2x8xf32>
    %64 = vector.shape_cast %63 : vector<2x8xf32> to vector<2x8x1xf32>
    %65 = vector.broadcast %64 : vector<2x8x1xf32> to vector<2x8x128xf32>
    %66 = arith.subf %62, %65 : vector<2x8x128xf32>
    %67 = math.exp %66 : vector<2x8x128xf32>
    %cst_48 = arith.constant dense<0.000000e+00> : vector<2x8xf32>
    %68 = vector.multi_reduction <add>, %67, %cst_48 [2] : vector<2x8x128xf32> to vector<2x8xf32>
    %69 = vector.shape_cast %68 : vector<2x8xf32> to vector<2x8x1xf32>
    %70 = tpu.reciprocal %69 {approx = true} : vector<2x8x1xf32> -> vector<2x8x1xf32>
    %cst_49 = arith.constant 2.82842708 : f32
    %71 = vector.broadcast %cst_49 : f32 to vector<2x8x1xf32>
    %72 = arith.mulf %70, %71 : vector<2x8x1xf32>
    %73 = vector.broadcast %72 : vector<2x8x1xf32> to vector<2x8x128xf32>
    %74 = arith.mulf %67, %73 : vector<2x8x128xf32>
    %75 = arith.truncf %74 : vector<2x8x128xf32> to vector<2x8x128xbf16>
    %c0_50 = arith.constant 0 : index
    %c0_51 = arith.constant 0 : index
    %c0_52 = arith.constant 0 : index
    %76 = vector.load %arg3[%c0_50, %c0_51, %c0_52] : memref<2x128x128xbf16, #tpu.memory_space<vmem>>, vector<2x128x128xbf16>
    "tpu.trace_start"() <{level = 10 : i32, message = "bts,bsh->bth"}> : () -> ()
    %cst_53 = arith.constant dense<0.000000e+00> : vector<2x8x128xf32>
    %77 = tpu.matmul %75, %76, %cst_53 {dimension_numbers = #tpu.dot_dimension_numbers<[2], [1], [1], [2], [0, 0, 0, 1, 1, 2], [0], [0]>} : vector<2x8x128xbf16>, vector<2x128x128xbf16>, vector<2x8x128xf32> -> vector<2x8x128xf32>
    "tpu.trace_stop"() : () -> ()
    %78 = vector.shape_cast %77 : vector<2x8x128xf32> to vector<16x128xf32>
    %79 = arith.addf %78, %44 : vector<16x128xf32>
    %cst_54 = arith.constant 5.000000e-01 : f32
    %80 = vector.broadcast %cst_54 : f32 to vector<16x128xf32>
    %81 = arith.mulf %79, %80 : vector<16x128xf32>
    %cst_55 = arith.constant 0.707106769 : f32
    %82 = vector.broadcast %cst_55 : f32 to vector<16x128xf32>
    %83 = arith.mulf %15, %82 : vector<16x128xf32>
    %84 = arith.addf %81, %83 : vector<16x128xf32>
    %85 = vector.shape_cast %84 : vector<16x128xf32> to vector<2x8x128xf32>
    %c0_56 = arith.constant 0 : index
    %c8_57 = arith.constant 8 : index
    %c0_58 = arith.constant 0 : index
    %86 = vector.load %arg16[%c0_56, %c8_57, %c0_58] : memref<2x16x128xf32, #tpu.memory_space<vmem>>, vector<2x8x128xf32>
    tpu.vector_store %arg16[%c0_56, %c8_57, %c0_58], %85 {strides = array<i32>} : memref<2x16x128xf32, #tpu.memory_space<vmem>>, vector<2x8x128xf32>,
    %c1_i32 = arith.constant 1 : i32
    %87 = arith.cmpi eq, %arg0, %c1_i32 : i32
    %88 = arith.extui %87 : i1 to i32
    %c0_i32_59 = arith.constant 0 : i32
    %89 = arith.cmpi ne, %88, %c0_i32_59 : i32
    scf.if %89 {
      %90 = arith.truncf %84 : vector<16x128xf32> to vector<16x128xbf16>
      %c0_60 = arith.constant 0 : index
      %c0_61 = arith.constant 0 : index
      %91 = vector.load %arg7[%c0_60, %c0_61] : memref<128x128xbf16, #tpu.memory_space<vmem>>, vector<128x128xbf16>
      %cst_62 = arith.constant dense<0.000000e+00> : vector<16x128xf32>
      %92 = tpu.matmul %90, %91, %cst_62 {dimension_numbers = #tpu.dot_dimension_numbers<[1], [0], [0], [1], [0, 0, 1, 1], [], []>} : vector<16x128xbf16>, vector<128x128xbf16>, vector<16x128xf32> -> vector<16x128xf32>
      %c0_63 = arith.constant 0 : index
      %c0_64 = arith.constant 0 : index
      %93 = vector.load %arg8[%c0_63, %c0_64] : memref<1x128xf32, #tpu.memory_space<vmem>>, vector<1x128xf32>
      %94 = vector.broadcast %93 : vector<1x128xf32> to vector<16x128xf32>
      %95 = arith.addf %92, %94 : vector<16x128xf32>
      %c0_65 = arith.constant 0 : index
      %c0_66 = arith.constant 0 : index
      %96 = vector.load %arg15[%c0_65, %c0_66] : memref<16x128xf32, #tpu.memory_space<vmem>>, vector<16x128xf32>
      tpu.vector_store %arg15[%c0_65, %c0_66], %95 {strides = array<i32>} : memref<16x128xf32, #tpu.memory_space<vmem>>, vector<16x128xf32>,
    } else {
    }
    return
  }
  func.func @transform_0(%arg0: i32) -> (i32, i32) {
    %c0_i32 = arith.constant 0 : i32
    %c0_i32_0 = arith.constant 0 : i32
    %c0_i32_1 = arith.constant 0 : i32
    return %c0_i32, %c0_i32_0 : i32, i32
  }
  func.func @transform_1(%arg0: i32) -> (i32, i32, i32) {
    %c0_i32 = arith.constant 0 : i32
    %c0_i32_0 = arith.constant 0 : i32
    %c0_i32_1 = arith.constant 0 : i32
    %c0_i32_2 = arith.constant 0 : i32
    return %c0_i32, %c0_i32_0, %c0_i32_1 : i32, i32, i32
  }
  func.func @transform_2(%arg0: i32) -> (i32, i32, i32) {
    %c0_i32 = arith.constant 0 : i32
    %c0_i32_0 = arith.constant 0 : i32
    %c0_i32_1 = arith.constant 0 : i32
    %c0_i32_2 = arith.constant 0 : i32
    return %c0_i32, %c0_i32_0, %c0_i32_1 : i32, i32, i32
  }
  func.func @transform_3(%arg0: i32) -> (i32, i32, i32) {
    %c0_i32 = arith.constant 0 : i32
    %c0_i32_0 = arith.constant 0 : i32
    %c0_i32_1 = arith.constant 0 : i32
    %c0_i32_2 = arith.constant 0 : i32
    return %c0_i32, %c0_i32_0, %c0_i32_1 : i32, i32, i32
  }
  func.func @transform_4(%arg0: i32) -> (i32, i32) {
    %c0_i32 = arith.constant 0 : i32
    %c0_i32_0 = arith.constant 0 : i32
    %c0_i32_1 = arith.constant 0 : i32
    return %c0_i32, %c0_i32_0 : i32, i32
  }
  func.func @transform_5(%arg0: i32) -> (i32, i32) {
    %c0_i32 = arith.constant 0 : i32
    %c0_i32_0 = arith.constant 0 : i32
    %c0_i32_1 = arith.constant 0 : i32
    return %c0_i32, %c0_i32_0 : i32, i32
  }
  func.func @transform_6(%arg0: i32) -> (i32, i32) {
    %c0_i32 = arith.constant 0 : i32
    %c0_i32_0 = arith.constant 0 : i32
    %c0_i32_1 = arith.constant 0 : i32
    return %c0_i32, %c0_i32_0 : i32, i32
  }
  func.func @transform_7(%arg0: i32) -> (i32, i32) {
    %c0_i32 = arith.constant 0 : i32
    %c0_i32_0 = arith.constant 0 : i32
    %c0_i32_1 = arith.constant 0 : i32
    return %c0_i32, %c0_i32_0 : i32, i32
  }
  func.func @transform_8(%arg0: i32) -> (i32, i32, i32) {
    %c0_i32 = arith.constant 0 : i32
    %c0_i32_0 = arith.constant 0 : i32
    %c0_i32_1 = arith.constant 0 : i32
    return %arg0, %c0_i32, %c0_i32_0 : i32, i32, i32
  }
  func.func @transform_9(%arg0: i32) -> (i32, i32, i32) {
    %c0_i32 = arith.constant 0 : i32
    %c0_i32_0 = arith.constant 0 : i32
    %c0_i32_1 = arith.constant 0 : i32
    return %arg0, %c0_i32, %c0_i32_0 : i32, i32, i32
  }
  func.func @transform_10(%arg0: i32) -> (i32, i32, i32, i32) {
    %c0_i32 = arith.constant 0 : i32
    %c0_i32_0 = arith.constant 0 : i32
    %c0_i32_1 = arith.constant 0 : i32
    %c0_i32_2 = arith.constant 0 : i32
    return %arg0, %c0_i32, %c0_i32_0, %c0_i32_1 : i32, i32, i32, i32
  }
  func.func @transform_11(%arg0: i32) -> (i32, i32, i32) {
    %c0_i32 = arith.constant 0 : i32
    %c0_i32_0 = arith.constant 0 : i32
    %c0_i32_1 = arith.constant 0 : i32
    return %arg0, %c0_i32, %c0_i32_0 : i32, i32, i32
  }
  func.func @transform_12(%arg0: i32) -> (i32, i32, i32) {
    %c0_i32 = arith.constant 0 : i32
    %c0_i32_0 = arith.constant 0 : i32
    %c0_i32_1 = arith.constant 0 : i32
    return %arg0, %c0_i32, %c0_i32_0 : i32, i32, i32
  }
  func.func @transform_13(%arg0: i32) -> (i32, i32, i32) {
    %c0_i32 = arith.constant 0 : i32
    %c0_i32_0 = arith.constant 0 : i32
    %c0_i32_1 = arith.constant 0 : i32
    return %arg0, %c0_i32, %c0_i32_0 : i32, i32, i32
  }
  func.func @transform_14(%arg0: i32) -> (i32, i32) {
    %c0_i32 = arith.constant 0 : i32
    %c0_i32_0 = arith.constant 0 : i32
    %c0_i32_1 = arith.constant 0 : i32
    return %c0_i32, %c0_i32_0 : i32, i32
  }
}

</mosaic_0001>

<bundles_post_ra>
// kernel: tpu_custom_call.1
= control target key start
LH: loop header
LB: loop body
LE: loop exit
PB: predicated region body
PF: predicated region fallthrough
CT: control target
= control target key end

     0   :  { %s3763_s0 = inlined_call_operand.hbm [shape: f32[16,128], index: 0, kind: input, shape index: {}]   ;;  %s3764_s1 = inlined_call_operand.hbm [shape: bf16[2,128,128], index: 1, kind: input, shape index: {}]   ;;  %s3765_s2 = inlined_call_operand.hbm [shape: bf16[2,128,128], index: 2, kind: input, shape index: {}]   ;;  %s3766_s3 = inlined_call_operand.vmem [shape: f32[2,1,128], index: 3, kind: input, shape index: {}]   ;;  %s3767_s4 = inlined_call_operand.hbm [shape: bf16[128,128], index: 4, kind: input, shape index: {}]   ;;  %s3768_s5 = inlined_call_operand.hbm [shape: f32[1,128], index: 5, kind: input, shape index: {}]   ;;  %s3769_s6 = inlined_call_operand.hbm [shape: bf16[128,128], index: 6, kind: input, shape index: {}]   ;;  %s3770_s7 = inlined_call_operand.hbm [shape: f32[1,128], index: 7, kind: input, shape index: {}]   ;;  %s3771_s8 = inlined_call_operand.hbm [shape: bf16[2,128,128], index: 8, kind: input, shape index: {}]   ;;  %s3772_s9 = inlined_call_operand.vmem [shape: f32[2,1,128], index: 9, kind: input, shape index: {}]   ;;  %s3773_s10 = inlined_call_operand.hbm [shape: bf16[2,3,128,256], index: 10, kind: input, shape index: {}]   ;;  %s3774_s11 = inlined_call_operand.vmem [shape: f32[2,1,256], index: 11, kind: input, shape index: {}]   ;;  %s3775_s12 = inlined_call_operand.hbm [shape: bf16[2,128,128], index: 12, kind: input, shape index: {}]   ;;  %s3776_s13 = inlined_call_operand.vmem [shape: f32[2,1,128], index: 13, kind: input, shape index: {}]   ;;  %s3777_s14 = inlined_call_operand.hbm [shape: f32[16,128], index: 14, kind: output, shape index: {}]  }
   0x1   :  { %3790 = sst [smem:[#allocation31_spill]] %s3763_s0 }
   0x2   :  { %3791 = sst [smem:[#allocation32_spill]] %s3764_s1 }
   0x3   :  { %3792 = sst [smem:[#allocation33_spill]] %s3765_s2 }
   0x4   :  { %3793 = sst [smem:[#allocation34_spill]] %s3766_s3 }
   0x5   :  { %3794 = sst [smem:[#allocation35_spill]] %s3767_s4 }
   0x6   :  { %3795 = sst [smem:[#allocation36_spill]] %s3768_s5 }
   0x7   :  { %3796 = sst [smem:[#allocation37_spill]] %s3769_s6 }
   0x8   :  { %3797 = sst [smem:[#allocation38_spill]] %s3776_s13 }
   0x9   :  { %3798 = sst [smem:[#allocation39_spill]] %s3777_s14 }
   0xa   :  { %19 = vsyncpa [#allocation4], 0 }
   0xb   :  { %20 = vsyncpa [#allocation7], 0 }
   0xc   :  { %21 = vsyncpa [#allocation10], 0 }
   0xd   :  { %22 = vsyncpa [#allocation13], 0 }
   0xe   :  { %23 = vsyncpa [#allocation16], 0 }
   0xf   :  { %25 = vsyncpa [#allocation16 + $0x1], 0 }
  0x10   :  { %26 = vsyncpa [#allocation19], 0 }
  0x11   :  { %28 = vsyncpa [#allocation19 + $0x1], 0 }
  0x12   :  { %29 = vsyncpa [#allocation5], 0  ;;  %s3327_s29 = smov 0   ;;  %s3329_s30 = smov 0  }
  0x13   :  { %s3331_s15 = smov 0   ;;  %s3333_s16 = smov 0  }
  0x14 LB: > { %3799 = sst [smem:[#allocation28_spill]] %s3231_s15  ;;  %s3351_s20 = sadd.s32 4294967295, %s3235_s16   ;;  %s3235_s16 = sphi %s3333_s16, %s3823_s16   ;;  %s3231_s15 = sphi %s3331_s15, %s3825_s15   ;;  %s3227_s30 = sphi %s3329_s30, %s3827_s30   ;;  %s3223_s29 = sphi %s3327_s29, %s3826_s29  }
  0x15   : > { %s3800_s1 = sld [smem:[#allocation32_spill]]  ;;  %p2061_p0 = scmp.ge.s32.totalorder %s3235_s16, 1 }
  0x16   : > { %p224_p1 = scmp.eq.s32.totalorder %s3351_s20, 0  ;;  %p385_p2 = scmp.lt.s32.totalorder %s3235_s16, 3 }
  0x17   : > { %p2062_p3 = scmp.ne.s32.totalorder %s3351_s20, 0  ;;  %s3237_s22 = smov [#allocation6]  }
  0x18   : > { %p3357_p4 = pnand %p2061_p0, %p385_p2  ;;  %s412_s23 = sshll.u32 %s3237_s22, 4  ;;  %s413_s23 = int_to_ptr.vmem [resolvable:$true] %s412_s23 }
  0x19   : > { %s3802_s4 = sld [smem:[#allocation35_spill]]  ;;  %s3238_s22 = smov [#allocation9]  }
  0x1a   : > { %p2731_p5 = pneg %p3357_p4  ;;  %s3804_s6 = sld [smem:[#allocation37_spill]] }
  0x1b   : > { %s410_s19 = sshll.u32 %s3800_s1, 4  ;;  %s443_s24 = sshll.u32 %s3238_s22, 4  ;;  %s411_s19 = int_to_ptr.hbm [resolvable:$true] %s410_s19  ;;  %s444_s24 = int_to_ptr.vmem [resolvable:$true] %s443_s24 }
  0x1c   : > { %p3368_p6 = pnand %p2731_p5, %p224_p1  ;;  %s3778_s25 = smov 64  }
  0x1d   : > { %s3780_s1 = smov 4   ;;  %s3241_s28 = smov [#allocation12]  }
  0x1e   : > { %2737 = dma.hbm_to_vmem [thread:$0]  (!%p3368_p6), %s411_s19, 2048, %s413_s23, [#allocation7], %s3778_s25, %s3778_s25, %s3780_s1  }
  0x1f   : > { %s441_s26 = sshll.u32 %s3802_s4, 4  ;;  %s469_s17 = sshll.u32 %s3241_s28, 4  ;;  %s442_s26 = int_to_ptr.hbm [resolvable:$true] %s441_s26  ;;  %s470_s17 = int_to_ptr.vmem [resolvable:$true] %s469_s17 }
  0x20   : > { %s467_s18 = sshll.u32 %s3804_s6, 4  ;;  %s3391_s19 = sadd.s32 1, %s3235_s16   ;;  %s468_s18 = int_to_ptr.hbm [resolvable:$true] %s467_s18 }
  0x21   : > { %2743 = dma.hbm_to_vmem [thread:$0]  (!%p3368_p6), %s442_s26, 1024, %s444_s24, [#allocation10], %s3778_s25, %s3778_s25, %s3780_s1  }
  0x22   : > { %2749 = dma.hbm_to_vmem [thread:$0]  (!%p3368_p6), %s468_s18, 1024, %s470_s17, [#allocation13], %s3778_s25, %s3778_s25, %s3780_s1  }
  0x23   : > { %3805 = sst [smem:[#allocation29_spill]] %s3391_s19  ;;  %s207_s23 = ssub.s32 %s3235_s16, %s3391_s19 }
  0x24   : > { %s210_s22 = sadd.s32 1, %s3231_s15  ;;  %p208_p7 = scmp.eq.s32.totalorder %s207_s23, 0 }
  0x25   : > { %p217_p8 = scmp.ne.s32.totalorder %s3231_s15, %s3227_s30  ;;  %p218_p9 = scmp.eq.s32.totalorder %s3235_s16, 0 }
  0x26   : > { %p223_p10 = scmp.ne.s32.totalorder %s3227_s30, %s3223_s29  ;;  %p2770_p13 = scmp.lt.s32.totalorder %s3235_s16, 2 }
  0x27   : > { %s3402_s26 = scalar_select %p208_p7, %s3231_s15, %s210_s22  }
  0x28   : > { %p3404_p11 = por %p218_p9, %p217_p8  ;;  %p3410_p12 = por %p224_p1, %p223_p10 }
  0x29   : > { %3806 = sst [smem:[#allocation30_spill]] %s3402_s26  ;;  %s495_s28 = sand.u32 1, %s3235_s16  }
  0x2a   : > { %s3417_s17 = sand.u32 1, %s3231_s15   ;;  %s3787_s29 = sshll.u32 %s3235_s16, 6 }
  0x2b   : > { %s3786_s23 = sshll.u32 %s3417_s17, 6  ;;  %s504_s1 = scalar_lea.hbm %s3771_s8, %s3787_s29 }
  0x2c   : > { %s505_s4 = sshll.u32 %s504_s1, 4  ;;  %s499_s6 = scalar_lea.vmem [#allocation15], %s3786_s23  ;;  %s506_s4 = int_to_ptr.hbm [resolvable:$true] %s505_s4 }
  0x2d   : > { %s507_s26 = sshll.u32 %s499_s6, 4  ;;  %p3430_p0 = pnand %p2770_p13, %p3404_p11  ;;  %s508_s26 = int_to_ptr.vmem [resolvable:$true] %s507_s26 }
  0x2e   : > { %s3810_s0 = sld [smem:[#allocation31_spill]]  ;;  %s3242_s25 = smov [#allocation3]  }
  0x2f   : > { %s398_s22 = sshll.u32 %s3242_s25, 4  ;;  %s3437_s1 = scalar_lea.sflag [#allocation16], %s495_s28  ;;  %s399_s22 = int_to_ptr.vmem [resolvable:$true] %s398_s22 }
  0x30   : > { %s2939_s23 = sshra.s32 %s506_s4, 4  ;;  %p2943_p5 = pneg %p3430_p0  ;;  %s2940_s23 = int_to_ptr.hbm [resolvable:$true] %s2939_s23 }
  0x31   : > { %s2941_s6 = scalar_lea.hbm %s2940_s23, 64  ;;  %s2946_s15 = scalar_lea.hbm %s3771_s8, 128 }
  0x32   : > { %p2942_p2 = scmp.ne.s32.totalorder %s2940_s23, %s2941_s6  ;;  %p2947_p9 = scmp.lt.s32.totalorder %s2940_s23, %s3771_s8 }
  0x33   : > { %p2948_p10 = scmp.lt.s32.totalorder %s2946_s15, %s2941_s6 }
  0x34   : > { %s396_s3 = sshll.u32 %s3810_s0, 4  ;;  %p2944_p7 = pnand %p2943_p5, %p2942_p2  ;;  %s397_s3 = int_to_ptr.hbm [resolvable:$true] %s396_s3 }
  0x35   : > { %p2949_p11 = por %p2948_p10, %p2947_p9 }
  0x36   : > { %p2945_p8 = pneg %p2944_p7 }
  0x38   : > { %p2950_p13 = pnand %p2949_p11, %p2945_p8 }
  0x3a   : > { %2953 = shalt.err (!%p2950_p13)
}
  0x3b   : > { %s3811_s28 = smov 4   ;;  %s3812_s25 = smov 64  }
  0x3c   : > { %2756 = dma.hbm_to_vmem [thread:$0]  (!%p3430_p0), %s506_s4, 1024, %s508_s26, %s3437_s1, %s3812_s25, %s3812_s25, %s3811_s28  }
  0x3d   : > { %s3813_s2 = sld [smem:[#allocation33_spill]]  ;;  %s3788_s0 = smov 128  }
  0x3e   : > { %s3789_s23 = smov 8   ;;  %s3245_s29 = smov [#allocation8]  }
  0x3f   : > { %2734 = dma.hbm_to_vmem [thread:$0]  (!%p3368_p6), %s397_s3, 256, %s399_s22, [#allocation4], %s3788_s0, %s3788_s0, %s3789_s23  }
  0x40   : > { %s426_s6 = sshll.u32 %s3245_s29, 4  ;;  %s3814_s5 = sld [smem:[#allocation36_spill]]  ;;  %s427_s6 = int_to_ptr.vmem [resolvable:$true] %s426_s6 }
  0x41   : > { %s482_s3 = sshll.u32 %s3770_s7, 4  ;;  %s3246_s22 = smov [#allocation11]   ;;  %s483_s3 = int_to_ptr.hbm [resolvable:$true] %s482_s3 }
  0x42   : > { %s458_s0 = sshll.u32 %s3246_s22, 4  ;;  %s3247_s29 = smov [#allocation14]   ;;  %s459_s0 = int_to_ptr.vmem [resolvable:$true] %s458_s0 }
  0x43   : > { %s424_s13 = sshll.u32 %s3813_s2, 4  ;;  %s484_s15 = sshll.u32 %s3247_s29, 4  ;;  %s425_s13 = int_to_ptr.hbm [resolvable:$true] %s424_s13  ;;  %s485_s15 = int_to_ptr.vmem [resolvable:$true] %s484_s15 }
  0x44   : > { %2740 = dma.hbm_to_vmem [thread:$0]  (!%p3368_p6), %s425_s13, 2048, %s427_s6, [#allocation7], %s3812_s25, %s3812_s25, %s3811_s28  }
  0x45   : > { %s2690_s4 = smul.u32 384, %s3417_s17 }
  0x46   : > { %s456_s26 = sshll.u32 %s3814_s5, 4  ;;  %s2691_s23 = smul.u32 384, %s3235_s16  ;;  %s457_s26 = int_to_ptr.hbm [resolvable:$true] %s456_s26 }
  0x47   : > { %2746 = dma.hbm_to_vmem [thread:$0]  (!%p3368_p6), %s457_s26, 16, %s459_s0, [#allocation10]  }
  0x48   : > { %2752 = dma.hbm_to_vmem [thread:$0]  (!%p3368_p6), %s483_s3, 16, %s485_s15, [#allocation13]  }
  0x49   : > { %s532_s6 = scalar_lea.hbm %s3773_s10, %s2691_s23  ;;  %s527_s14 = scalar_lea.vmem [#allocation17], %s2690_s4 }
  0x4a   : > { %s533_s24 = sshll.u32 %s532_s6, 4  ;;  %s535_s5 = sshll.u32 %s527_s14, 4  ;;  %s534_s24 = int_to_ptr.hbm [resolvable:$true] %s533_s24  ;;  %s536_s5 = int_to_ptr.vmem [resolvable:$true] %s535_s5 }
  0x4b   : > { %s3089_s22 = sshra.s32 %s534_s24, 4  ;;  %s3096_s3 = scalar_lea.hbm %s3773_s10, 768  ;;  %s3090_s22 = int_to_ptr.hbm [resolvable:$true] %s3089_s22 }
  0x4c   : > { %s3091_s0 = scalar_lea.hbm %s3090_s22, 384  ;;  %p3097_p6 = scmp.lt.s32.totalorder %s3090_s22, %s3773_s10 }
  0x4d   : > { %p3092_p2 = scmp.ne.s32.totalorder %s3090_s22, %s3091_s0  ;;  %p3098_p9 = scmp.lt.s32.totalorder %s3096_s3, %s3091_s0 }
  0x4f   : > { %p3094_p7 = pnand %p3092_p2, %p2943_p5  ;;  %p3099_p10 = por %p3098_p9, %p3097_p6 }
  0x51   : > { %p3095_p8 = pneg %p3094_p7 }
  0x53   : > { %p3100_p11 = pnand %p3099_p10, %p3095_p8 }
  0x55   : > { %3103 = shalt.err (!%p3100_p11)
}
  0x56   : > { %s3815_s23 = smov 8   ;;  %s3816_s15 = smov 128  }
  0x57   : > { %2759 = dma.hbm_to_vmem [thread:$0]  (!%p3430_p0), %s534_s24, 6144, %s536_s5, %s3437_s1, %s3816_s15, %s3816_s15, %s3815_s23  }
  0x58   : > { %s3817_s4 = sshll.u32 %s3235_s16, 6  ;;  %s3818_s22 = sshll.u32 %s3417_s17, 6 }
  0x59   : > { %s561_s14 = scalar_lea.hbm %s3775_s12, %s3817_s4  ;;  %s556_s0 = scalar_lea.vmem [#allocation18], %s3818_s22 }
  0x5a   : > { %s564_s26 = sshll.u32 %s556_s0, 4  ;;  %s562_s27 = sshll.u32 %s561_s14, 4  ;;  %s565_s26 = int_to_ptr.vmem [resolvable:$true] %s564_s26  ;;  %s563_s27 = int_to_ptr.hbm [resolvable:$true] %s562_s27 }
  0x5b   : > { %s553_s3 = scalar_lea.sflag [#allocation19], %s3417_s17  ;;  %s3119_s29 = sshra.s32 %s563_s27, 4  ;;  %s3120_s29 = int_to_ptr.hbm [resolvable:$true] %s3119_s29 }
  0x5c   : > { %s3121_s2 = scalar_lea.hbm %s3120_s29, 64  ;;  %s3126_s1 = scalar_lea.hbm %s3775_s12, 128 }
  0x5d   : > { %p3122_p13 = scmp.ne.s32.totalorder %s3120_s29, %s3121_s2  ;;  %p3127_p8 = scmp.lt.s32.totalorder %s3120_s29, %s3775_s12 }
  0x5e   : > { %p3128_p6 = scmp.lt.s32.totalorder %s3126_s1, %s3121_s2 }
  0x5f   : > { %p3124_p2 = pnand %p3122_p13, %p2943_p5 }
  0x60   : > { %p3129_p9 = por %p3128_p6, %p3127_p8 }
  0x61   : > { %p3125_p7 = pneg %p3124_p2 }
  0x63   : > { %p3130_p10 = pnand %p3129_p9, %p3125_p7 }
  0x65   : > { %3133 = shalt.err (!%p3130_p10)
}
  0x66   : > { %2762 = dma.hbm_to_vmem [thread:$0]  (!%p3430_p0), %s563_s27, 1024, %s565_s26, %s553_s3, %s3812_s25, %s3812_s25, %s3811_s28  }
  0x67   : > { %582 = sbr.rel (%p3357_p4) target bundleno = 1395 (0x573), region = 76 }
  0x6c   : > { %3194 = dma.done.wait (%p224_p1), [#allocation4], 256  }
  0x6d   : > { %3196 = vsyncadd (%p224_p1), [#allocation4], 4294967040 }
  0x6e   : > { %3198 = dma.done.wait (%p224_p1), [#allocation7], 4096  }
  0x6f   : > { %3200 = vsyncadd (%p224_p1), [#allocation7], 4294963200 }
  0x70   : > { %3202 = dma.done.wait (%p224_p1), [#allocation10], 1040  }
  0x71   : > { %3204 = vsyncadd (%p224_p1), [#allocation10], 4294966256 }
  0x72   : > { %3206 = dma.done.wait (%p224_p1), [#allocation13], 1040  }
  0x73   : > { %3208 = vsyncadd (%p224_p1), [#allocation13], 4294966256  ;;  %s619_s21 = sand.u32 1, %s3351_s20   ;;  %s621_s19 = sand.u32 1, %s3227_s30  }
  0x74   : > { %s2085_s17 = sshll.u32 %s621_s19, 6  ;;  %s620_s28 = scalar_lea.sflag [#allocation16], %s619_s21 }
  0x75   : > { %s3541_s25 = scalar_lea.vmem [#allocation15], %s2085_s17 }
  0x76   : > { %3210 = dma.done.wait (%p3410_p12), %s620_s28, 7168  }
  0x77   : > { %3212 = vsyncadd (%p3410_p12), %s620_s28, 4294960128  ;;  %s2692_s15 = smul.u32 384, %s621_s19  ;;  %s640_s13 = scalar_lea.sflag [#allocation19], %s621_s19 }
  0x78   : > { %s3549_s6 = scalar_lea.vmem [#allocation18], %s2085_s17 }
  0x79   : > { %s3547_s4 = scalar_lea.vmem [#allocation17], %s2692_s15 }
  0x7a   : > { %3214 = dma.done.wait (%p3410_p12), %s640_s13, 1024  }
  0x7b   : > { %3216 = vsyncadd (%p3410_p12), %s640_s13, 4294966272  ;;  %p704_p4 = scmp.lt.s32.totalorder %s3351_s20, 1  ;;  %s3819_s16 = sld [smem:[#allocation38_spill]]  ;;  %v3573_v0 = vld [vmem:[#allocation3] sm:$0xff]  ;;  %v3575_v1 = vld [vmem:[#allocation3 + $0x8] sm:$0xff] }
  0x7d   : > { %s3557_s14 = scalar_select %p704_p4, %s3351_s20, 1 }
  0x7e   : > { %719 = sbr.rel (%p2062_p3) target bundleno = 300 (0x12c), region = 120 }
  0x7f   : > { %s706_s26 = scalar_lea.vmem %s3772_s9, %s3557_s14  ;;  %s2087_s27 = sshll.u32 %s3557_s14, 1 }
  0x80   : > { %s3567_s2 = scalar_lea.vmem %s3774_s11, %s2087_s27 }
  0x81   : > { %s713_s1 = scalar_lea.vmem %s3819_s16, %s3557_s14 }
  0x83   : > { %v2585_v2 = vld [vmem:[#allocation9 + $0x38] sm:$0xff]  ;;  %v3248_v3 = vmov 0.0   ;;  %v2584_v4 = vld [vmem:[#allocation9 + $0x30] sm:$0xff]  ;;  %v2583_v5 = vld [vmem:[#allocation9 + $0x28] sm:$0xff]  ;;  %v722_v11 = vpack.c.bf16 %v3575_v1, %v3573_v0 }
  0x84   : > { %720 = vst [vmem:[#allocation2] sm:$0xff] %v3248_v3  ;;  %791 = vmatpush.bf16.msra.mxu0 %v2585_v2  ;;  %v2582_v6 = vld [vmem:[#allocation9 + $0x20] sm:$0xff]  ;;  %v2581_v7 = vld [vmem:[#allocation9 + $0x18] sm:$0xff]  ;;  %v2580_v8 = vld [vmem:[#allocation9 + $0x10] sm:$0xff] }
  0x85   : > { %721 = vst [vmem:[#allocation2 + $0x10] sm:$0xff] %v3248_v3  ;;  %v2579_v9 = vld [vmem:[#allocation9 + $0x8] sm:$0xff]  ;;  %v2578_v10 = vld [vmem:[#allocation9] sm:$0xff] }
  0x86   : > { %v2827_v12 = vld [vmem:[#allocation11] ss:$0 sm:$0xff] }
  0x88   : > { %792 = vmatpush.bf16.msra.mxu0 %v2584_v4 }
  0x8c   : > { %793 = vmatpush.bf16.msra.mxu0 %v2583_v5 }
  0x90   : > { %794 = vmatpush.bf16.msra.mxu0 %v2582_v6 }
  0x94   : > { %795 = vmatpush.bf16.msra.mxu0 %v2581_v7 }
  0x98   : > { %796 = vmatpush.bf16.msra.mxu0 %v2580_v8 }
  0x9c   : > { %797 = vmatpush.bf16.msra.mxu0 %v2579_v9 }
  0xa0   : > { %798 = vmatpush.bf16.msra.mxu0 %v2578_v10 }
  0xa3   : > { %799 = vmatmul.bf16.vlgmr.msra.gmra.mxu0 %v722_v11 }
 0x120   : > { %v800_v13 = vpop.f32.mrf.mxu0 }
 0x121   : > { %v801_v14 = vadd.f32 %v2827_v12, %v800_v13 }
 0x123   : > { %805 = vst [vmem:[#allocation2 + $0x8] sm:$0xff] %v801_v14 }
 0x128   : > { %v802_v15 = vpop.f32.mrf.mxu0 }
 0x129   : > { %v803_v16 = vadd.f32 %v2827_v12, %v802_v15 }
 0x12b   : > { %806 = vst [vmem:[#allocation2 + $0x18] sm:$0xff] %v803_v16 }
 0x12c PF: > { %v2593_v17 = vld [vmem:[%s3541_s25 + $0x38] sm:$0xff]  ;;  %v2624_v18 = vld [vmem:[%s3547_s4 + $0xf4] sm:$0xf]  ;;  %v2622_v21 = vld [vmem:[%s3547_s4 + $0xe4] sm:$0xf]  ;;  %s3821_s28 = sld [smem:[#allocation34_spill]] }
 0x12d   : > { %v2229_v19 = vld [vmem:[%s3547_s4 + $0xf8] sm:$0xf0]  ;;  %v2221_v22 = vld [vmem:[%s3547_s4 + $0xe8] sm:$0xf0]  ;;  %878 = vmatpush.bf16.msra.mxu0 %v2593_v17  ;;  %v2592_v23 = vld [vmem:[%s3541_s25 + $0x30] sm:$0xff] }
 0x12e   : > { %v2232_v20 = vor.u32 %v2624_v18, %v2229_v19  ;;  %v2224_v24 = vor.u32 %v2622_v21, %v2221_v22  ;;  %v2227_v25 = vld [vmem:[%s3547_s4 + $0xf0] sm:$0xf]  ;;  %v2625_v26 = vld [vmem:[%s3547_s4 + $0xf4] sm:$0xf0]  ;;  %v2620_v27 = vld [vmem:[%s3547_s4 + $0xd4] sm:$0xf] }
 0x12f   : > { %v2213_v28 = vld [vmem:[%s3547_s4 + $0xd8] sm:$0xf0]  ;;  %v2228_v29 = vor.u32 %v2625_v26, %v2227_v25  ;;  %v2219_v30 = vld [vmem:[%s3547_s4 + $0xe0] sm:$0xf]  ;;  %v2623_v31 = vld [vmem:[%s3547_s4 + $0xe4] sm:$0xf0] }
 0x130   : > { %1030 = vmatpush.bf16.msra.mxu2 %v2232_v20  ;;  %v2591_v32 = vld [vmem:[%s3541_s25 + $0x28] sm:$0xff]  ;;  %v2220_v33 = vor.u32 %v2623_v31, %v2219_v30  ;;  %v2216_v34 = vor.u32 %v2620_v27, %v2213_v28  ;;  %v2211_v35 = vld [vmem:[%s3547_s4 + $0xd0] sm:$0xf]  ;;  %v2621_v36 = vld [vmem:[%s3547_s4 + $0xd4] sm:$0xf0] }
 0x131   : > { %879 = vmatpush.bf16.msra.mxu0 %v2592_v23  ;;  %1016 = vmatpush.bf16.msra.mxu1 %v2228_v29  ;;  %v2618_v37 = vld [vmem:[%s3547_s4 + $0xc4] sm:$0xf]  ;;  %v2205_v38 = vld [vmem:[%s3547_s4 + $0xc8] sm:$0xf0]  ;;  %v2212_v40 = vor.u32 %v2621_v36, %v2211_v35  ;;  %v2203_v42 = vld [vmem:[%s3547_s4 + $0xc0] sm:$0xf] }
 0x132   : > { %v2590_v39 = vld [vmem:[%s3541_s25 + $0x20] sm:$0xff]  ;;  %v2208_v41 = vor.u32 %v2618_v37, %v2205_v38  ;;  %v2619_v43 = vld [vmem:[%s3547_s4 + $0xc4] sm:$0xf0]  ;;  %v2616_v44 = vld [vmem:[%s3547_s4 + $0xb4] sm:$0xf] }
 0x133   : > { %v2197_v45 = vld [vmem:[%s3547_s4 + $0xb8] sm:$0xf0]  ;;  %v2291_v46 = vld [vmem:[%s3547_s4 + $0x70] sm:$0xf]  ;;  %v2609_v47 = vld [vmem:[%s3547_s4 + $0x74] sm:$0xf0]  ;;  %v2204_v49 = vor.u32 %v2619_v43, %v2203_v42 }
 0x134   : > { %1031 = vmatpush.bf16.msra.mxu2 %v2224_v24  ;;  %v2589_v48 = vld [vmem:[%s3541_s25 + $0x18] sm:$0xff]  ;;  %v2292_v50 = vor.u32 %v2609_v47, %v2291_v46  ;;  %v2200_v51 = vor.u32 %v2616_v44, %v2197_v45  ;;  %v2195_v52 = vld [vmem:[%s3547_s4 + $0xb0] sm:$0xf]  ;;  %v2614_v54 = vld [vmem:[%s3547_s4 + $0xa4] sm:$0xf] }
 0x135   : > { %880 = vmatpush.bf16.msra.mxu0 %v2591_v32  ;;  %1017 = vmatpush.bf16.msra.mxu1 %v2220_v33  ;;  %v2617_v53 = vld [vmem:[%s3547_s4 + $0xb4] sm:$0xf0]  ;;  %v2189_v55 = vld [vmem:[%s3547_s4 + $0xa8] sm:$0xf0]  ;;  %v2283_v56 = vld [vmem:[%s3547_s4 + $0x60] sm:$0xf] }
 0x136   : > { %1124 = vmatpush.bf16.msra.mxu3 %v2292_v50  ;;  %v2607_v57 = vld [vmem:[%s3547_s4 + $0x64] sm:$0xf0]  ;;  %v2588_v58 = vld [vmem:[%s3541_s25 + $0x10] sm:$0xff]  ;;  %v2196_v59 = vor.u32 %v2617_v53, %v2195_v52  ;;  %v2192_v61 = vor.u32 %v2614_v54, %v2189_v55  ;;  %v2187_v63 = vld [vmem:[%s3547_s4 + $0xa0] sm:$0xf] }
 0x137   : > { %v2284_v60 = vor.u32 %v2607_v57, %v2283_v56  ;;  %v2612_v62 = vld [vmem:[%s3547_s4 + $0x94] sm:$0xf]  ;;  %v2615_v2 = vld [vmem:[%s3547_s4 + $0xa4] sm:$0xf0]  ;;  %v2181_v3 = vld [vmem:[%s3547_s4 + $0x98] sm:$0xf0] }
 0x138   : > { %1032 = vmatpush.bf16.msra.mxu2 %v2216_v34  ;;  %v2275_v4 = vld [vmem:[%s3547_s4 + $0x50] sm:$0xf]  ;;  %v2605_v5 = vld [vmem:[%s3547_s4 + $0x54] sm:$0xf0]  ;;  %v2587_v6 = vld [vmem:[%s3541_s25 + $0x8] sm:$0xff]  ;;  %v2188_v10 = vor.u32 %v2615_v2, %v2187_v63  ;;  %v2184_v12 = vor.u32 %v2612_v62, %v2181_v3 }
 0x139   : > { %881 = vmatpush.bf16.msra.mxu0 %v2590_v39  ;;  %1018 = vmatpush.bf16.msra.mxu1 %v2212_v40  ;;  %v2276_v7 = vor.u32 %v2605_v5, %v2275_v4  ;;  %v2610_v8 = vld [vmem:[%s3547_s4 + $0x84] sm:$0xf]  ;;  %v2173_v9 = vld [vmem:[%s3547_s4 + $0x88] sm:$0xf0]  ;;  %v2267_v11 = vld [vmem:[%s3547_s4 + $0x40] sm:$0xf] }
 0x13a   : > { %1125 = vmatpush.bf16.msra.mxu3 %v2284_v60  ;;  %v2179_v13 = vld [vmem:[%s3547_s4 + $0x90] sm:$0xf]  ;;  %v2613_v14 = vld [vmem:[%s3547_s4 + $0x94] sm:$0xf0]  ;;  %v2603_v15 = vld [vmem:[%s3547_s4 + $0x44] sm:$0xf0]  ;;  %v2176_v30 = vor.u32 %v2610_v8, %v2173_v9 }
 0x13b   : > { %v2586_v16 = vld [vmem:[%s3541_s25] sm:$0xff]  ;;  %v2608_v17 = vld [vmem:[%s3547_s4 + $0x74] sm:$0xf]  ;;  %v2293_v18 = vld [vmem:[%s3547_s4 + $0x78] sm:$0xf0]  ;;  %v2268_v20 = vor.u32 %v2603_v15, %v2267_v11  ;;  %v2180_v26 = vor.u32 %v2613_v14, %v2179_v13 }
 0x13c   : > { %1033 = vmatpush.bf16.msra.mxu2 %v2208_v41  ;;  %v2640_v19 = vld [vmem:[%s3547_s4 + $0x174] sm:$0xf]  ;;  %v2373_v21 = vld [vmem:[%s3547_s4 + $0x178] sm:$0xf0]  ;;  %v2259_v22 = vld [vmem:[%s3547_s4 + $0x30] sm:$0xf]  ;;  %v2296_v31 = vor.u32 %v2608_v17, %v2293_v18 }
 0x13d   : > { %882 = vmatpush.bf16.msra.mxu0 %v2589_v48  ;;  %1019 = vmatpush.bf16.msra.mxu1 %v2204_v49  ;;  %v2601_v23 = vld [vmem:[%s3547_s4 + $0x34] sm:$0xf0]  ;;  %v2606_v24 = vld [vmem:[%s3547_s4 + $0x64] sm:$0xf]  ;;  %v2285_v25 = vld [vmem:[%s3547_s4 + $0x68] sm:$0xf0]  ;;  %v2376_v35 = vor.u32 %v2640_v19, %v2373_v21 }
 0x13e   : > { %1126 = vmatpush.bf16.msra.mxu3 %v2276_v7  ;;  %v916_v27 = vld [vmem:[#allocation2 + $0x7] sm:$0xff]  ;;  %v3637_v29 = vld [vmem:[#allocation2 + $0x18] sm:$0xff]  ;;  %v2171_v33 = vld [vmem:[%s3547_s4 + $0x80] sm:$0xf]  ;;  %v2260_v39 = vor.u32 %v2601_v23, %v2259_v22  ;;  %v2288_v46 = vor.u32 %v2606_v24, %v2285_v25 }
 0x13f   : > { %v3635_v28 = vld [vmem:[#allocation2 + $0x8] sm:$0xff]  ;;  %v917_v32 = vld [vmem:[#allocation2 + $0x17] sm:$0xff]  ;;  %v2371_v37 = vld [vmem:[%s3547_s4 + $0x170] sm:$0xf] }
 0x140   : > { %1034 = vmatpush.bf16.msra.mxu2 %v2200_v51  ;;  %v2611_v34 = vld [vmem:[%s3547_s4 + $0x84] sm:$0xf0]  ;;  %v2638_v36 = vld [vmem:[%s3547_s4 + $0x164] sm:$0xf]  ;;  %v2641_v38 = vld [vmem:[%s3547_s4 + $0x174] sm:$0xf0]  ;;  %v3647_v41 = vpack.c.bf16 %v3637_v29, %v3635_v28  ;;  %v918_v44 = vpack.c.bf16 %v917_v32, %v916_v27 }
 0x141   : > { %883 = vmatpush.bf16.msra.mxu0 %v2588_v58  ;;  %1020 = vmatpush.bf16.msra.mxu1 %v2196_v59  ;;  %v2365_v40 = vld [vmem:[%s3547_s4 + $0x168] sm:$0xf0]  ;;  %v2251_v42 = vld [vmem:[%s3547_s4 + $0x20] sm:$0xf]  ;;  %v2599_v43 = vld [vmem:[%s3547_s4 + $0x24] sm:$0xf0]  ;;  %v2172_v45 = vor.u32 %v2611_v34, %v2171_v33  ;;  %v2372_v49 = vor.u32 %v2641_v38, %v2371_v37 }
 0x142   : > { %1127 = vmatpush.bf16.msra.mxu3 %v2268_v20  ;;  %v2604_v47 = vld [vmem:[%s3547_s4 + $0x54] sm:$0xf]  ;;  %v2277_v48 = vld [vmem:[%s3547_s4 + $0x58] sm:$0xf0]  ;;  %v2368_v50 = vor.u32 %v2638_v36, %v2365_v40  ;;  %v2363_v52 = vld [vmem:[%s3547_s4 + $0x160] sm:$0xf]  ;;  %v2252_v54 = vor.u32 %v2599_v43, %v2251_v42 }
 0x143   : > { %v2636_v51 = vld [vmem:[%s3547_s4 + $0x154] sm:$0xf]  ;;  %v2639_v53 = vld [vmem:[%s3547_s4 + $0x164] sm:$0xf0]  ;;  %v2357_v55 = vld [vmem:[%s3547_s4 + $0x158] sm:$0xf0]  ;;  %v2280_v60 = vor.u32 %v2604_v47, %v2277_v48 }
 0x144   : > { %1035 = vmatpush.bf16.msra.mxu2 %v2192_v61  ;;  %v2243_v56 = vld [vmem:[%s3547_s4 + $0x10] sm:$0xf]  ;;  %v2597_v57 = vld [vmem:[%s3547_s4 + $0x14] sm:$0xf0]  ;;  %v2602_v58 = vld [vmem:[%s3547_s4 + $0x44] sm:$0xf]  ;;  %v2364_v63 = vor.u32 %v2639_v53, %v2363_v52  ;;  %v2360_v3 = vor.u32 %v2636_v51, %v2357_v55 }
 0x145   : > { %884 = vmatpush.bf16.msra.mxu0 %v2587_v6  ;;  %1021 = vmatpush.bf16.msra.mxu1 %v2188_v10  ;;  %v2269_v59 = vld [vmem:[%s3547_s4 + $0x48] sm:$0xf0]  ;;  %v2634_v61 = vld [vmem:[%s3547_s4 + $0x144] sm:$0xf]  ;;  %v2355_v2 = vld [vmem:[%s3547_s4 + $0x150] sm:$0xf]  ;;  %v2244_v5 = vor.u32 %v2597_v57, %v2243_v56 }
 0x146   : > { %1128 = vmatpush.bf16.msra.mxu3 %v2260_v39  ;;  %v2349_v62 = vld [vmem:[%s3547_s4 + $0x148] sm:$0xf0]  ;;  %v2637_v4 = vld [vmem:[%s3547_s4 + $0x154] sm:$0xf0]  ;;  %v2235_v6 = vld [vmem:[%s3547_s4] sm:$0xf]  ;;  %v2272_v8 = vor.u32 %v2602_v58, %v2269_v59 }
 0x147   : > { %v2595_v7 = vld [vmem:[%s3547_s4 + $0x4] sm:$0xf0]  ;;  %v2600_v9 = vld [vmem:[%s3547_s4 + $0x34] sm:$0xf]  ;;  %v2356_v10 = vor.u32 %v2637_v4, %v2355_v2  ;;  %v2352_v11 = vor.u32 %v2634_v61, %v2349_v62  ;;  %v2347_v13 = vld [vmem:[%s3547_s4 + $0x140] sm:$0xf] }
 0x148   : > { %1036 = vmatpush.bf16.msra.mxu2 %v2184_v12  ;;  %v2261_v12 = vld [vmem:[%s3547_s4 + $0x38] sm:$0xf0]  ;;  %v2635_v14 = vld [vmem:[%s3547_s4 + $0x144] sm:$0xf0]  ;;  %v2236_v15 = vor.u32 %v2595_v7, %v2235_v6  ;;  %v2598_v19 = vld [vmem:[%s3547_s4 + $0x24] sm:$0xf] }
 0x149   : > { %885 = vmatpush.bf16.msra.mxu0 %v2586_v16  ;;  %1022 = vmatpush.bf16.msra.mxu1 %v2180_v26  ;;  %v2632_v16 = vld [vmem:[%s3547_s4 + $0x134] sm:$0xf]  ;;  %v2341_v17 = vld [vmem:[%s3547_s4 + $0x138] sm:$0xf0]  ;;  %v2264_v18 = vor.u32 %v2600_v9, %v2261_v12  ;;  %v2348_v20 = vor.u32 %v2635_v14, %v2347_v13  ;;  %v898_v22 = vld [vmem:[#allocation2 + $0x16] sm:$0xff] }
 0x14a   : > { %1129 = vmatpush.bf16.msra.mxu3 %v2252_v54  ;;  %v897_v21 = vld [vmem:[#allocation2 + $0x6] sm:$0xff]  ;;  %v2344_v23 = vor.u32 %v2632_v16, %v2341_v17  ;;  %v2253_v24 = vld [vmem:[%s3547_s4 + $0x28] sm:$0xf0]  ;;  %v2630_v27 = vld [vmem:[%s3547_s4 + $0x124] sm:$0xf] }
 0x14b   : > { %v2339_v25 = vld [vmem:[%s3547_s4 + $0x130] sm:$0xf]  ;;  %v2633_v26 = vld [vmem:[%s3547_s4 + $0x134] sm:$0xf0]  ;;  %v2256_v32 = vor.u32 %v2598_v19, %v2253_v24  ;;  %v2596_v33 = vld [vmem:[%s3547_s4 + $0x14] sm:$0xf] }
 0x14c   : > { %1037 = vmatpush.bf16.msra.mxu2 %v2176_v30  ;;  %886 = vmatmul.bf16.vlgmr.msra.gmra.mxu0 %v3647_v41  ;;  %v2333_v30 = vld [vmem:[%s3547_s4 + $0x128] sm:$0xf0]  ;;  %v2340_v34 = vor.u32 %v2633_v26, %v2339_v25  ;;  %v2245_v36 = vld [vmem:[%s3547_s4 + $0x18] sm:$0xf0]  ;;  %v2331_v37 = vld [vmem:[%s3547_s4 + $0x120] sm:$0xf] }
 0x14d   : > { %1138 = vmatpush.bf16.msrb.mxu0 %v2296_v31  ;;  %1023 = vmatpush.bf16.msra.mxu1 %v2172_v45  ;;  %v899_v31 = vpack.c.bf16 %v898_v22, %v897_v21  ;;  %v2631_v38 = vld [vmem:[%s3547_s4 + $0x124] sm:$0xf0]  ;;  %v2628_v39 = vld [vmem:[%s3547_s4 + $0x114] sm:$0xf]  ;;  %v2325_v40 = vld [vmem:[%s3547_s4 + $0x118] sm:$0xf0]  ;;  %v2248_v42 = vor.u32 %v2596_v33, %v2245_v36 }
 0x14e   : > { %1130 = vmatpush.bf16.msra.mxu3 %v2244_v5  ;;  %v2594_v43 = vld [vmem:[%s3547_s4 + $0x4] sm:$0xf]  ;;  %v2328_v45 = vor.u32 %v2628_v39, %v2325_v40  ;;  %v2323_v47 = vld [vmem:[%s3547_s4 + $0x110] sm:$0xf]  ;;  %v2629_v48 = vld [vmem:[%s3547_s4 + $0x114] sm:$0xf0] }
 0x14f   : > { %1038 = vmatmul.bf16.vlgmr.msra.gmra.mxu2 %v918_v44  ;;  %v2324_v52 = vor.u32 %v2629_v48, %v2323_v47  ;;  %v2315_v54 = vld [vmem:[%s3547_s4 + $0x100] sm:$0xf]  ;;  %v2627_v55 = vld [vmem:[%s3547_s4 + $0x104] sm:$0xf0]  ;;  %v2649_v58 = vld [vmem:[%s3549_s6 + $0x38] sm:$0xff] }
 0x150   : > { %1263 = vmatpush.bf16.msrb.mxu2 %v2376_v35  ;;  %1024 = vmatmul.bf16.vlgmr.msra.gmra.mxu1 %v918_v44  ;;  %v2336_v35 = vor.u32 %v2630_v27, %v2333_v30  ;;  %v2332_v44 = vor.u32 %v2631_v38, %v2331_v37  ;;  %v2316_v56 = vor.u32 %v2627_v55, %v2315_v54  ;;  %v2647_v62 = vld [vmem:[%s3549_s6 + $0x28] sm:$0xff]  ;;  %v2646_v2 = vld [vmem:[%s3549_s6 + $0x20] sm:$0xff]  ;;  %v2665_v25 = vld [vmem:[#allocation6 + $0x78] sm:$0xff] }
 0x151   : > { %1139 = vmatpush.bf16.msrb.mxu0 %v2288_v46  ;;  %1249 = vmatpush.bf16.msrb.mxu1 %v2372_v49  ;;  %v2237_v46 = vld [vmem:[%s3547_s4 + $0x8] sm:$0xf0]  ;;  %v2626_v49 = vld [vmem:[%s3547_s4 + $0x104] sm:$0xf]  ;;  %v2654_v38 = vld [vmem:[#allocation6 + $0x20] sm:$0xff] }
 0x152   : > { %1131 = vmatpush.bf16.msra.mxu3 %v2236_v15  ;;  %v2240_v51 = vor.u32 %v2594_v43, %v2237_v46  ;;  %v3705_v4 = vld [vmem:[%s3567_s2] sm:$0x3]  ;;  %v2642_v17 = vld [vmem:[%s3549_s6] sm:$0xff] }
 0x153   : > { %v1284_v6 = vperm.slane %v3705_v4, 1  ;;  %v2643_v13 = vld [vmem:[%s3549_s6 + $0x8] sm:$0xff]  ;;  %v2662_v39 = vld [vmem:[#allocation6 + $0x60] sm:$0xff] }
 0x154   : > { %1264 = vmatpush.bf16.msrb.mxu2 %v2368_v50  ;;  %v2317_v50 = vld [vmem:[%s3547_s4 + $0x108] sm:$0xf0]  ;;  %s892_s4 = scalar_select %p224_p1, 1, 0 }
 0x155   : > { %1140 = vmatpush.bf16.msrb.mxu0 %v2280_v60  ;;  %1250 = vmatpush.bf16.msrb.mxu1 %v2364_v63  ;;  %v2320_v53 = vor.u32 %v2626_v49, %v2317_v50  ;;  %v2648_v60 = vld [vmem:[%s3549_s6 + $0x30] sm:$0xff]  ;;  %p2539_p1 = scmp.ne.s32.totalorder %s3351_s20, 1 }
 0x156   : > { %1132 = vmatmul.bf16.vlgmr.msra.gmra.mxu3 %v899_v31  ;;  %v2656_v26 = vld [vmem:[#allocation6 + $0x30] sm:$0xff] }
 0x157   : > { %1400 = vmatpush.bf16.msrb.mxu3 %v2649_v58  ;;  %v2664_v27 = vld [vmem:[#allocation6 + $0x70] sm:$0xff] }
 0x158   : > { %1265 = vmatpush.bf16.msrb.mxu2 %v2360_v3 }
 0x159   : > { %1141 = vmatpush.bf16.msrb.mxu0 %v2272_v8  ;;  %1251 = vmatpush.bf16.msrb.mxu1 %v2356_v10  ;;  %v2644_v8 = vld [vmem:[%s3549_s6 + $0x10] sm:$0xff] }
 0x15b   : > { %1401 = vmatpush.bf16.msrb.mxu3 %v2648_v60 }
 0x15c   : > { %1266 = vmatpush.bf16.msrb.mxu2 %v2352_v11 }
 0x15d   : > { %1142 = vmatpush.bf16.msrb.mxu0 %v2264_v18  ;;  %1252 = vmatpush.bf16.msrb.mxu1 %v2348_v20 }
 0x15f   : > { %1402 = vmatpush.bf16.msrb.mxu3 %v2647_v62 }
 0x160   : > { %1267 = vmatpush.bf16.msrb.mxu2 %v2344_v23  ;;  %v2657_v23 = vld [vmem:[#allocation6 + $0x38] sm:$0xff] }
 0x161   : > { %1143 = vmatpush.bf16.msrb.mxu0 %v2256_v32  ;;  %1253 = vmatpush.bf16.msrb.mxu1 %v2340_v34  ;;  %v2663_v32 = vld [vmem:[#allocation6 + $0x68] sm:$0xff] }
 0x163   : > { %1403 = vmatpush.bf16.msrb.mxu3 %v2646_v2 }
 0x164   : > { %1268 = vmatpush.bf16.msrb.mxu2 %v2336_v35 }
 0x165   : > { %1144 = vmatpush.bf16.msrb.mxu0 %v2248_v42  ;;  %1254 = vmatpush.bf16.msrb.mxu1 %v2332_v44  ;;  %v2653_v44 = vld [vmem:[#allocation6 + $0x18] sm:$0xff] }
 0x168   : > { %1269 = vmatpush.bf16.msrb.mxu2 %v2328_v45 }
 0x169   : > { %1145 = vmatpush.bf16.msrb.mxu0 %v2240_v51  ;;  %1255 = vmatpush.bf16.msrb.mxu1 %v2324_v52  ;;  %v2652_v51 = vld [vmem:[#allocation6 + $0x10] sm:$0xff] }
 0x16c   : > { %1270 = vmatpush.bf16.msrb.mxu2 %v2320_v53  ;;  %1146 = vmatmul.bf16.vlgmr.msrb.gmra.mxu0 %v899_v31  ;;  %v2655_v31 = vld [vmem:[#allocation6 + $0x28] sm:$0xff] }
 0x16d   : > { %1256 = vmatpush.bf16.msrb.mxu1 %v2316_v56  ;;  %1508 = vmatpush.bf16.msra.mxu0 %v2657_v23  ;;  %v1283_v56 = vperm.slane %v3705_v4, 0 }
 0x16f   : > { %1271 = vmatmul.bf16.vlgmr.msrb.gmra.mxu2 %v3647_v41 }
 0x170   : > { %1257 = vmatmul.bf16.vlgmr.msrb.gmra.mxu1 %v3647_v41  ;;  %v2645_v41 = vld [vmem:[%s3549_s6 + $0x18] sm:$0xff] }
 0x171   : > { %1404 = vmatpush.bf16.msrb.mxu3 %v2645_v41  ;;  %1569 = vmatpush.bf16.msra.mxu1 %v2665_v25 }
 0x172   : > { %1509 = vmatpush.bf16.msra.mxu0 %v2656_v26 }
 0x175   : > { %1405 = vmatpush.bf16.msrb.mxu3 %v2644_v8  ;;  %1570 = vmatpush.bf16.msra.mxu1 %v2664_v27 }
 0x176   : > { %1510 = vmatpush.bf16.msra.mxu0 %v2655_v31  ;;  %v2830_v31 = vld [vmem:[%s3821_s28] ss:$0 sm:$0xff] }
 0x179   : > { %1406 = vmatpush.bf16.msrb.mxu3 %v2643_v13  ;;  %1571 = vmatpush.bf16.msra.mxu1 %v2663_v32  ;;  %v2661_v13 = vld [vmem:[#allocation6 + $0x58] sm:$0xff] }
 0x17a   : > { %1511 = vmatpush.bf16.msra.mxu0 %v2654_v38  ;;  %v2681_v38 = vld [vmem:[#allocation8 + $0x78] sm:$0xff] }
 0x17d   : > { %1407 = vmatpush.bf16.msrb.mxu3 %v2642_v17  ;;  %1572 = vmatpush.bf16.msra.mxu1 %v2662_v39  ;;  %v2658_v17 = vld [vmem:[#allocation6 + $0x40] sm:$0xff]  ;;  %v2672_v39 = vld [vmem:[#allocation8 + $0x30] sm:$0xff] }
 0x17e   : > { %1512 = vmatpush.bf16.msra.mxu0 %v2653_v44  ;;  %v2670_v44 = vld [vmem:[#allocation8 + $0x20] sm:$0xff] }
 0x181   : > { %1573 = vmatpush.bf16.msra.mxu1 %v2661_v13  ;;  %1745 = vmatpush.bf16.msra.mxu3 %v2681_v38  ;;  %v2828_v13 = vld [vmem:[%s706_s26] ss:$0 sm:$0xff] }
 0x182   : > { %1513 = vmatpush.bf16.msra.mxu0 %v2652_v51 }
 0x1c9   : > { %v3696_v57 = vpop.f32.mrf.mxu0 }
 0x1cd   : > { %v1025_v9 = vpop.f32.mrf.mxu1 }
 0x1d1   : > { %v3700_v61 = vpop.f32.mrf.mxu0 }
 0x1d2   : > { %v1039_v59 = vpop.f32.mrf.mxu2 }
 0x1d5   : > { %v1027_v19 = vpop.f32.mrf.mxu1 }
 0x1d9   : > { %v1133_v30 = vpop.f32.mrf.mxu3 }
 0x1da   : > { %v1041_v63 = vpop.f32.mrf.mxu2  ;;  %v1134_v46 = vadd.f32 %v1133_v30, %v1025_v9 }
 0x1e1   : > { %v1135_v43 = vpop.f32.mrf.mxu3 }
 0x1e2   : > { %v1136_v47 = vadd.f32 %v1135_v43, %v1027_v19  ;;  %v2679_v43 = vld [vmem:[#allocation8 + $0x68] sm:$0xff] }
 0x1e9   : > { %v1147_v3 = vpop.f32.mrf.mxu0 }
 0x1ea   : > { %v1148_v5 = vadd.f32 %v1147_v3, %v1039_v59 }
 0x1ed   : > { %v1258_v34 = vpop.f32.mrf.mxu1 }
 0x1ee   : > { %v1277_v55 = vadd.f32 %v1258_v34, %v1134_v46 }
 0x1f1   : > { %v1149_v12 = vpop.f32.mrf.mxu0 }
 0x1f2   : > { %v1272_v7 = vpop.f32.mrf.mxu2  ;;  %v1150_v15 = vadd.f32 %v1149_v12, %v1041_v63  ;;  %v2651_v12 = vld [vmem:[#allocation6 + $0x8] sm:$0xff] }
 0x1f3   : > { %v1278_v10 = vadd.f32 %v1272_v7, %v1148_v5  ;;  %1514 = vmatpush.bf16.msra.mxu0 %v2651_v12 }
 0x1f5   : > { %v1288_v11 = vadd.f32 %v1284_v6, %v1278_v10  ;;  %v1260_v49 = vpop.f32.mrf.mxu1 }
 0x1f6   : > { %v1279_v58 = vadd.f32 %v1260_v49, %v1136_v47  ;;  %v2669_v47 = vld [vmem:[#allocation8 + $0x18] sm:$0xff] }
 0x1f7   : > { %v2377_v14 = vmul.f32 -1.442695, %v1288_v11 }
 0x1f8   : > { %v1289_v7 = vadd.f32 %v1283_v56, %v1279_v58  ;;  %v2677_v58 = vld [vmem:[#allocation8 + $0x58] sm:$0xff] }
 0x1f9   : > { %2832 = vpow2.f32 %v2377_v14  ;;  %v2650_v14 = vld [vmem:[#allocation6] sm:$0xff] }
 0x1fa   : > { %v1274_v16 = vpop.f32.mrf.mxu2  ;;  %1515 = vmatpush.bf16.msra.mxu0 %v2650_v14  ;;  %v893_v14 = vstv %s892_s4 }
 0x1fb   : > { %v1280_v18 = vadd.f32 %v1274_v16, %v1150_v15  ;;  %v2660_v15 = vld [vmem:[#allocation6 + $0x50] sm:$0xff]  ;;  %v2659_v16 = vld [vmem:[#allocation6 + $0x48] sm:$0xff]  ;;  %vm894_vm8 = vcmp.eq.s32.totalorder %v893_v14, 1 }
 0x1fc   : > { %1574 = vmatpush.bf16.msra.mxu1 %v2660_v15  ;;  %v888_v15 = vadd.f32 %v2828_v13, %v3696_v57 }
 0x1fd   : > { %v1290_v20 = vadd.f32 %v1284_v6, %v1280_v18  ;;  %v1287_v6 = vadd.f32 %v1283_v56, %v1277_v55  ;;  %v2829_v18 = vld [vmem:[%s713_s1] ss:$0 sm:$0xff]  ;;  %v2678_v55 = vld [vmem:[#allocation8 + $0x60] sm:$0xff]  ;;  %v2667_v56 = vld [vmem:[#allocation8 + $0x8] sm:$0xff] }
 0x1ff   : > { %v2833_v21 = vpop.eup %2832  ;;  %v2378_v22 = vmul.f32 -1.442695, %v1290_v20 }
 0x200   : > { %v1297_v24 = vadd.f32 1.0, %v2833_v21  ;;  %1575 = vmatpush.bf16.msra.mxu1 %v2659_v16  ;;  %v895_v16 = vsel %vm894_vm8, %v3635_v28, %v888_v15 }
 0x201   : > { %2834 = vpow2.f32 %v2378_v22 }
 0x202   : > { %2836 = vrcp.f32 %v1297_v24  ;;  %v1310_v52 = vand.u32 2147483648, %v1297_v24  ;;  %vm1304_vm1 = vweird.f32 %v1297_v24  ;;  %v1308_v53 = vand.u32 2147483647, %v1297_v24 }
 0x204   : > { %v1311_v2 = vor.u32 1.1754944e-38, %v1310_v52  ;;  %vm1309_vm4 = vcmp.eq.f32.partialorder %v1308_v53, 8.507059e+37  ;;  %1576 = vmatpush.bf16.msra.mxu1 %v2658_v17 }
 0x207   : > { %v2835_v33 = vpop.eup %2834 }
 0x208   : > { %v2837_v35 = vpop.eup %2836  ;;  %v1298_v36 = vadd.f32 1.0, %v2835_v33 }
 0x209   : > { %v1300_v37 = vmul.f32 %v2837_v35, %v1297_v24  ;;  %vm1305_vm0 = vweird.f32 %v2837_v35 }
 0x20a   : > { %2838 = vrcp.f32 %v1298_v36  ;;  %vm1306_vm2 = vmor %vm1304_vm1, %vm1305_vm0  ;;  %v1325_v59 = vand.u32 2147483648, %v1298_v36  ;;  %v1323_v63 = vand.u32 2147483647, %v1298_v36  ;;  %vm1319_vm5 = vweird.f32 %v1298_v36 }
 0x20b   : > { %v1301_v40 = vsub.f32 1.0, %v1300_v37 }
 0x20c   : > { %v1326_v5 = vor.u32 1.1754944e-38, %v1325_v59  ;;  %vm1324_vm7 = vcmp.eq.f32.partialorder %v1323_v63, 8.507059e+37  ;;  %v2666_v59 = vld [vmem:[#allocation8] sm:$0xff] }
 0x20d   : > { %v1302_v42 = vmul.f32 %v2837_v35, %v1301_v40  ;;  %v2680_v40 = vld [vmem:[#allocation8 + $0x70] sm:$0xff]  ;;  %v2674_v63 = vld [vmem:[#allocation8 + $0x40] sm:$0xff] }
 0x20e   : > { %1746 = vmatpush.bf16.msra.mxu3 %v2680_v40 }
 0x20f   : > { %v1303_v48 = vadd.f32 %v2837_v35, %v1302_v42  ;;  %v2671_v42 = vld [vmem:[#allocation8 + $0x28] sm:$0xff] }
 0x210   : > { %v2839_v45 = vpop.eup %2838 }
 0x211   : > { %v1315_v50 = vmul.f32 %v2839_v45, %v1298_v36  ;;  %v1307_v60 = vsel %vm1306_vm2, %v2837_v35, %v1303_v48  ;;  %vm1320_vm3 = vweird.f32 %v2839_v45 }
 0x212   : > { %v1312_v41 = vsel %vm1309_vm4, %v1311_v2, %v1307_v60  ;;  %vm1321_vm6 = vmor %vm1319_vm5, %vm1320_vm3  ;;  %1747 = vmatpush.bf16.msra.mxu3 %v2679_v43  ;;  %v2676_v60 = vld [vmem:[#allocation8 + $0x50] sm:$0xff] }
 0x213   : > { %v1316_v54 = vsub.f32 1.0, %v1315_v50  ;;  %v3713_v9 = vmul.f32 %v1312_v41, %v1287_v6 }
 0x215   : > { %v1317_v62 = vmul.f32 %v2839_v45, %v1316_v54  ;;  %v2668_v54 = vld [vmem:[#allocation8 + $0x10] sm:$0xff] }
 0x216   : > { %1748 = vmatpush.bf16.msra.mxu3 %v2678_v55 }
 0x217   : > { %v1318_v3 = vadd.f32 %v2839_v45, %v1317_v62  ;;  %v2675_v62 = vld [vmem:[#allocation8 + $0x48] sm:$0xff] }
 0x219   : > { %v1322_v8 = vsel %vm1321_vm6, %v2839_v45, %v1318_v3 }
 0x21a   : > { %v1327_v4 = vsel %vm1324_vm7, %v1326_v5, %v1322_v8  ;;  %1749 = vmatpush.bf16.msra.mxu3 %v2677_v58 }
 0x21b   : > { %v3715_v10 = vmul.f32 %v1327_v4, %v1289_v7 }
 0x21d   : > { %v1331_v11 = vpack.c.bf16 %v3715_v10, %v3713_v9 }
 0x21e   : > { %1750 = vmatpush.bf16.msra.mxu3 %v2676_v60 }
 0x21f   : > { %1408 = vmatmul.bf16.vlgmr.msrb.gmra.mxu3 %v1331_v11 }
 0x222   : > { %1751 = vmatpush.bf16.msra.mxu3 %v2675_v62 }
 0x226   : > { %1752 = vmatpush.bf16.msra.mxu3 %v2674_v63 }
 0x2a2   : > { %v1409_v19 = vpop.f32.mrf.mxu3 }
 0x2a3   : > { %v1410_v20 = vadd.f32 %v2829_v18, %v1409_v19 }
 0x2a5   : > { %v1414_v21 = vadd.f32 %v1410_v20, %v3573_v0  ;;  %v2831_v0 = vld [vmem:[%s3821_s28 + $0x1] ss:$0 sm:$0xff]  ;;  %v1762_v20 = vmul.f32 0.70710677, %v895_v16 }
 0x2a7   : > { %v1416_v22 = vmul.f32 0.70710677, %v1414_v21  ;;  %v890_v21 = vadd.f32 %v2828_v13, %v3700_v61 }
 0x2a9   : > { %v1418_v23 = vpack.c.bf16 %v1416_v22, %v1416_v22 }
 0x2aa   : > { %v1411_v24 = vpop.f32.mrf.mxu3 }
 0x2ab   : > { %v1412_v25 = vadd.f32 %v2829_v18, %v1411_v24  ;;  %1516 = vmatmul.bf16.vlgmr.msra.gmra.mxu0 %v1418_v23  ;;  %v896_v23 = vsel %vm894_vm8, %v3637_v29, %v890_v21 }
 0x2ac   : > { %v1763_v57 = vmul.f32 0.70710677, %v896_v23 }
 0x2ad   : > { %v1415_v26 = vadd.f32 %v1412_v25, %v3575_v1  ;;  %v2673_v1 = vld [vmem:[#allocation8 + $0x38] sm:$0xff] }
 0x2ae   : > { %1684 = vmatpush.bf16.msra.mxu2 %v2673_v1 }
 0x2af   : > { %v1417_v27 = vmul.f32 0.70710677, %v1415_v26 }
 0x2b1   : > { %v1419_v30 = vpack.c.bf16 %v1417_v27, %v1417_v27 }
 0x2b2   : > { %1685 = vmatpush.bf16.msra.mxu2 %v2672_v39 }
 0x2b3   : > { %1577 = vmatmul.bf16.vlgmr.msra.gmra.mxu1 %v1419_v30 }
 0x2b6   : > { %1686 = vmatpush.bf16.msra.mxu2 %v2671_v42 }
 0x2ba   : > { %1687 = vmatpush.bf16.msra.mxu2 %v2670_v44 }
 0x2be   : > { %1688 = vmatpush.bf16.msra.mxu2 %v2669_v47 }
 0x2c2   : > { %1689 = vmatpush.bf16.msra.mxu2 %v2668_v54 }
 0x2c6   : > { %1690 = vmatpush.bf16.msra.mxu2 %v2667_v56 }
 0x2ca   : > { %1691 = vmatpush.bf16.msra.mxu2 %v2666_v59 }
 0x328   : > { %v1517_v32 = vpop.f32.mrf.mxu0 }
 0x329   : > { %v1518_v33 = vadd.f32 %v2830_v31, %v1517_v32 }
 0x32b   : > { %1582 = vmax.xlane.f32.xlu0 %v1518_v33 }
 0x330   : > { %v1519_v34 = vpop.f32.mrf.mxu0  ;;  %v1578_v35 = vpop.f32.mrf.mxu1 }
 0x331   : > { %v1579_v36 = vadd.f32 %v2831_v0, %v1578_v35 }
 0x333   : > { %1584 = vmax.xlane.f32.xlu0 %v1579_v36 }
 0x338   : > { %v1580_v37 = vpop.f32.mrf.mxu1 }
 0x39e   : > { %v1583_v45 = vpop.xlane.xlu0 %1582 }
 0x39f   : > { %v1586_v46 = vsub.f32 %v1518_v33, %v1583_v45 }
 0x3a1   : > { %v1588_v48 = vmul.f32 1.442695, %v1586_v46 }
 0x3a3   : > { %2840 = vpow2.f32 %v1588_v48 }
 0x3a6   : > { %v1585_v49 = vpop.xlane.xlu0 %1584 }
 0x3a7   : > { %v1587_v50 = vsub.f32 %v1579_v36, %v1585_v49 }
 0x3a9   : > { %v2841_v51 = vpop.eup %2840  ;;  %v1590_v52 = vmul.f32 1.442695, %v1587_v50 }
 0x3aa   : > { %1592 = vadd.xlane.f32.xlu1 %v2841_v51 }
 0x3ab   : > { %2842 = vpow2.f32 %v1590_v52 }
 0x3b1   : > { %v2843_v53 = vpop.eup %2842 }
 0x3b2   : > { %1594 = vadd.xlane.f32.xlu1 %v2843_v53 }
 0x41d   : > { %v1593_v2 = vpop.xlane.xlu1 %1592 }
 0x41e   : > { %2844 = vrcp.f32 %v1593_v2 }
 0x424   : > { %v2845_v3 = vpop.eup %2844 }
 0x425   : > { %v1598_v41 = vmul.f32 2.828427, %v2845_v3  ;;  %v1595_v5 = vpop.xlane.xlu1 %1594 }
 0x426   : > { %2846 = vrcp.f32 %v1595_v5 }
 0x427   : > { %v1600_v6 = vmul.f32 %v2841_v51, %v1598_v41 }
 0x429   : > { %v1602_v7 = vpack.c.bf16 %v1600_v6, %v1600_v6 }
 0x42b   : > { %1692 = vmatmul.bf16.vlgmr.msra.gmra.mxu2 %v1602_v7 }
 0x42c   : > { %v2847_v8 = vpop.eup %2846 }
 0x42d   : > { %v1599_v4 = vmul.f32 2.828427, %v2847_v8 }
 0x42f   : > { %v1601_v11 = vmul.f32 %v2843_v53, %v1599_v4 }
 0x431   : > { %v1603_v12 = vpack.c.bf16 %v1601_v11, %v1601_v11 }
 0x433   : > { %1753 = vmatmul.bf16.vlgmr.msra.gmra.mxu3 %v1603_v12 }
 0x4ae   : > { %v1693_v17 = vpop.f32.mrf.mxu2 }
 0x4af   : > { %v1758_v18 = vadd.f32 %v1693_v17, %v3713_v9 }
 0x4b1   : > { %v1760_v19 = vmul.f32 0.5, %v1758_v18 }
 0x4b3   : > { %v1764_v22 = vadd.f32 %v1762_v20, %v1760_v19 }
 0x4b5   : > { %1766 = vst [vmem:[#allocation2 + $0x8] sm:$0xff] %v1764_v22 }
 0x4b6   : > { %v1695_v24 = vpop.f32.mrf.mxu2  ;;  %v1754_v25 = vpop.f32.mrf.mxu3 }
 0x4b7   : > { %v1759_v26 = vadd.f32 %v1754_v25, %v3715_v10 }
 0x4b9   : > { %v1761_v27 = vmul.f32 0.5, %v1759_v26 }
 0x4ba   : > { %1771 = sbr.rel (%p2539_p1) target bundleno = 1384 (0x568), region = 124 }
 0x4bb   : > { %v1765_v30 = vadd.f32 %v1763_v57, %v1761_v27 }
 0x4bd   : > { %1767 = vst [vmem:[#allocation2 + $0x18] sm:$0xff] %v1765_v30 }
 0x4be   : > { %v1756_v28 = vpop.f32.mrf.mxu3 }
 0x4bf   : > { %v2689_v9 = vld [vmem:[#allocation12 + $0x38] sm:$0xff]  ;;  %v2688_v31 = vld [vmem:[#allocation12 + $0x30] sm:$0xff]  ;;  %v2687_v61 = vld [vmem:[#allocation12 + $0x28] sm:$0xff]  ;;  %v1772_v34 = vpack.c.bf16 %v1765_v30, %v1764_v22 }
 0x4c0   : > { %1841 = vmatpush.bf16.msra.mxu0 %v2689_v9  ;;  %v2686_v32 = vld [vmem:[#allocation12 + $0x20] sm:$0xff]  ;;  %v2685_v29 = vld [vmem:[#allocation12 + $0x18] sm:$0xff]  ;;  %v2684_v33 = vld [vmem:[#allocation12 + $0x10] sm:$0xff] }
 0x4c1   : > { %v2683_v10 = vld [vmem:[#allocation12 + $0x8] sm:$0xff]  ;;  %v2682_v0 = vld [vmem:[#allocation12] sm:$0xff] }
 0x4c2   : > { %v2848_v35 = vld [vmem:[#allocation14] ss:$0 sm:$0xff] }
 0x4c4   : > { %1842 = vmatpush.bf16.msra.mxu0 %v2688_v31 }
 0x4c8   : > { %1843 = vmatpush.bf16.msra.mxu0 %v2687_v61 }
 0x4cc   : > { %1844 = vmatpush.bf16.msra.mxu0 %v2686_v32 }
 0x4d0   : > { %1845 = vmatpush.bf16.msra.mxu0 %v2685_v29 }
 0x4d4   : > { %1846 = vmatpush.bf16.msra.mxu0 %v2684_v33 }
 0x4d8   : > { %1847 = vmatpush.bf16.msra.mxu0 %v2683_v10 }
 0x4dc   : > { %1848 = vmatpush.bf16.msra.mxu0 %v2682_v0 }
 0x4df   : > { %1849 = vmatmul.bf16.vlgmr.msra.gmra.mxu0 %v1772_v34 }
 0x55c   : > { %v1850_v36 = vpop.f32.mrf.mxu0 }
 0x55d   : > { %v1851_v37 = vadd.f32 %v2848_v35, %v1850_v36 }
 0x55f   : > { %1855 = vst [vmem:[#allocation20] sm:$0xff] %v1851_v37 }
 0x564   : > { %v1852_v1 = vpop.f32.mrf.mxu0 }
 0x565   : > { %v1853_v38 = vadd.f32 %v2848_v35, %v1852_v1 }
 0x567   : > { %1856 = vst [vmem:[#allocation20 + $0x8] sm:$0xff] %v1853_v38 }
 0x568 PF: > { %p2778_p3 = scmp.eq.s32.totalorder %s3351_s20, 1  ;;  %s3249_s14 = smov [#allocation20]  }
 0x569   : > { %s1862_s22 = sshll.u32 %s3249_s14, 4  ;;  %s3822_s27 = sld [smem:[#allocation39_spill]]  ;;  %s1863_s22 = int_to_ptr.vmem [resolvable:$true] %s1862_s22 }
 0x56a   : > { %s3250_s29 = smov 128   ;;  %s3251_s2 = smov 8  }
 0x56f   : > { %s1864_s3 = sshll.u32 %s3822_s27, 4  ;;  %s1865_s3 = int_to_ptr.hbm [resolvable:$true] %s1864_s3 }
 0x570   : > { %2728 = dma.vmem_to_hbm [thread:$0]  (%p2778_p3), %s1863_s22, 256, %s1865_s3, [#allocation5], %s3250_s29, %s3250_s29, %s3251_s2  }
 0x571   : > { %3218 = dma.done.wait (%p2778_p3), [#allocation5], 256  }
 0x572   : > { %3220 = vsyncadd (%p2778_p3), [#allocation5], 4294967040 }
 0x573 PF: > { %s3823_s16 = sld [smem:[#allocation29_spill]]  ;;  %s3826_s29 = smov %s3227_s30 }
 0x574   : > { %s3824_s18 = sld [smem:[#allocation28_spill]] }
 0x575   : > { %s3825_s15 = sld [smem:[#allocation30_spill]] }
 0x579   : > { %p32_p12 = scmp.ge.s32.totalorder %s3823_s16, 4  }
 0x57a   : > { %s3827_s30 = smov %s3824_s18 }
 0x57b   :  { %34 = sbr.rel (!%p32_p12) target bundleno = 20 (0x14), region = 185 }
 0x580   :  { %1881 = vsyncpa [#allocation4], 1 }
 0x581   :  { %1883 = vsyncpa [#allocation4 + $0x1], 1 }
 0x582   :  { %1884 = vsyncpa [#allocation7], 1 }
 0x583   :  { %1885 = vsyncpa [#allocation10], 1 }
 0x584   :  { %1886 = vsyncpa [#allocation13], 1 }
 0x585   :  { %1887 = vsyncpa [#allocation16], 1 }
 0x586   :  { %1889 = vsyncpa [#allocation16 + $0x1], 1 }
 0x587   :  { %1890 = vsyncpa [#allocation19], 1 }
 0x588   :  { %1892 = vsyncpa [#allocation19 + $0x1], 1 }
 0x589   :  { %1893 = vsyncpa [#allocation5], 1 }
 0x58a   :  { %1895 = vsyncpa [#allocation5 + $0x1], 1 }

// kernel: tpu_custom_call.1
= control target key start
LH: loop header
LB: loop body
LE: loop exit
PB: predicated region body
PF: predicated region fallthrough
CT: control target
= control target key end

     0   :  { %s3763_s0 = inlined_call_operand.hbm [shape: f32[16,128], index: 0, kind: input, shape index: {}]   ;;  %s3764_s1 = inlined_call_operand.hbm [shape: bf16[2,128,128], index: 1, kind: input, shape index: {}]   ;;  %s3765_s2 = inlined_call_operand.hbm [shape: bf16[2,128,128], index: 2, kind: input, shape index: {}]   ;;  %s3766_s3 = inlined_call_operand.vmem [shape: f32[2,1,128], index: 3, kind: input, shape index: {}]   ;;  %s3767_s4 = inlined_call_operand.hbm [shape: bf16[128,128], index: 4, kind: input, shape index: {}]   ;;  %s3768_s5 = inlined_call_operand.hbm [shape: f32[1,128], index: 5, kind: input, shape index: {}]   ;;  %s3769_s6 = inlined_call_operand.hbm [shape: bf16[128,128], index: 6, kind: input, shape index: {}]   ;;  %s3770_s7 = inlined_call_operand.hbm [shape: f32[1,128], index: 7, kind: input, shape index: {}]   ;;  %s3771_s8 = inlined_call_operand.hbm [shape: bf16[2,128,128], index: 8, kind: input, shape index: {}]   ;;  %s3772_s9 = inlined_call_operand.vmem [shape: f32[2,1,128], index: 9, kind: input, shape index: {}]   ;;  %s3773_s10 = inlined_call_operand.hbm [shape: bf16[2,3,128,256], index: 10, kind: input, shape index: {}]   ;;  %s3774_s11 = inlined_call_operand.vmem [shape: f32[2,1,256], index: 11, kind: input, shape index: {}]   ;;  %s3775_s12 = inlined_call_operand.hbm [shape: bf16[2,128,128], index: 12, kind: input, shape index: {}]   ;;  %s3776_s13 = inlined_call_operand.vmem [shape: f32[2,1,128], index: 13, kind: input, shape index: {}]   ;;  %s3777_s14 = inlined_call_operand.hbm [shape: f32[16,128], index: 14, kind: output, shape index: {}]  }
   0x1   :  { %3790 = sst [smem:[#allocation31_spill]] %s3763_s0 }
   0x2   :  { %3791 = sst [smem:[#allocation32_spill]] %s3764_s1 }
   0x3   :  { %3792 = sst [smem:[#allocation33_spill]] %s3765_s2 }
   0x4   :  { %3793 = sst [smem:[#allocation34_spill]] %s3766_s3 }
   0x5   :  { %3794 = sst [smem:[#allocation35_spill]] %s3767_s4 }
   0x6   :  { %3795 = sst [smem:[#allocation36_spill]] %s3768_s5 }
   0x7   :  { %3796 = sst [smem:[#allocation37_spill]] %s3769_s6 }
   0x8   :  { %3797 = sst [smem:[#allocation38_spill]] %s3776_s13 }
   0x9   :  { %3798 = sst [smem:[#allocation39_spill]] %s3777_s14 }
   0xa   :  { %19 = vsyncpa [#allocation4], 0 }
   0xb   :  { %20 = vsyncpa [#allocation7], 0 }
   0xc   :  { %21 = vsyncpa [#allocation10], 0 }
   0xd   :  { %22 = vsyncpa [#allocation13], 0 }
   0xe   :  { %23 = vsyncpa [#allocation16], 0 }
   0xf   :  { %25 = vsyncpa [#allocation16 + $0x1], 0 }
  0x10   :  { %26 = vsyncpa [#allocation19], 0 }
  0x11   :  { %28 = vsyncpa [#allocation19 + $0x1], 0 }
  0x12   :  { %29 = vsyncpa [#allocation5], 0  ;;  %s3327_s29 = smov 0   ;;  %s3329_s30 = smov 0  }
  0x13   :  { %s3331_s15 = smov 0   ;;  %s3333_s16 = smov 0  }
  0x14 LB: > { %3799 = sst [smem:[#allocation28_spill]] %s3231_s15  ;;  %s3351_s20 = sadd.s32 4294967295, %s3235_s16   ;;  %s3235_s16 = sphi %s3333_s16, %s3823_s16   ;;  %s3231_s15 = sphi %s3331_s15, %s3825_s15   ;;  %s3227_s30 = sphi %s3329_s30, %s3827_s30   ;;  %s3223_s29 = sphi %s3327_s29, %s3826_s29  }
  0x15   : > { %s3800_s1 = sld [smem:[#allocation32_spill]]  ;;  %p2061_p0 = scmp.ge.s32.totalorder %s3235_s16, 1 }
  0x16   : > { %p224_p1 = scmp.eq.s32.totalorder %s3351_s20, 0  ;;  %p385_p2 = scmp.lt.s32.totalorder %s3235_s16, 3 }
  0x17   : > { %p2062_p3 = scmp.ne.s32.totalorder %s3351_s20, 0  ;;  %s3237_s22 = smov [#allocation6]  }
  0x18   : > { %p3357_p4 = pnand %p2061_p0, %p385_p2  ;;  %s412_s23 = sshll.u32 %s3237_s22, 4  ;;  %s413_s23 = int_to_ptr.vmem [resolvable:$true] %s412_s23 }
  0x19   : > { %s3802_s4 = sld [smem:[#allocation35_spill]]  ;;  %s3238_s22 = smov [#allocation9]  }
  0x1a   : > { %p2731_p5 = pneg %p3357_p4  ;;  %s3804_s6 = sld [smem:[#allocation37_spill]] }
  0x1b   : > { %s410_s19 = sshll.u32 %s3800_s1, 4  ;;  %s443_s24 = sshll.u32 %s3238_s22, 4  ;;  %s411_s19 = int_to_ptr.hbm [resolvable:$true] %s410_s19  ;;  %s444_s24 = int_to_ptr.vmem [resolvable:$true] %s443_s24 }
  0x1c   : > { %p3368_p6 = pnand %p2731_p5, %p224_p1  ;;  %s3778_s25 = smov 64  }
  0x1d   : > { %s3780_s1 = smov 4   ;;  %s3241_s28 = smov [#allocation12]  }
  0x1e   : > { %2737 = dma.hbm_to_vmem [thread:$0]  (!%p3368_p6), %s411_s19, 2048, %s413_s23, [#allocation7], %s3778_s25, %s3778_s25, %s3780_s1  }
  0x1f   : > { %s441_s26 = sshll.u32 %s3802_s4, 4  ;;  %s469_s17 = sshll.u32 %s3241_s28, 4  ;;  %s442_s26 = int_to_ptr.hbm [resolvable:$true] %s441_s26  ;;  %s470_s17 = int_to_ptr.vmem [resolvable:$true] %s469_s17 }
  0x20   : > { %s467_s18 = sshll.u32 %s3804_s6, 4  ;;  %s3391_s19 = sadd.s32 1, %s3235_s16   ;;  %s468_s18 = int_to_ptr.hbm [resolvable:$true] %s467_s18 }
  0x21   : > { %2743 = dma.hbm_to_vmem [thread:$0]  (!%p3368_p6), %s442_s26, 1024, %s444_s24, [#allocation10], %s3778_s25, %s3778_s25, %s3780_s1  }
  0x22   : > { %2749 = dma.hbm_to_vmem [thread:$0]  (!%p3368_p6), %s468_s18, 1024, %s470_s17, [#allocation13], %s3778_s25, %s3778_s25, %s3780_s1  }
  0x23   : > { %3805 = sst [smem:[#allocation29_spill]] %s3391_s19  ;;  %s207_s23 = ssub.s32 %s3235_s16, %s3391_s19 }
  0x24   : > { %s210_s22 = sadd.s32 1, %s3231_s15  ;;  %p208_p7 = scmp.eq.s32.totalorder %s207_s23, 0 }
  0x25   : > { %p217_p8 = scmp.ne.s32.totalorder %s3231_s15, %s3227_s30  ;;  %p218_p9 = scmp.eq.s32.totalorder %s3235_s16, 0 }
  0x26   : > { %p223_p10 = scmp.ne.s32.totalorder %s3227_s30, %s3223_s29  ;;  %p2770_p13 = scmp.lt.s32.totalorder %s3235_s16, 2 }
  0x27   : > { %s3402_s26 = scalar_select %p208_p7, %s3231_s15, %s210_s22  }
  0x28   : > { %p3404_p11 = por %p218_p9, %p217_p8  ;;  %p3410_p12 = por %p224_p1, %p223_p10 }
  0x29   : > { %3806 = sst [smem:[#allocation30_spill]] %s3402_s26  ;;  %s495_s28 = sand.u32 1, %s3235_s16  }
  0x2a   : > { %s3417_s17 = sand.u32 1, %s3231_s15   ;;  %s3787_s29 = sshll.u32 %s3235_s16, 6 }
  0x2b   : > { %s3786_s23 = sshll.u32 %s3417_s17, 6  ;;  %s504_s1 = scalar_lea.hbm %s3771_s8, %s3787_s29 }
  0x2c   : > { %s505_s4 = sshll.u32 %s504_s1, 4  ;;  %s499_s6 = scalar_lea.vmem [#allocation15], %s3786_s23  ;;  %s506_s4 = int_to_ptr.hbm [resolvable:$true] %s505_s4 }
  0x2d   : > { %s507_s26 = sshll.u32 %s499_s6, 4  ;;  %p3430_p0 = pnand %p2770_p13, %p3404_p11  ;;  %s508_s26 = int_to_ptr.vmem [resolvable:$true] %s507_s26 }
  0x2e   : > { %s3810_s0 = sld [smem:[#allocation31_spill]]  ;;  %s3242_s25 = smov [#allocation3]  }
  0x2f   : > { %s398_s22 = sshll.u32 %s3242_s25, 4  ;;  %s3437_s1 = scalar_lea.sflag [#allocation16], %s495_s28  ;;  %s399_s22 = int_to_ptr.vmem [resolvable:$true] %s398_s22 }
  0x30   : > { %s2939_s23 = sshra.s32 %s506_s4, 4  ;;  %p2943_p5 = pneg %p3430_p0  ;;  %s2940_s23 = int_to_ptr.hbm [resolvable:$true] %s2939_s23 }
  0x31   : > { %s2941_s6 = scalar_lea.hbm %s2940_s23, 64  ;;  %s2946_s15 = scalar_lea.hbm %s3771_s8, 128 }
  0x32   : > { %p2942_p2 = scmp.ne.s32.totalorder %s2940_s23, %s2941_s6  ;;  %p2947_p9 = scmp.lt.s32.totalorder %s2940_s23, %s3771_s8 }
  0x33   : > { %p2948_p10 = scmp.lt.s32.totalorder %s2946_s15, %s2941_s6 }
  0x34   : > { %s396_s3 = sshll.u32 %s3810_s0, 4  ;;  %p2944_p7 = pnand %p2943_p5, %p2942_p2  ;;  %s397_s3 = int_to_ptr.hbm [resolvable:$true] %s396_s3 }
  0x35   : > { %p2949_p11 = por %p2948_p10, %p2947_p9 }
  0x36   : > { %p2945_p8 = pneg %p2944_p7 }
  0x38   : > { %p2950_p13 = pnand %p2949_p11, %p2945_p8 }
  0x3a   : > { %2953 = shalt.err (!%p2950_p13)
}
  0x3b   : > { %s3811_s28 = smov 4   ;;  %s3812_s25 = smov 64  }
  0x3c   : > { %2756 = dma.hbm_to_vmem [thread:$0]  (!%p3430_p0), %s506_s4, 1024, %s508_s26, %s3437_s1, %s3812_s25, %s3812_s25, %s3811_s28  }
  0x3d   : > { %s3813_s2 = sld [smem:[#allocation33_spill]]  ;;  %s3788_s0 = smov 128  }
  0x3e   : > { %s3789_s23 = smov 8   ;;  %s3245_s29 = smov [#allocation8]  }
  0x3f   : > { %2734 = dma.hbm_to_vmem [thread:$0]  (!%p3368_p6), %s397_s3, 256, %s399_s22, [#allocation4], %s3788_s0, %s3788_s0, %s3789_s23  }
  0x40   : > { %s426_s6 = sshll.u32 %s3245_s29, 4  ;;  %s3814_s5 = sld [smem:[#allocation36_spill]]  ;;  %s427_s6 = int_to_ptr.vmem [resolvable:$true] %s426_s6 }
  0x41   : > { %s482_s3 = sshll.u32 %s3770_s7, 4  ;;  %s3246_s22 = smov [#allocation11]   ;;  %s483_s3 = int_to_ptr.hbm [resolvable:$true] %s482_s3 }
  0x42   : > { %s458_s0 = sshll.u32 %s3246_s22, 4  ;;  %s3247_s29 = smov [#allocation14]   ;;  %s459_s0 = int_to_ptr.vmem [resolvable:$true] %s458_s0 }
  0x43   : > { %s424_s13 = sshll.u32 %s3813_s2, 4  ;;  %s484_s15 = sshll.u32 %s3247_s29, 4  ;;  %s425_s13 = int_to_ptr.hbm [resolvable:$true] %s424_s13  ;;  %s485_s15 = int_to_ptr.vmem [resolvable:$true] %s484_s15 }
  0x44   : > { %2740 = dma.hbm_to_vmem [thread:$0]  (!%p3368_p6), %s425_s13, 2048, %s427_s6, [#allocation7], %s3812_s25, %s3812_s25, %s3811_s28  }
  0x45   : > { %s2690_s4 = smul.u32 384, %s3417_s17 }
  0x46   : > { %s456_s26 = sshll.u32 %s3814_s5, 4  ;;  %s2691_s23 = smul.u32 384, %s3235_s16  ;;  %s457_s26 = int_to_ptr.hbm [resolvable:$true] %s456_s26 }
  0x47   : > { %2746 = dma.hbm_to_vmem [thread:$0]  (!%p3368_p6), %s457_s26, 16, %s459_s0, [#allocation10]  }
  0x48   : > { %2752 = dma.hbm_to_vmem [thread:$0]  (!%p3368_p6), %s483_s3, 16, %s485_s15, [#allocation13]  }
  0x49   : > { %s532_s6 = scalar_lea.hbm %s3773_s10, %s2691_s23  ;;  %s527_s14 = scalar_lea.vmem [#allocation17], %s2690_s4 }
  0x4a   : > { %s533_s24 = sshll.u32 %s532_s6, 4  ;;  %s535_s5 = sshll.u32 %s527_s14, 4  ;;  %s534_s24 = int_to_ptr.hbm [resolvable:$true] %s533_s24  ;;  %s536_s5 = int_to_ptr.vmem [resolvable:$true] %s535_s5 }
  0x4b   : > { %s3089_s22 = sshra.s32 %s534_s24, 4  ;;  %s3096_s3 = scalar_lea.hbm %s3773_s10, 768  ;;  %s3090_s22 = int_to_ptr.hbm [resolvable:$true] %s3089_s22 }
  0x4c   : > { %s3091_s0 = scalar_lea.hbm %s3090_s22, 384  ;;  %p3097_p6 = scmp.lt.s32.totalorder %s3090_s22, %s3773_s10 }
  0x4d   : > { %p3092_p2 = scmp.ne.s32.totalorder %s3090_s22, %s3091_s0  ;;  %p3098_p9 = scmp.lt.s32.totalorder %s3096_s3, %s3091_s0 }
  0x4f   : > { %p3094_p7 = pnand %p3092_p2, %p2943_p5  ;;  %p3099_p10 = por %p3098_p9, %p3097_p6 }
  0x51   : > { %p3095_p8 = pneg %p3094_p7 }
  0x53   : > { %p3100_p11 = pnand %p3099_p10, %p3095_p8 }
  0x55   : > { %3103 = shalt.err (!%p3100_p11)
}
  0x56   : > { %s3815_s23 = smov 8   ;;  %s3816_s15 = smov 128  }
  0x57   : > { %2759 = dma.hbm_to_vmem [thread:$0]  (!%p3430_p0), %s534_s24, 6144, %s536_s5, %s3437_s1, %s3816_s15, %s3816_s15, %s3815_s23  }
  0x58   : > { %s3817_s4 = sshll.u32 %s3235_s16, 6  ;;  %s3818_s22 = sshll.u32 %s3417_s17, 6 }
  0x59   : > { %s561_s14 = scalar_lea.hbm %s3775_s12, %s3817_s4  ;;  %s556_s0 = scalar_lea.vmem [#allocation18], %s3818_s22 }
  0x5a   : > { %s564_s26 = sshll.u32 %s556_s0, 4  ;;  %s562_s27 = sshll.u32 %s561_s14, 4  ;;  %s565_s26 = int_to_ptr.vmem [resolvable:$true] %s564_s26  ;;  %s563_s27 = int_to_ptr.hbm [resolvable:$true] %s562_s27 }
  0x5b   : > { %s553_s3 = scalar_lea.sflag [#allocation19], %s3417_s17  ;;  %s3119_s29 = sshra.s32 %s563_s27, 4  ;;  %s3120_s29 = int_to_ptr.hbm [resolvable:$true] %s3119_s29 }
  0x5c   : > { %s3121_s2 = scalar_lea.hbm %s3120_s29, 64  ;;  %s3126_s1 = scalar_lea.hbm %s3775_s12, 128 }
  0x5d   : > { %p3122_p13 = scmp.ne.s32.totalorder %s3120_s29, %s3121_s2  ;;  %p3127_p8 = scmp.lt.s32.totalorder %s3120_s29, %s3775_s12 }
  0x5e   : > { %p3128_p6 = scmp.lt.s32.totalorder %s3126_s1, %s3121_s2 }
  0x5f   : > { %p3124_p2 = pnand %p3122_p13, %p2943_p5 }
  0x60   : > { %p3129_p9 = por %p3128_p6, %p3127_p8 }
  0x61   : > { %p3125_p7 = pneg %p3124_p2 }
  0x63   : > { %p3130_p10 = pnand %p3129_p9, %p3125_p7 }
  0x65   : > { %3133 = shalt.err (!%p3130_p10)
}
  0x66   : > { %2762 = dma.hbm_to_vmem [thread:$0]  (!%p3430_p0), %s563_s27, 1024, %s565_s26, %s553_s3, %s3812_s25, %s3812_s25, %s3811_s28  }
  0x67   : > { %582 = sbr.rel (%p3357_p4) target bundleno = 1395 (0x573), region = 76 }
  0x6c   : > { %3194 = dma.done.wait (%p224_p1), [#allocation4], 256  }
  0x6d   : > { %3196 = vsyncadd (%p224_p1), [#allocation4], 4294967040 }
  0x6e   : > { %3198 = dma.done.wait (%p224_p1), [#allocation7], 4096  }
  0x6f   : > { %3200 = vsyncadd (%p224_p1), [#allocation7], 4294963200 }
  0x70   : > { %3202 = dma.done.wait (%p224_p1), [#allocation10], 1040  }
  0x71   : > { %3204 = vsyncadd (%p224_p1), [#allocation10], 4294966256 }
  0x72   : > { %3206 = dma.done.wait (%p224_p1), [#allocation13], 1040  }
  0x73   : > { %3208 = vsyncadd (%p224_p1), [#allocation13], 4294966256  ;;  %s619_s21 = sand.u32 1, %s3351_s20   ;;  %s621_s19 = sand.u32 1, %s3227_s30  }
  0x74   : > { %s2085_s17 = sshll.u32 %s621_s19, 6  ;;  %s620_s28 = scalar_lea.sflag [#allocation16], %s619_s21 }
  0x75   : > { %s3541_s25 = scalar_lea.vmem [#allocation15], %s2085_s17 }
  0x76   : > { %3210 = dma.done.wait (%p3410_p12), %s620_s28, 7168  }
  0x77   : > { %3212 = vsyncadd (%p3410_p12), %s620_s28, 4294960128  ;;  %s2692_s15 = smul.u32 384, %s621_s19  ;;  %s640_s13 = scalar_lea.sflag [#allocation19], %s621_s19 }
  0x78   : > { %s3549_s6 = scalar_lea.vmem [#allocation18], %s2085_s17 }
  0x79   : > { %s3547_s4 = scalar_lea.vmem [#allocation17], %s2692_s15 }
  0x7a   : > { %3214 = dma.done.wait (%p3410_p12), %s640_s13, 1024  }
  0x7b   : > { %3216 = vsyncadd (%p3410_p12), %s640_s13, 4294966272  ;;  %p704_p4 = scmp.lt.s32.totalorder %s3351_s20, 1  ;;  %s3819_s16 = sld [smem:[#allocation38_spill]]  ;;  %v3573_v0 = vld [vmem:[#allocation3] sm:$0xff]  ;;  %v3575_v1 = vld [vmem:[#allocation3 + $0x8] sm:$0xff] }
  0x7d   : > { %s3557_s14 = scalar_select %p704_p4, %s3351_s20, 1 }
  0x7e   : > { %719 = sbr.rel (%p2062_p3) target bundleno = 300 (0x12c), region = 120 }
  0x7f   : > { %s706_s26 = scalar_lea.vmem %s3772_s9, %s3557_s14  ;;  %s2087_s27 = sshll.u32 %s3557_s14, 1 }
  0x80   : > { %s3567_s2 = scalar_lea.vmem %s3774_s11, %s2087_s27 }
  0x81   : > { %s713_s1 = scalar_lea.vmem %s3819_s16, %s3557_s14 }
  0x83   : > { %v2585_v2 = vld [vmem:[#allocation9 + $0x38] sm:$0xff]  ;;  %v3248_v3 = vmov 0.0   ;;  %v2584_v4 = vld [vmem:[#allocation9 + $0x30] sm:$0xff]  ;;  %v2583_v5 = vld [vmem:[#allocation9 + $0x28] sm:$0xff]  ;;  %v722_v11 = vpack.c.bf16 %v3575_v1, %v3573_v0 }
  0x84   : > { %720 = vst [vmem:[#allocation2] sm:$0xff] %v3248_v3  ;;  %791 = vmatpush.bf16.msra.mxu0 %v2585_v2  ;;  %v2582_v6 = vld [vmem:[#allocation9 + $0x20] sm:$0xff]  ;;  %v2581_v7 = vld [vmem:[#allocation9 + $0x18] sm:$0xff]  ;;  %v2580_v8 = vld [vmem:[#allocation9 + $0x10] sm:$0xff] }
  0x85   : > { %721 = vst [vmem:[#allocation2 + $0x10] sm:$0xff] %v3248_v3  ;;  %v2579_v9 = vld [vmem:[#allocation9 + $0x8] sm:$0xff]  ;;  %v2578_v10 = vld [vmem:[#allocation9] sm:$0xff] }
  0x86   : > { %v2827_v12 = vld [vmem:[#allocation11] ss:$0 sm:$0xff] }
  0x88   : > { %792 = vmatpush.bf16.msra.mxu0 %v2584_v4 }
  0x8c   : > { %793 = vmatpush.bf16.msra.mxu0 %v2583_v5 }
  0x90   : > { %794 = vmatpush.bf16.msra.mxu0 %v2582_v6 }
  0x94   : > { %795 = vmatpush.bf16.msra.mxu0 %v2581_v7 }
  0x98   : > { %796 = vmatpush.bf16.msra.mxu0 %v2580_v8 }
  0x9c   : > { %797 = vmatpush.bf16.msra.mxu0 %v2579_v9 }
  0xa0   : > { %798 = vmatpush.bf16.msra.mxu0 %v2578_v10 }
  0xa3   : > { %799 = vmatmul.bf16.vlgmr.msra.gmra.mxu0 %v722_v11 }
 0x120   : > { %v800_v13 = vpop.f32.mrf.mxu0 }
 0x121   : > { %v801_v14 = vadd.f32 %v2827_v12, %v800_v13 }
 0x123   : > { %805 = vst [vmem:[#allocation2 + $0x8] sm:$0xff] %v801_v14 }
 0x128   : > { %v802_v15 = vpop.f32.mrf.mxu0 }
 0x129   : > { %v803_v16 = vadd.f32 %v2827_v12, %v802_v15 }
 0x12b   : > { %806 = vst [vmem:[#allocation2 + $0x18] sm:$0xff] %v803_v16 }
 0x12c PF: > { %v2593_v17 = vld [vmem:[%s3541_s25 + $0x38] sm:$0xff]  ;;  %v2624_v18 = vld [vmem:[%s3547_s4 + $0xf4] sm:$0xf]  ;;  %v2622_v21 = vld [vmem:[%s3547_s4 + $0xe4] sm:$0xf]  ;;  %s3821_s28 = sld [smem:[#allocation34_spill]] }
 0x12d   : > { %v2229_v19 = vld [vmem:[%s3547_s4 + $0xf8] sm:$0xf0]  ;;  %v2221_v22 = vld [vmem:[%s3547_s4 + $0xe8] sm:$0xf0]  ;;  %878 = vmatpush.bf16.msra.mxu0 %v2593_v17  ;;  %v2592_v23 = vld [vmem:[%s3541_s25 + $0x30] sm:$0xff] }
 0x12e   : > { %v2232_v20 = vor.u32 %v2624_v18, %v2229_v19  ;;  %v2224_v24 = vor.u32 %v2622_v21, %v2221_v22  ;;  %v2227_v25 = vld [vmem:[%s3547_s4 + $0xf0] sm:$0xf]  ;;  %v2625_v26 = vld [vmem:[%s3547_s4 + $0xf4] sm:$0xf0]  ;;  %v2620_v27 = vld [vmem:[%s3547_s4 + $0xd4] sm:$0xf] }
 0x12f   : > { %v2213_v28 = vld [vmem:[%s3547_s4 + $0xd8] sm:$0xf0]  ;;  %v2228_v29 = vor.u32 %v2625_v26, %v2227_v25  ;;  %v2219_v30 = vld [vmem:[%s3547_s4 + $0xe0] sm:$0xf]  ;;  %v2623_v31 = vld [vmem:[%s3547_s4 + $0xe4] sm:$0xf0] }
 0x130   : > { %1030 = vmatpush.bf16.msra.mxu2 %v2232_v20  ;;  %v2591_v32 = vld [vmem:[%s3541_s25 + $0x28] sm:$0xff]  ;;  %v2220_v33 = vor.u32 %v2623_v31, %v2219_v30  ;;  %v2216_v34 = vor.u32 %v2620_v27, %v2213_v28  ;;  %v2211_v35 = vld [vmem:[%s3547_s4 + $0xd0] sm:$0xf]  ;;  %v2621_v36 = vld [vmem:[%s3547_s4 + $0xd4] sm:$0xf0] }
 0x131   : > { %879 = vmatpush.bf16.msra.mxu0 %v2592_v23  ;;  %1016 = vmatpush.bf16.msra.mxu1 %v2228_v29  ;;  %v2618_v37 = vld [vmem:[%s3547_s4 + $0xc4] sm:$0xf]  ;;  %v2205_v38 = vld [vmem:[%s3547_s4 + $0xc8] sm:$0xf0]  ;;  %v2212_v40 = vor.u32 %v2621_v36, %v2211_v35  ;;  %v2203_v42 = vld [vmem:[%s3547_s4 + $0xc0] sm:$0xf] }
 0x132   : > { %v2590_v39 = vld [vmem:[%s3541_s25 + $0x20] sm:$0xff]  ;;  %v2208_v41 = vor.u32 %v2618_v37, %v2205_v38  ;;  %v2619_v43 = vld [vmem:[%s3547_s4 + $0xc4] sm:$0xf0]  ;;  %v2616_v44 = vld [vmem:[%s3547_s4 + $0xb4] sm:$0xf] }
 0x133   : > { %v2197_v45 = vld [vmem:[%s3547_s4 + $0xb8] sm:$0xf0]  ;;  %v2291_v46 = vld [vmem:[%s3547_s4 + $0x70] sm:$0xf]  ;;  %v2609_v47 = vld [vmem:[%s3547_s4 + $0x74] sm:$0xf0]  ;;  %v2204_v49 = vor.u32 %v2619_v43, %v2203_v42 }
 0x134   : > { %1031 = vmatpush.bf16.msra.mxu2 %v2224_v24  ;;  %v2589_v48 = vld [vmem:[%s3541_s25 + $0x18] sm:$0xff]  ;;  %v2292_v50 = vor.u32 %v2609_v47, %v2291_v46  ;;  %v2200_v51 = vor.u32 %v2616_v44, %v2197_v45  ;;  %v2195_v52 = vld [vmem:[%s3547_s4 + $0xb0] sm:$0xf]  ;;  %v2614_v54 = vld [vmem:[%s3547_s4 + $0xa4] sm:$0xf] }
 0x135   : > { %880 = vmatpush.bf16.msra.mxu0 %v2591_v32  ;;  %1017 = vmatpush.bf16.msra.mxu1 %v2220_v33  ;;  %v2617_v53 = vld [vmem:[%s3547_s4 + $0xb4] sm:$0xf0]  ;;  %v2189_v55 = vld [vmem:[%s3547_s4 + $0xa8] sm:$0xf0]  ;;  %v2283_v56 = vld [vmem:[%s3547_s4 + $0x60] sm:$0xf] }
 0x136   : > { %1124 = vmatpush.bf16.msra.mxu3 %v2292_v50  ;;  %v2607_v57 = vld [vmem:[%s3547_s4 + $0x64] sm:$0xf0]  ;;  %v2588_v58 = vld [vmem:[%s3541_s25 + $0x10] sm:$0xff]  ;;  %v2196_v59 = vor.u32 %v2617_v53, %v2195_v52  ;;  %v2192_v61 = vor.u32 %v2614_v54, %v2189_v55  ;;  %v2187_v63 = vld [vmem:[%s3547_s4 + $0xa0] sm:$0xf] }
 0x137   : > { %v2284_v60 = vor.u32 %v2607_v57, %v2283_v56  ;;  %v2612_v62 = vld [vmem:[%s3547_s4 + $0x94] sm:$0xf]  ;;  %v2615_v2 = vld [vmem:[%s3547_s4 + $0xa4] sm:$0xf0]  ;;  %v2181_v3 = vld [vmem:[%s3547_s4 + $0x98] sm:$0xf0] }
 0x138   : > { %1032 = vmatpush.bf16.msra.mxu2 %v2216_v34  ;;  %v2275_v4 = vld [vmem:[%s3547_s4 + $0x50] sm:$0xf]  ;;  %v2605_v5 = vld [vmem:[%s3547_s4 + $0x54] sm:$0xf0]  ;;  %v2587_v6 = vld [vmem:[%s3541_s25 + $0x8] sm:$0xff]  ;;  %v2188_v10 = vor.u32 %v2615_v2, %v2187_v63  ;;  %v2184_v12 = vor.u32 %v2612_v62, %v2181_v3 }
 0x139   : > { %881 = vmatpush.bf16.msra.mxu0 %v2590_v39  ;;  %1018 = vmatpush.bf16.msra.mxu1 %v2212_v40  ;;  %v2276_v7 = vor.u32 %v2605_v5, %v2275_v4  ;;  %v2610_v8 = vld [vmem:[%s3547_s4 + $0x84] sm:$0xf]  ;;  %v2173_v9 = vld [vmem:[%s3547_s4 + $0x88] sm:$0xf0]  ;;  %v2267_v11 = vld [vmem:[%s3547_s4 + $0x40] sm:$0xf] }
 0x13a   : > { %1125 = vmatpush.bf16.msra.mxu3 %v2284_v60  ;;  %v2179_v13 = vld [vmem:[%s3547_s4 + $0x90] sm:$0xf]  ;;  %v2613_v14 = vld [vmem:[%s3547_s4 + $0x94] sm:$0xf0]  ;;  %v2603_v15 = vld [vmem:[%s3547_s4 + $0x44] sm:$0xf0]  ;;  %v2176_v30 = vor.u32 %v2610_v8, %v2173_v9 }
 0x13b   : > { %v2586_v16 = vld [vmem:[%s3541_s25] sm:$0xff]  ;;  %v2608_v17 = vld [vmem:[%s3547_s4 + $0x74] sm:$0xf]  ;;  %v2293_v18 = vld [vmem:[%s3547_s4 + $0x78] sm:$0xf0]  ;;  %v2268_v20 = vor.u32 %v2603_v15, %v2267_v11  ;;  %v2180_v26 = vor.u32 %v2613_v14, %v2179_v13 }
 0x13c   : > { %1033 = vmatpush.bf16.msra.mxu2 %v2208_v41  ;;  %v2640_v19 = vld [vmem:[%s3547_s4 + $0x174] sm:$0xf]  ;;  %v2373_v21 = vld [vmem:[%s3547_s4 + $0x178] sm:$0xf0]  ;;  %v2259_v22 = vld [vmem:[%s3547_s4 + $0x30] sm:$0xf]  ;;  %v2296_v31 = vor.u32 %v2608_v17, %v2293_v18 }
 0x13d   : > { %882 = vmatpush.bf16.msra.mxu0 %v2589_v48  ;;  %1019 = vmatpush.bf16.msra.mxu1 %v2204_v49  ;;  %v2601_v23 = vld [vmem:[%s3547_s4 + $0x34] sm:$0xf0]  ;;  %v2606_v24 = vld [vmem:[%s3547_s4 + $0x64] sm:$0xf]  ;;  %v2285_v25 = vld [vmem:[%s3547_s4 + $0x68] sm:$0xf0]  ;;  %v2376_v35 = vor.u32 %v2640_v19, %v2373_v21 }
 0x13e   : > { %1126 = vmatpush.bf16.msra.mxu3 %v2276_v7  ;;  %v916_v27 = vld [vmem:[#allocation2 + $0x7] sm:$0xff]  ;;  %v3637_v29 = vld [vmem:[#allocation2 + $0x18] sm:$0xff]  ;;  %v2171_v33 = vld [vmem:[%s3547_s4 + $0x80] sm:$0xf]  ;;  %v2260_v39 = vor.u32 %v2601_v23, %v2259_v22  ;;  %v2288_v46 = vor.u32 %v2606_v24, %v2285_v25 }
 0x13f   : > { %v3635_v28 = vld [vmem:[#allocation2 + $0x8] sm:$0xff]  ;;  %v917_v32 = vld [vmem:[#allocation2 + $0x17] sm:$0xff]  ;;  %v2371_v37 = vld [vmem:[%s3547_s4 + $0x170] sm:$0xf] }
 0x140   : > { %1034 = vmatpush.bf16.msra.mxu2 %v2200_v51  ;;  %v2611_v34 = vld [vmem:[%s3547_s4 + $0x84] sm:$0xf0]  ;;  %v2638_v36 = vld [vmem:[%s3547_s4 + $0x164] sm:$0xf]  ;;  %v2641_v38 = vld [vmem:[%s3547_s4 + $0x174] sm:$0xf0]  ;;  %v3647_v41 = vpack.c.bf16 %v3637_v29, %v3635_v28  ;;  %v918_v44 = vpack.c.bf16 %v917_v32, %v916_v27 }
 0x141   : > { %883 = vmatpush.bf16.msra.mxu0 %v2588_v58  ;;  %1020 = vmatpush.bf16.msra.mxu1 %v2196_v59  ;;  %v2365_v40 = vld [vmem:[%s3547_s4 + $0x168] sm:$0xf0]  ;;  %v2251_v42 = vld [vmem:[%s3547_s4 + $0x20] sm:$0xf]  ;;  %v2599_v43 = vld [vmem:[%s3547_s4 + $0x24] sm:$0xf0]  ;;  %v2172_v45 = vor.u32 %v2611_v34, %v2171_v33  ;;  %v2372_v49 = vor.u32 %v2641_v38, %v2371_v37 }
 0x142   : > { %1127 = vmatpush.bf16.msra.mxu3 %v2268_v20  ;;  %v2604_v47 = vld [vmem:[%s3547_s4 + $0x54] sm:$0xf]  ;;  %v2277_v48 = vld [vmem:[%s3547_s4 + $0x58] sm:$0xf0]  ;;  %v2368_v50 = vor.u32 %v2638_v36, %v2365_v40  ;;  %v2363_v52 = vld [vmem:[%s3547_s4 + $0x160] sm:$0xf]  ;;  %v2252_v54 = vor.u32 %v2599_v43, %v2251_v42 }
 0x143   : > { %v2636_v51 = vld [vmem:[%s3547_s4 + $0x154] sm:$0xf]  ;;  %v2639_v53 = vld [vmem:[%s3547_s4 + $0x164] sm:$0xf0]  ;;  %v2357_v55 = vld [vmem:[%s3547_s4 + $0x158] sm:$0xf0]  ;;  %v2280_v60 = vor.u32 %v2604_v47, %v2277_v48 }
 0x144   : > { %1035 = vmatpush.bf16.msra.mxu2 %v2192_v61  ;;  %v2243_v56 = vld [vmem:[%s3547_s4 + $0x10] sm:$0xf]  ;;  %v2597_v57 = vld [vmem:[%s3547_s4 + $0x14] sm:$0xf0]  ;;  %v2602_v58 = vld [vmem:[%s3547_s4 + $0x44] sm:$0xf]  ;;  %v2364_v63 = vor.u32 %v2639_v53, %v2363_v52  ;;  %v2360_v3 = vor.u32 %v2636_v51, %v2357_v55 }
 0x145   : > { %884 = vmatpush.bf16.msra.mxu0 %v2587_v6  ;;  %1021 = vmatpush.bf16.msra.mxu1 %v2188_v10  ;;  %v2269_v59 = vld [vmem:[%s3547_s4 + $0x48] sm:$0xf0]  ;;  %v2634_v61 = vld [vmem:[%s3547_s4 + $0x144] sm:$0xf]  ;;  %v2355_v2 = vld [vmem:[%s3547_s4 + $0x150] sm:$0xf]  ;;  %v2244_v5 = vor.u32 %v2597_v57, %v2243_v56 }
 0x146   : > { %1128 = vmatpush.bf16.msra.mxu3 %v2260_v39  ;;  %v2349_v62 = vld [vmem:[%s3547_s4 + $0x148] sm:$0xf0]  ;;  %v2637_v4 = vld [vmem:[%s3547_s4 + $0x154] sm:$0xf0]  ;;  %v2235_v6 = vld [vmem:[%s3547_s4] sm:$0xf]  ;;  %v2272_v8 = vor.u32 %v2602_v58, %v2269_v59 }
 0x147   : > { %v2595_v7 = vld [vmem:[%s3547_s4 + $0x4] sm:$0xf0]  ;;  %v2600_v9 = vld [vmem:[%s3547_s4 + $0x34] sm:$0xf]  ;;  %v2356_v10 = vor.u32 %v2637_v4, %v2355_v2  ;;  %v2352_v11 = vor.u32 %v2634_v61, %v2349_v62  ;;  %v2347_v13 = vld [vmem:[%s3547_s4 + $0x140] sm:$0xf] }
 0x148   : > { %1036 = vmatpush.bf16.msra.mxu2 %v2184_v12  ;;  %v2261_v12 = vld [vmem:[%s3547_s4 + $0x38] sm:$0xf0]  ;;  %v2635_v14 = vld [vmem:[%s3547_s4 + $0x144] sm:$0xf0]  ;;  %v2236_v15 = vor.u32 %v2595_v7, %v2235_v6  ;;  %v2598_v19 = vld [vmem:[%s3547_s4 + $0x24] sm:$0xf] }
 0x149   : > { %885 = vmatpush.bf16.msra.mxu0 %v2586_v16  ;;  %1022 = vmatpush.bf16.msra.mxu1 %v2180_v26  ;;  %v2632_v16 = vld [vmem:[%s3547_s4 + $0x134] sm:$0xf]  ;;  %v2341_v17 = vld [vmem:[%s3547_s4 + $0x138] sm:$0xf0]  ;;  %v2264_v18 = vor.u32 %v2600_v9, %v2261_v12  ;;  %v2348_v20 = vor.u32 %v2635_v14, %v2347_v13  ;;  %v898_v22 = vld [vmem:[#allocation2 + $0x16] sm:$0xff] }
 0x14a   : > { %1129 = vmatpush.bf16.msra.mxu3 %v2252_v54  ;;  %v897_v21 = vld [vmem:[#allocation2 + $0x6] sm:$0xff]  ;;  %v2344_v23 = vor.u32 %v2632_v16, %v2341_v17  ;;  %v2253_v24 = vld [vmem:[%s3547_s4 + $0x28] sm:$0xf0]  ;;  %v2630_v27 = vld [vmem:[%s3547_s4 + $0x124] sm:$0xf] }
 0x14b   : > { %v2339_v25 = vld [vmem:[%s3547_s4 + $0x130] sm:$0xf]  ;;  %v2633_v26 = vld [vmem:[%s3547_s4 + $0x134] sm:$0xf0]  ;;  %v2256_v32 = vor.u32 %v2598_v19, %v2253_v24  ;;  %v2596_v33 = vld [vmem:[%s3547_s4 + $0x14] sm:$0xf] }
 0x14c   : > { %1037 = vmatpush.bf16.msra.mxu2 %v2176_v30  ;;  %886 = vmatmul.bf16.vlgmr.msra.gmra.mxu0 %v3647_v41  ;;  %v2333_v30 = vld [vmem:[%s3547_s4 + $0x128] sm:$0xf0]  ;;  %v2340_v34 = vor.u32 %v2633_v26, %v2339_v25  ;;  %v2245_v36 = vld [vmem:[%s3547_s4 + $0x18] sm:$0xf0]  ;;  %v2331_v37 = vld [vmem:[%s3547_s4 + $0x120] sm:$0xf] }
 0x14d   : > { %1138 = vmatpush.bf16.msrb.mxu0 %v2296_v31  ;;  %1023 = vmatpush.bf16.msra.mxu1 %v2172_v45  ;;  %v899_v31 = vpack.c.bf16 %v898_v22, %v897_v21  ;;  %v2631_v38 = vld [vmem:[%s3547_s4 + $0x124] sm:$0xf0]  ;;  %v2628_v39 = vld [vmem:[%s3547_s4 + $0x114] sm:$0xf]  ;;  %v2325_v40 = vld [vmem:[%s3547_s4 + $0x118] sm:$0xf0]  ;;  %v2248_v42 = vor.u32 %v2596_v33, %v2245_v36 }
 0x14e   : > { %1130 = vmatpush.bf16.msra.mxu3 %v2244_v5  ;;  %v2594_v43 = vld [vmem:[%s3547_s4 + $0x4] sm:$0xf]  ;;  %v2328_v45 = vor.u32 %v2628_v39, %v2325_v40  ;;  %v2323_v47 = vld [vmem:[%s3547_s4 + $0x110] sm:$0xf]  ;;  %v2629_v48 = vld [vmem:[%s3547_s4 + $0x114] sm:$0xf0] }
 0x14f   : > { %1038 = vmatmul.bf16.vlgmr.msra.gmra.mxu2 %v918_v44  ;;  %v2324_v52 = vor.u32 %v2629_v48, %v2323_v47  ;;  %v2315_v54 = vld [vmem:[%s3547_s4 + $0x100] sm:$0xf]  ;;  %v2627_v55 = vld [vmem:[%s3547_s4 + $0x104] sm:$0xf0]  ;;  %v2649_v58 = vld [vmem:[%s3549_s6 + $0x38] sm:$0xff] }
 0x150   : > { %1263 = vmatpush.bf16.msrb.mxu2 %v2376_v35  ;;  %1024 = vmatmul.bf16.vlgmr.msra.gmra.mxu1 %v918_v44  ;;  %v2336_v35 = vor.u32 %v2630_v27, %v2333_v30  ;;  %v2332_v44 = vor.u32 %v2631_v38, %v2331_v37  ;;  %v2316_v56 = vor.u32 %v2627_v55, %v2315_v54  ;;  %v2647_v62 = vld [vmem:[%s3549_s6 + $0x28] sm:$0xff]  ;;  %v2646_v2 = vld [vmem:[%s3549_s6 + $0x20] sm:$0xff]  ;;  %v2665_v25 = vld [vmem:[#allocation6 + $0x78] sm:$0xff] }
 0x151   : > { %1139 = vmatpush.bf16.msrb.mxu0 %v2288_v46  ;;  %1249 = vmatpush.bf16.msrb.mxu1 %v2372_v49  ;;  %v2237_v46 = vld [vmem:[%s3547_s4 + $0x8] sm:$0xf0]  ;;  %v2626_v49 = vld [vmem:[%s3547_s4 + $0x104] sm:$0xf]  ;;  %v2654_v38 = vld [vmem:[#allocation6 + $0x20] sm:$0xff] }
 0x152   : > { %1131 = vmatpush.bf16.msra.mxu3 %v2236_v15  ;;  %v2240_v51 = vor.u32 %v2594_v43, %v2237_v46  ;;  %v3705_v4 = vld [vmem:[%s3567_s2] sm:$0x3]  ;;  %v2642_v17 = vld [vmem:[%s3549_s6] sm:$0xff] }
 0x153   : > { %v1284_v6 = vperm.slane %v3705_v4, 1  ;;  %v2643_v13 = vld [vmem:[%s3549_s6 + $0x8] sm:$0xff]  ;;  %v2662_v39 = vld [vmem:[#allocation6 + $0x60] sm:$0xff] }
 0x154   : > { %1264 = vmatpush.bf16.msrb.mxu2 %v2368_v50  ;;  %v2317_v50 = vld [vmem:[%s3547_s4 + $0x108] sm:$0xf0]  ;;  %s892_s4 = scalar_select %p224_p1, 1, 0 }
 0x155   : > { %1140 = vmatpush.bf16.msrb.mxu0 %v2280_v60  ;;  %1250 = vmatpush.bf16.msrb.mxu1 %v2364_v63  ;;  %v2320_v53 = vor.u32 %v2626_v49, %v2317_v50  ;;  %v2648_v60 = vld [vmem:[%s3549_s6 + $0x30] sm:$0xff]  ;;  %p2539_p1 = scmp.ne.s32.totalorder %s3351_s20, 1 }
 0x156   : > { %1132 = vmatmul.bf16.vlgmr.msra.gmra.mxu3 %v899_v31  ;;  %v2656_v26 = vld [vmem:[#allocation6 + $0x30] sm:$0xff] }
 0x157   : > { %1400 = vmatpush.bf16.msrb.mxu3 %v2649_v58  ;;  %v2664_v27 = vld [vmem:[#allocation6 + $0x70] sm:$0xff] }
 0x158   : > { %1265 = vmatpush.bf16.msrb.mxu2 %v2360_v3 }
 0x159   : > { %1141 = vmatpush.bf16.msrb.mxu0 %v2272_v8  ;;  %1251 = vmatpush.bf16.msrb.mxu1 %v2356_v10  ;;  %v2644_v8 = vld [vmem:[%s3549_s6 + $0x10] sm:$0xff] }
 0x15b   : > { %1401 = vmatpush.bf16.msrb.mxu3 %v2648_v60 }
 0x15c   : > { %1266 = vmatpush.bf16.msrb.mxu2 %v2352_v11 }
 0x15d   : > { %1142 = vmatpush.bf16.msrb.mxu0 %v2264_v18  ;;  %1252 = vmatpush.bf16.msrb.mxu1 %v2348_v20 }
 0x15f   : > { %1402 = vmatpush.bf16.msrb.mxu3 %v2647_v62 }
 0x160   : > { %1267 = vmatpush.bf16.msrb.mxu2 %v2344_v23  ;;  %v2657_v23 = vld [vmem:[#allocation6 + $0x38] sm:$0xff] }
 0x161   : > { %1143 = vmatpush.bf16.msrb.mxu0 %v2256_v32  ;;  %1253 = vmatpush.bf16.msrb.mxu1 %v2340_v34  ;;  %v2663_v32 = vld [vmem:[#allocation6 + $0x68] sm:$0xff] }
 0x163   : > { %1403 = vmatpush.bf16.msrb.mxu3 %v2646_v2 }
 0x164   : > { %1268 = vmatpush.bf16.msrb.mxu2 %v2336_v35 }
 0x165   : > { %1144 = vmatpush.bf16.msrb.mxu0 %v2248_v42  ;;  %1254 = vmatpush.bf16.msrb.mxu1 %v2332_v44  ;;  %v2653_v44 = vld [vmem:[#allocation6 + $0x18] sm:$0xff] }
 0x168   : > { %1269 = vmatpush.bf16.msrb.mxu2 %v2328_v45 }
 0x169   : > { %1145 = vmatpush.bf16.msrb.mxu0 %v2240_v51  ;;  %1255 = vmatpush.bf16.msrb.mxu1 %v2324_v52  ;;  %v2652_v51 = vld [vmem:[#allocation6 + $0x10] sm:$0xff] }
 0x16c   : > { %1270 = vmatpush.bf16.msrb.mxu2 %v2320_v53  ;;  %1146 = vmatmul.bf16.vlgmr.msrb.gmra.mxu0 %v899_v31  ;;  %v2655_v31 = vld [vmem:[#allocation6 + $0x28] sm:$0xff] }
 0x16d   : > { %1256 = vmatpush.bf16.msrb.mxu1 %v2316_v56  ;;  %1508 = vmatpush.bf16.msra.mxu0 %v2657_v23  ;;  %v1283_v56 = vperm.slane %v3705_v4, 0 }
 0x16f   : > { %1271 = vmatmul.bf16.vlgmr.msrb.gmra.mxu2 %v3647_v41 }
 0x170   : > { %1257 = vmatmul.bf16.vlgmr.msrb.gmra.mxu1 %v3647_v41  ;;  %v2645_v41 = vld [vmem:[%s3549_s6 + $0x18] sm:$0xff] }
 0x171   : > { %1404 = vmatpush.bf16.msrb.mxu3 %v2645_v41  ;;  %1569 = vmatpush.bf16.msra.mxu1 %v2665_v25 }
 0x172   : > { %1509 = vmatpush.bf16.msra.mxu0 %v2656_v26 }
 0x175   : > { %1405 = vmatpush.bf16.msrb.mxu3 %v2644_v8  ;;  %1570 = vmatpush.bf16.msra.mxu1 %v2664_v27 }
 0x176   : > { %1510 = vmatpush.bf16.msra.mxu0 %v2655_v31  ;;  %v2830_v31 = vld [vmem:[%s3821_s28] ss:$0 sm:$0xff] }
 0x179   : > { %1406 = vmatpush.bf16.msrb.mxu3 %v2643_v13  ;;  %1571 = vmatpush.bf16.msra.mxu1 %v2663_v32  ;;  %v2661_v13 = vld [vmem:[#allocation6 + $0x58] sm:$0xff] }
 0x17a   : > { %1511 = vmatpush.bf16.msra.mxu0 %v2654_v38  ;;  %v2681_v38 = vld [vmem:[#allocation8 + $0x78] sm:$0xff] }
 0x17d   : > { %1407 = vmatpush.bf16.msrb.mxu3 %v2642_v17  ;;  %1572 = vmatpush.bf16.msra.mxu1 %v2662_v39  ;;  %v2658_v17 = vld [vmem:[#allocation6 + $0x40] sm:$0xff]  ;;  %v2672_v39 = vld [vmem:[#allocation8 + $0x30] sm:$0xff] }
 0x17e   : > { %1512 = vmatpush.bf16.msra.mxu0 %v2653_v44  ;;  %v2670_v44 = vld [vmem:[#allocation8 + $0x20] sm:$0xff] }
 0x181   : > { %1573 = vmatpush.bf16.msra.mxu1 %v2661_v13  ;;  %1745 = vmatpush.bf16.msra.mxu3 %v2681_v38  ;;  %v2828_v13 = vld [vmem:[%s706_s26] ss:$0 sm:$0xff] }
 0x182   : > { %1513 = vmatpush.bf16.msra.mxu0 %v2652_v51 }
 0x1c9   : > { %v3696_v57 = vpop.f32.mrf.mxu0 }
 0x1cd   : > { %v1025_v9 = vpop.f32.mrf.mxu1 }
 0x1d1   : > { %v3700_v61 = vpop.f32.mrf.mxu0 }
 0x1d2   : > { %v1039_v59 = vpop.f32.mrf.mxu2 }
 0x1d5   : > { %v1027_v19 = vpop.f32.mrf.mxu1 }
 0x1d9   : > { %v1133_v30 = vpop.f32.mrf.mxu3 }
 0x1da   : > { %v1041_v63 = vpop.f32.mrf.mxu2  ;;  %v1134_v46 = vadd.f32 %v1133_v30, %v1025_v9 }
 0x1e1   : > { %v1135_v43 = vpop.f32.mrf.mxu3 }
 0x1e2   : > { %v1136_v47 = vadd.f32 %v1135_v43, %v1027_v19  ;;  %v2679_v43 = vld [vmem:[#allocation8 + $0x68] sm:$0xff] }
 0x1e9   : > { %v1147_v3 = vpop.f32.mrf.mxu0 }
 0x1ea   : > { %v1148_v5 = vadd.f32 %v1147_v3, %v1039_v59 }
 0x1ed   : > { %v1258_v34 = vpop.f32.mrf.mxu1 }
 0x1ee   : > { %v1277_v55 = vadd.f32 %v1258_v34, %v1134_v46 }
 0x1f1   : > { %v1149_v12 = vpop.f32.mrf.mxu0 }
 0x1f2   : > { %v1272_v7 = vpop.f32.mrf.mxu2  ;;  %v1150_v15 = vadd.f32 %v1149_v12, %v1041_v63  ;;  %v2651_v12 = vld [vmem:[#allocation6 + $0x8] sm:$0xff] }
 0x1f3   : > { %v1278_v10 = vadd.f32 %v1272_v7, %v1148_v5  ;;  %1514 = vmatpush.bf16.msra.mxu0 %v2651_v12 }
 0x1f5   : > { %v1288_v11 = vadd.f32 %v1284_v6, %v1278_v10  ;;  %v1260_v49 = vpop.f32.mrf.mxu1 }
 0x1f6   : > { %v1279_v58 = vadd.f32 %v1260_v49, %v1136_v47  ;;  %v2669_v47 = vld [vmem:[#allocation8 + $0x18] sm:$0xff] }
 0x1f7   : > { %v2377_v14 = vmul.f32 -1.442695, %v1288_v11 }
 0x1f8   : > { %v1289_v7 = vadd.f32 %v1283_v56, %v1279_v58  ;;  %v2677_v58 = vld [vmem:[#allocation8 + $0x58] sm:$0xff] }
 0x1f9   : > { %2832 = vpow2.f32 %v2377_v14  ;;  %v2650_v14 = vld [vmem:[#allocation6] sm:$0xff] }
 0x1fa   : > { %v1274_v16 = vpop.f32.mrf.mxu2  ;;  %1515 = vmatpush.bf16.msra.mxu0 %v2650_v14  ;;  %v893_v14 = vstv %s892_s4 }
 0x1fb   : > { %v1280_v18 = vadd.f32 %v1274_v16, %v1150_v15  ;;  %v2660_v15 = vld [vmem:[#allocation6 + $0x50] sm:$0xff]  ;;  %v2659_v16 = vld [vmem:[#allocation6 + $0x48] sm:$0xff]  ;;  %vm894_vm8 = vcmp.eq.s32.totalorder %v893_v14, 1 }
 0x1fc   : > { %1574 = vmatpush.bf16.msra.mxu1 %v2660_v15  ;;  %v888_v15 = vadd.f32 %v2828_v13, %v3696_v57 }
 0x1fd   : > { %v1290_v20 = vadd.f32 %v1284_v6, %v1280_v18  ;;  %v1287_v6 = vadd.f32 %v1283_v56, %v1277_v55  ;;  %v2829_v18 = vld [vmem:[%s713_s1] ss:$0 sm:$0xff]  ;;  %v2678_v55 = vld [vmem:[#allocation8 + $0x60] sm:$0xff]  ;;  %v2667_v56 = vld [vmem:[#allocation8 + $0x8] sm:$0xff] }
 0x1ff   : > { %v2833_v21 = vpop.eup %2832  ;;  %v2378_v22 = vmul.f32 -1.442695, %v1290_v20 }
 0x200   : > { %v1297_v24 = vadd.f32 1.0, %v2833_v21  ;;  %1575 = vmatpush.bf16.msra.mxu1 %v2659_v16  ;;  %v895_v16 = vsel %vm894_vm8, %v3635_v28, %v888_v15 }
 0x201   : > { %2834 = vpow2.f32 %v2378_v22 }
 0x202   : > { %2836 = vrcp.f32 %v1297_v24  ;;  %v1310_v52 = vand.u32 2147483648, %v1297_v24  ;;  %vm1304_vm1 = vweird.f32 %v1297_v24  ;;  %v1308_v53 = vand.u32 2147483647, %v1297_v24 }
 0x204   : > { %v1311_v2 = vor.u32 1.1754944e-38, %v1310_v52  ;;  %vm1309_vm4 = vcmp.eq.f32.partialorder %v1308_v53, 8.507059e+37  ;;  %1576 = vmatpush.bf16.msra.mxu1 %v2658_v17 }
 0x207   : > { %v2835_v33 = vpop.eup %2834 }
 0x208   : > { %v2837_v35 = vpop.eup %2836  ;;  %v1298_v36 = vadd.f32 1.0, %v2835_v33 }
 0x209   : > { %v1300_v37 = vmul.f32 %v2837_v35, %v1297_v24  ;;  %vm1305_vm0 = vweird.f32 %v2837_v35 }
 0x20a   : > { %2838 = vrcp.f32 %v1298_v36  ;;  %vm1306_vm2 = vmor %vm1304_vm1, %vm1305_vm0  ;;  %v1325_v59 = vand.u32 2147483648, %v1298_v36  ;;  %v1323_v63 = vand.u32 2147483647, %v1298_v36  ;;  %vm1319_vm5 = vweird.f32 %v1298_v36 }
 0x20b   : > { %v1301_v40 = vsub.f32 1.0, %v1300_v37 }
 0x20c   : > { %v1326_v5 = vor.u32 1.1754944e-38, %v1325_v59  ;;  %vm1324_vm7 = vcmp.eq.f32.partialorder %v1323_v63, 8.507059e+37  ;;  %v2666_v59 = vld [vmem:[#allocation8] sm:$0xff] }
 0x20d   : > { %v1302_v42 = vmul.f32 %v2837_v35, %v1301_v40  ;;  %v2680_v40 = vld [vmem:[#allocation8 + $0x70] sm:$0xff]  ;;  %v2674_v63 = vld [vmem:[#allocation8 + $0x40] sm:$0xff] }
 0x20e   : > { %1746 = vmatpush.bf16.msra.mxu3 %v2680_v40 }
 0x20f   : > { %v1303_v48 = vadd.f32 %v2837_v35, %v1302_v42  ;;  %v2671_v42 = vld [vmem:[#allocation8 + $0x28] sm:$0xff] }
 0x210   : > { %v2839_v45 = vpop.eup %2838 }
 0x211   : > { %v1315_v50 = vmul.f32 %v2839_v45, %v1298_v36  ;;  %v1307_v60 = vsel %vm1306_vm2, %v2837_v35, %v1303_v48  ;;  %vm1320_vm3 = vweird.f32 %v2839_v45 }
 0x212   : > { %v1312_v41 = vsel %vm1309_vm4, %v1311_v2, %v1307_v60  ;;  %vm1321_vm6 = vmor %vm1319_vm5, %vm1320_vm3  ;;  %1747 = vmatpush.bf16.msra.mxu3 %v2679_v43  ;;  %v2676_v60 = vld [vmem:[#allocation8 + $0x50] sm:$0xff] }
 0x213   : > { %v1316_v54 = vsub.f32 1.0, %v1315_v50  ;;  %v3713_v9 = vmul.f32 %v1312_v41, %v1287_v6 }
 0x215   : > { %v1317_v62 = vmul.f32 %v2839_v45, %v1316_v54  ;;  %v2668_v54 = vld [vmem:[#allocation8 + $0x10] sm:$0xff] }
 0x216   : > { %1748 = vmatpush.bf16.msra.mxu3 %v2678_v55 }
 0x217   : > { %v1318_v3 = vadd.f32 %v2839_v45, %v1317_v62  ;;  %v2675_v62 = vld [vmem:[#allocation8 + $0x48] sm:$0xff] }
 0x219   : > { %v1322_v8 = vsel %vm1321_vm6, %v2839_v45, %v1318_v3 }
 0x21a   : > { %v1327_v4 = vsel %vm1324_vm7, %v1326_v5, %v1322_v8  ;;  %1749 = vmatpush.bf16.msra.mxu3 %v2677_v58 }
 0x21b   : > { %v3715_v10 = vmul.f32 %v1327_v4, %v1289_v7 }
 0x21d   : > { %v1331_v11 = vpack.c.bf16 %v3715_v10, %v3713_v9 }
 0x21e   : > { %1750 = vmatpush.bf16.msra.mxu3 %v2676_v60 }
 0x21f   : > { %1408 = vmatmul.bf16.vlgmr.msrb.gmra.mxu3 %v1331_v11 }
 0x222   : > { %1751 = vmatpush.bf16.msra.mxu3 %v2675_v62 }
 0x226   : > { %1752 = vmatpush.bf16.msra.mxu3 %v2674_v63 }
 0x2a2   : > { %v1409_v19 = vpop.f32.mrf.mxu3 }
 0x2a3   : > { %v1410_v20 = vadd.f32 %v2829_v18, %v1409_v19 }
 0x2a5   : > { %v1414_v21 = vadd.f32 %v1410_v20, %v3573_v0  ;;  %v2831_v0 = vld [vmem:[%s3821_s28 + $0x1] ss:$0 sm:$0xff]  ;;  %v1762_v20 = vmul.f32 0.70710677, %v895_v16 }
 0x2a7   : > { %v1416_v22 = vmul.f32 0.70710677, %v1414_v21  ;;  %v890_v21 = vadd.f32 %v2828_v13, %v3700_v61 }
 0x2a9   : > { %v1418_v23 = vpack.c.bf16 %v1416_v22, %v1416_v22 }
 0x2aa   : > { %v1411_v24 = vpop.f32.mrf.mxu3 }
 0x2ab   : > { %v1412_v25 = vadd.f32 %v2829_v18, %v1411_v24  ;;  %1516 = vmatmul.bf16.vlgmr.msra.gmra.mxu0 %v1418_v23  ;;  %v896_v23 = vsel %vm894_vm8, %v3637_v29, %v890_v21 }
 0x2ac   : > { %v1763_v57 = vmul.f32 0.70710677, %v896_v23 }
 0x2ad   : > { %v1415_v26 = vadd.f32 %v1412_v25, %v3575_v1  ;;  %v2673_v1 = vld [vmem:[#allocation8 + $0x38] sm:$0xff] }
 0x2ae   : > { %1684 = vmatpush.bf16.msra.mxu2 %v2673_v1 }
 0x2af   : > { %v1417_v27 = vmul.f32 0.70710677, %v1415_v26 }
 0x2b1   : > { %v1419_v30 = vpack.c.bf16 %v1417_v27, %v1417_v27 }
 0x2b2   : > { %1685 = vmatpush.bf16.msra.mxu2 %v2672_v39 }
 0x2b3   : > { %1577 = vmatmul.bf16.vlgmr.msra.gmra.mxu1 %v1419_v30 }
 0x2b6   : > { %1686 = vmatpush.bf16.msra.mxu2 %v2671_v42 }
 0x2ba   : > { %1687 = vmatpush.bf16.msra.mxu2 %v2670_v44 }
 0x2be   : > { %1688 = vmatpush.bf16.msra.mxu2 %v2669_v47 }
 0x2c2   : > { %1689 = vmatpush.bf16.msra.mxu2 %v2668_v54 }
 0x2c6   : > { %1690 = vmatpush.bf16.msra.mxu2 %v2667_v56 }
 0x2ca   : > { %1691 = vmatpush.bf16.msra.mxu2 %v2666_v59 }
 0x328   : > { %v1517_v32 = vpop.f32.mrf.mxu0 }
 0x329   : > { %v1518_v33 = vadd.f32 %v2830_v31, %v1517_v32 }
 0x32b   : > { %1582 = vmax.xlane.f32.xlu0 %v1518_v33 }
 0x330   : > { %v1519_v34 = vpop.f32.mrf.mxu0  ;;  %v1578_v35 = vpop.f32.mrf.mxu1 }
 0x331   : > { %v1579_v36 = vadd.f32 %v2831_v0, %v1578_v35 }
 0x333   : > { %1584 = vmax.xlane.f32.xlu0 %v1579_v36 }
 0x338   : > { %v1580_v37 = vpop.f32.mrf.mxu1 }
 0x39e   : > { %v1583_v45 = vpop.xlane.xlu0 %1582 }
 0x39f   : > { %v1586_v46 = vsub.f32 %v1518_v33, %v1583_v45 }
 0x3a1   : > { %v1588_v48 = vmul.f32 1.442695, %v1586_v46 }
 0x3a3   : > { %2840 = vpow2.f32 %v1588_v48 }
 0x3a6   : > { %v1585_v49 = vpop.xlane.xlu0 %1584 }
 0x3a7   : > { %v1587_v50 = vsub.f32 %v1579_v36, %v1585_v49 }
 0x3a9   : > { %v2841_v51 = vpop.eup %2840  ;;  %v1590_v52 = vmul.f32 1.442695, %v1587_v50 }
 0x3aa   : > { %1592 = vadd.xlane.f32.xlu1 %v2841_v51 }
 0x3ab   : > { %2842 = vpow2.f32 %v1590_v52 }
 0x3b1   : > { %v2843_v53 = vpop.eup %2842 }
 0x3b2   : > { %1594 = vadd.xlane.f32.xlu1 %v2843_v53 }
 0x41d   : > { %v1593_v2 = vpop.xlane.xlu1 %1592 }
 0x41e   : > { %2844 = vrcp.f32 %v1593_v2 }
 0x424   : > { %v2845_v3 = vpop.eup %2844 }
 0x425   : > { %v1598_v41 = vmul.f32 2.828427, %v2845_v3  ;;  %v1595_v5 = vpop.xlane.xlu1 %1594 }
 0x426   : > { %2846 = vrcp.f32 %v1595_v5 }
 0x427   : > { %v1600_v6 = vmul.f32 %v2841_v51, %v1598_v41 }
 0x429   : > { %v1602_v7 = vpack.c.bf16 %v1600_v6, %v1600_v6 }
 0x42b   : > { %1692 = vmatmul.bf16.vlgmr.msra.gmra.mxu2 %v1602_v7 }
 0x42c   : > { %v2847_v8 = vpop.eup %2846 }
 0x42d   : > { %v1599_v4 = vmul.f32 2.828427, %v2847_v8 }
 0x42f   : > { %v1601_v11 = vmul.f32 %v2843_v53, %v1599_v4 }
 0x431   : > { %v1603_v12 = vpack.c.bf16 %v1601_v11, %v1601_v11 }
 0x433   : > { %1753 = vmatmul.bf16.vlgmr.msra.gmra.mxu3 %v1603_v12 }
 0x4ae   : > { %v1693_v17 = vpop.f32.mrf.mxu2 }
 0x4af   : > { %v1758_v18 = vadd.f32 %v1693_v17, %v3713_v9 }
 0x4b1   : > { %v1760_v19 = vmul.f32 0.5, %v1758_v18 }
 0x4b3   : > { %v1764_v22 = vadd.f32 %v1762_v20, %v1760_v19 }
 0x4b5   : > { %1766 = vst [vmem:[#allocation2 + $0x8] sm:$0xff] %v1764_v22 }
 0x4b6   : > { %v1695_v24 = vpop.f32.mrf.mxu2  ;;  %v1754_v25 = vpop.f32.mrf.mxu3 }
 0x4b7   : > { %v1759_v26 = vadd.f32 %v1754_v25, %v3715_v10 }
 0x4b9   : > { %v1761_v27 = vmul.f32 0.5, %v1759_v26 }
 0x4ba   : > { %1771 = sbr.rel (%p2539_p1) target bundleno = 1384 (0x568), region = 124 }
 0x4bb   : > { %v1765_v30 = vadd.f32 %v1763_v57, %v1761_v27 }
 0x4bd   : > { %1767 = vst [vmem:[#allocation2 + $0x18] sm:$0xff] %v1765_v30 }
 0x4be   : > { %v1756_v28 = vpop.f32.mrf.mxu3 }
 0x4bf   : > { %v2689_v9 = vld [vmem:[#allocation12 + $0x38] sm:$0xff]  ;;  %v2688_v31 = vld [vmem:[#allocation12 + $0x30] sm:$0xff]  ;;  %v2687_v61 = vld [vmem:[#allocation12 + $0x28] sm:$0xff]  ;;  %v1772_v34 = vpack.c.bf16 %v1765_v30, %v1764_v22 }
 0x4c0   : > { %1841 = vmatpush.bf16.msra.mxu0 %v2689_v9  ;;  %v2686_v32 = vld [vmem:[#allocation12 + $0x20] sm:$0xff]  ;;  %v2685_v29 = vld [vmem:[#allocation12 + $0x18] sm:$0xff]  ;;  %v2684_v33 = vld [vmem:[#allocation12 + $0x10] sm:$0xff] }
 0x4c1   : > { %v2683_v10 = vld [vmem:[#allocation12 + $0x8] sm:$0xff]  ;;  %v2682_v0 = vld [vmem:[#allocation12] sm:$0xff] }
 0x4c2   : > { %v2848_v35 = vld [vmem:[#allocation14] ss:$0 sm:$0xff] }
 0x4c4   : > { %1842 = vmatpush.bf16.msra.mxu0 %v2688_v31 }
 0x4c8   : > { %1843 = vmatpush.bf16.msra.mxu0 %v2687_v61 }
 0x4cc   : > { %1844 = vmatpush.bf16.msra.mxu0 %v2686_v32 }
 0x4d0   : > { %1845 = vmatpush.bf16.msra.mxu0 %v2685_v29 }
 0x4d4   : > { %1846 = vmatpush.bf16.msra.mxu0 %v2684_v33 }
 0x4d8   : > { %1847 = vmatpush.bf16.msra.mxu0 %v2683_v10 }
 0x4dc   : > { %1848 = vmatpush.bf16.msra.mxu0 %v2682_v0 }
 0x4df   : > { %1849 = vmatmul.bf16.vlgmr.msra.gmra.mxu0 %v1772_v34 }
 0x55c   : > { %v1850_v36 = vpop.f32.mrf.mxu0 }
 0x55d   : > { %v1851_v37 = vadd.f32 %v2848_v35, %v1850_v36 }
 0x55f   : > { %1855 = vst [vmem:[#allocation20] sm:$0xff] %v1851_v37 }
 0x564   : > { %v1852_v1 = vpop.f32.mrf.mxu0 }
 0x565   : > { %v1853_v38 = vadd.f32 %v2848_v35, %v1852_v1 }
 0x567   : > { %1856 = vst [vmem:[#allocation20 + $0x8] sm:$0xff] %v1853_v38 }
 0x568 PF: > { %p2778_p3 = scmp.eq.s32.totalorder %s3351_s20, 1  ;;  %s3249_s14 = smov [#allocation20]  }
 0x569   : > { %s1862_s22 = sshll.u32 %s3249_s14, 4  ;;  %s3822_s27 = sld [smem:[#allocation39_spill]]  ;;  %s1863_s22 = int_to_ptr.vmem [resolvable:$true] %s1862_s22 }
 0x56a   : > { %s3250_s29 = smov 128   ;;  %s3251_s2 = smov 8  }
 0x56f   : > { %s1864_s3 = sshll.u32 %s3822_s27, 4  ;;  %s1865_s3 = int_to_ptr.hbm [resolvable:$true] %s1864_s3 }
 0x570   : > { %2728 = dma.vmem_to_hbm [thread:$0]  (%p2778_p3), %s1863_s22, 256, %s1865_s3, [#allocation5], %s3250_s29, %s3250_s29, %s3251_s2  }
 0x571   : > { %3218 = dma.done.wait (%p2778_p3), [#allocation5], 256  }
 0x572   : > { %3220 = vsyncadd (%p2778_p3), [#allocation5], 4294967040 }
 0x573 PF: > { %s3823_s16 = sld [smem:[#allocation29_spill]]  ;;  %s3826_s29 = smov %s3227_s30 }
 0x574   : > { %s3824_s18 = sld [smem:[#allocation28_spill]] }
 0x575   : > { %s3825_s15 = sld [smem:[#allocation30_spill]] }
 0x579   : > { %p32_p12 = scmp.ge.s32.totalorder %s3823_s16, 4  }
 0x57a   : > { %s3827_s30 = smov %s3824_s18 }
 0x57b   :  { %34 = sbr.rel (!%p32_p12) target bundleno = 20 (0x14), region = 185 }
 0x580   :  { %1881 = vsyncpa [#allocation4], 1 }
 0x581   :  { %1883 = vsyncpa [#allocation4 + $0x1], 1 }
 0x582   :  { %1884 = vsyncpa [#allocation7], 1 }
 0x583   :  { %1885 = vsyncpa [#allocation10], 1 }
 0x584   :  { %1886 = vsyncpa [#allocation13], 1 }
 0x585   :  { %1887 = vsyncpa [#allocation16], 1 }
 0x586   :  { %1889 = vsyncpa [#allocation16 + $0x1], 1 }
 0x587   :  { %1890 = vsyncpa [#allocation19], 1 }
 0x588   :  { %1892 = vsyncpa [#allocation19 + $0x1], 1 }
 0x589   :  { %1893 = vsyncpa [#allocation5], 1 }
 0x58a   :  { %1895 = vsyncpa [#allocation5 + $0x1], 1 }

</bundles_post_ra>
